<compile_context>
chip_gen: v6e
topology: v6e:2x2x1
jax: 0.10.0
libtpu: 0.0.40
codegen_flags: <defaults>
</compile_context>

<pallas_src>
import functools

import jax
import jax.numpy as jnp
from jax import lax
from jax.experimental import pallas as pl
from jax.experimental.pallas import tpu as pltpu

CP = 128       # padded channel width (lane-dense)
FC_H = 256     # padded fc hidden width (200 -> 256)
FC_OUT = 128   # padded logits width (10 -> 128)


# ----------------------------------------------------------------------------
# Fused conv/pool "features" kernel (one image per grid step)
# ----------------------------------------------------------------------------
def _pool_selectors(out_w, in_w):
    """0/1 matrices gathering even / odd columns (tiny MXU gathers)."""
    r = lax.broadcasted_iota(jnp.int32, (out_w, in_w), 0)
    c = lax.broadcasted_iota(jnp.int32, (out_w, in_w), 1)
    s_even = jnp.where(c == 2 * r, 1.0, 0.0).astype(jnp.bfloat16)
    s_odd = jnp.where(c == 2 * r + 1, 1.0, 0.0).astype(jnp.bfloat16)
    return s_even, s_odd


def _features_kernel(p_ref, w1_ref, b1_ref, w2_ref, b2_ref, w3_ref, b3_ref,
                     w4_ref, b4_ref, out_ref, act1, act2, pool1, act3, act4):
    f32 = jnp.float32
    bf16 = jnp.bfloat16

    # ---- conv1 (Cin=1): single matmul on pre-built (676, 9) patches --------
    c1 = jnp.dot(p_ref[...], w1_ref[...], preferred_element_type=f32)
    act1[...] = jnp.maximum(c1 + b1_ref[...], 0.0)

    # ---- generic 3x3 valid conv: row-wise, 9 shifted dots, f32 accumulate --
    def conv3x3(src, w_ref, b_ref, dst, iw, oh, ow):
        bias = b_ref[...]

        def row(h, carry):
            acc = jnp.zeros((ow, CP), f32)
            for k in range(9):
                dy, dx = divmod(k, 3)
                a = src[pl.ds((h + dy) * iw + dx, ow), :].astype(bf16)
                acc = acc + jnp.dot(a, w_ref[k], preferred_element_type=f32)
            dst[pl.ds(h * ow, ow), :] = jnp.maximum(acc + bias, 0.0)
            return carry

        lax.fori_loop(0, oh, row, 0)

    # ---- fused 2x2 / stride-2 maxpool -------------------------------------
    def maxpool2x2(src, dst, iw):
        oh, ow = iw // 2, iw // 2
        s_even, s_odd = _pool_selectors(ow, iw)

        def row(u, carry):
            r0 = src[pl.ds((2 * u) * iw, iw), :]
            r1 = src[pl.ds((2 * u + 1) * iw, iw), :]
            rmax = jnp.maximum(r0, r1).astype(bf16)
            even = jnp.dot(s_even, rmax, preferred_element_type=f32)
            odd = jnp.dot(s_odd, rmax, preferred_element_type=f32)
            dst[pl.ds(u * ow, ow), :] = jnp.maximum(even, odd)
            return carry

        lax.fori_loop(0, oh, row, 0)

    conv3x3(act1, w2_ref, b2_ref, act2, 26, 24, 24)   # (26,26,CP) -> (24,24,CP)
    maxpool2x2(act2, pool1, 24)                       # -> (12,12,CP)
    conv3x3(pool1, w3_ref, b3_ref, act3, 12, 10, 10)  # -> (10,10,CP)
    conv3x3(act3, w4_ref, b4_ref, act4, 10, 8, 8)     # -> (8,8,CP)
    maxpool2x2(act4, out_ref, 8)                      # -> (4,4,CP) straight to out


def _features(patches, cw):
    """patches: (N, 676, 9) bf16  ->  pooled features (N, 16, 128) f32."""
    n = patches.shape[0]
    c2 = lambda i: (0, 0)
    c3 = lambda i: (0, 0, 0)
    return pl.pallas_call(
        _features_kernel,
        out_shape=jax.ShapeDtypeStruct((n, 16, CP), jnp.float32),
        grid=(n,),
        in_specs=[
            pl.BlockSpec((None, 26 * 26, 9), lambda i: (i, 0, 0)),
            pl.BlockSpec((9, CP), c2),        # conv1 weight (resident)
            pl.BlockSpec((1, CP), c2),
            pl.BlockSpec((9, CP, CP), c3),    # conv2 weight (resident)
            pl.BlockSpec((1, CP), c2),
            pl.BlockSpec((9, CP, CP), c3),    # conv3 weight (resident)
            pl.BlockSpec((1, CP), c2),
            pl.BlockSpec((9, CP, CP), c3),    # conv4 weight (resident)
            pl.BlockSpec((1, CP), c2),
        ],
        out_specs=pl.BlockSpec((None, 16, CP), lambda i: (i, 0, 0)),
        scratch_shapes=[
            pltpu.VMEM((26 * 26, CP), jnp.float32),   # act1
            pltpu.VMEM((24 * 24, CP), jnp.float32),   # act2
            pltpu.VMEM((12 * 12, CP), jnp.float32),   # pool1
            pltpu.VMEM((10 * 10, CP), jnp.float32),   # act3
            pltpu.VMEM((8 * 8, CP), jnp.float32),     # act4
        ],
        compiler_params=pltpu.CompilerParams(dimension_semantics=("parallel",)),
    )(patches, cw["w1"], cw["b1"], cw["w2"], cw["b2"],
      cw["w3"], cw["b3"], cw["w4"], cw["b4"])


# ----------------------------------------------------------------------------
# Fused fc1 -> relu -> fc2 -> relu -> fc3 kernel (batch tiled over M)
# ----------------------------------------------------------------------------
def _fc_kernel(x_ref, w1_ref, b1_ref, w2_ref, b2_ref, w3_ref, b3_ref, o_ref):
    bf16 = jnp.bfloat16
    f32 = jnp.float32
    h = jnp.dot(x_ref[...].astype(bf16), w1_ref[...], preferred_element_type=f32)
    h = jnp.maximum(h + b1_ref[...], 0.0)
    # TODO(synk): nn.Dropout(0.5) treated as inference-mode identity (eval()).
    h = jnp.dot(h.astype(bf16), w2_ref[...], preferred_element_type=f32)
    h = jnp.maximum(h + b2_ref[...], 0.0)
    out = jnp.dot(h.astype(bf16), w3_ref[...], preferred_element_type=f32) + b3_ref[...]
    o_ref[...] = out.astype(o_ref.dtype)


def _fc_head(feats, fw):
    """feats: (N, 2048) f32  ->  logits (N, 10) f32."""
    n, k = feats.shape
    n8 = ((n + 7) // 8) * 8
    tm = min(128, n8)
    npad = ((n8 + tm - 1) // tm) * tm
    if npad != n:
        feats = jnp.pad(feats, ((0, npad - n), (0, 0)))
    const = lambda i: (0, 0)
    out = pl.pallas_call(
        _fc_kernel,
        out_shape=jax.ShapeDtypeStruct((npad, FC_OUT), jnp.float32),
        grid=(npad // tm,),
        in_specs=[
            pl.BlockSpec((tm, k), lambda i: (i, 0)),
            pl.BlockSpec((k, FC_H), const),        # fc1 weight (resident)
            pl.BlockSpec((1, FC_H), const),
            pl.BlockSpec((FC_H, FC_H), const),     # fc2 weight (resident)
            pl.BlockSpec((1, FC_H), const),
            pl.BlockSpec((FC_H, FC_OUT), const),   # fc3 weight (resident)
            pl.BlockSpec((1, FC_OUT), const),
        ],
        out_specs=pl.BlockSpec((tm, FC_OUT), lambda i: (i, 0)),
        compiler_params=pltpu.CompilerParams(dimension_semantics=("parallel",)),
    )(feats, fw["w1"], fw["b1"], fw["w2"], fw["b2"], fw["w3"], fw["b3"])
    return out[:n, :10]


# ----------------------------------------------------------------------------
# Parameter preparation (zero-padding to lane-dense widths, bf16 weights)
# ----------------------------------------------------------------------------
def _prep_weights(params):
    bf16 = jnp.bfloat16

    def conv_w(w):  # (Cout, Cin, 3, 3) -> (9, CP, CP) bf16, row k = dy*3+dx
        cout, cin = w.shape[0], w.shape[1]
        wk = jnp.transpose(w, (2, 3, 1, 0)).reshape(9, cin, cout)
        return jnp.pad(wk, ((0, 0), (0, CP - cin), (0, CP - cout))).astype(bf16)

    def bias(b, width):
        return jnp.pad(b, (0, width - b.shape[0])).reshape(1, width).astype(jnp.float32)

    w1k = jnp.transpose(params["conv1_w"], (2, 3, 1, 0)).reshape(9, 32)
    cw = {
        "w1": jnp.pad(w1k, ((0, 0), (0, CP - 32))).astype(bf16),
        "b1": bias(params["conv1_b"], CP),
        "w2": conv_w(params["conv2_w"]), "b2": bias(params["conv2_b"], CP),
        "w3": conv_w(params["conv3_w"]), "b3": bias(params["conv3_b"], CP),
        "w4": conv_w(params["conv4_w"]), "b4": bias(params["conv4_b"], CP),
    }

    # fc1: permute rows from PyTorch NCHW flatten order (c*16 + h*4 + w) to the
    # kernel's padded NHWC feature order ((h*4 + w)*128 + c); pad to lanes.
    f1 = params["fc1_w"].reshape(64, 4, 4, 200)              # (c, h, w, out)
    f1 = jnp.transpose(f1, (1, 2, 0, 3))                     # (h, w, c, out)
    f1 = jnp.pad(f1, ((0, 0), (0, 0), (0, CP - 64), (0, FC_H - 200)))
    fw = {
        "w1": f1.reshape(16 * CP, FC_H).astype(bf16),
        "b1": bias(params["fc1_b"], FC_H),
        "w2": jnp.pad(params["fc2_w"], ((0, FC_H - 200), (0, FC_H - 200))).astype(bf16),
        "b2": bias(params["fc2_b"], FC_H),
        "w3": jnp.pad(params["fc3_w"], ((0, FC_H - 200), (0, FC_OUT - 10))).astype(bf16),
        "b3": bias(params["fc3_b"], FC_OUT),
    }
    return cw, fw


# ----------------------------------------------------------------------------
# Forward pass
# ----------------------------------------------------------------------------
def small_cnn_forward(params, x_nchw):
    """SmallCNN forward.  x_nchw: (N, 1, 28, 28) float32 -> logits (N, 10)."""
    n = x_nchw.shape[0]
    cw, fw = _prep_weights(params)
    x = x_nchw[:, 0, :, :].astype(jnp.float32)               # (N, 28, 28), Cin=1
    # conv1 im2col in the wrapper (Cin=1 -> 9 tiny columns, ~12 KiB/image bf16);
    # conv2-4 build their im2col in-kernel via shifted accumulation.
    cols = [x[:, dy:dy + 26, dx:dx + 26] for dy in range(3) for dx in range(3)]
    patches = jnp.stack(cols, axis=-1).reshape(n, 26 * 26, 9).astype(jnp.bfloat16)
    feats = _features(patches, cw)                           # (N, 16, 128) f32
    feats2d = feats.reshape(n, 16 * CP)                      # contiguous -> free
    return _fc_head(feats2d, fw)                             # (N, 10)


def init_params(key):
    """Deterministic synthetic parameters with SmallCNN shapes."""
    def conv_w(k, cout, cin):
        fan_in = cin * 9
        return jax.random.normal(k, (cout, cin, 3, 3), jnp.float32) * (2.0 / fan_in) ** 0.5

    def lin_w(k, cin, cout):
        return jax.random.normal(k, (cin, cout), jnp.float32) * (2.0 / cin) ** 0.5

    ks = jax.random.split(key, 7)
    return {
        "conv1_w": conv_w(ks[0], 32, 1),  "conv1_b": jnp.zeros((32,), jnp.float32),
        "conv2_w": conv_w(ks[1], 32, 32), "conv2_b": jnp.zeros((32,), jnp.float32),
        "conv3_w": conv_w(ks[2], 64, 32), "conv3_b": jnp.zeros((64,), jnp.float32),
        "conv4_w": conv_w(ks[3], 64, 64), "conv4_b": jnp.zeros((64,), jnp.float32),
        "fc1_w": lin_w(ks[4], 64 * 4 * 4, 200), "fc1_b": jnp.zeros((200,), jnp.float32),
        "fc2_w": lin_w(ks[5], 200, 200),        "fc2_b": jnp.zeros((200,), jnp.float32),
        "fc3_w": lin_w(ks[6], 200, 10),         "fc3_b": jnp.zeros((10,), jnp.float32),
    }


def custom_model_forward(name, params, x):
    if name == "mnist":
        return small_cnn_forward(params, x)
    # TODO(synk): resnet18 + replaced fc head (cifar10/cifar100 branch) not implemented.
    raise NotImplementedError("only the 'mnist' (SmallCNN) branch is implemented")


# ----------------------------------------------------------------------------
if __name__ == "__main__":
    key = jax.random.PRNGKey(0)
    pkey, xkey = jax.random.split(key)
    params = init_params(pkey)
    # MNIST-shaped input (required so the flatten produces 64*4*4 features).
    x = jax.random.normal(xkey, (2, 1, 28, 28), jnp.float32)

    fwd = jax.jit(functools.partial(custom_model_forward, "mnist"))
    logits = fwd(params, x)
    jax.block_until_ready(logits)
    assert logits.shape == (2, 10)
    print("KERNEL_OK")
</pallas_src>

<mosaic_0001>
module attributes {stable_mosaic.version = 11 : i64} {
  func.func @_features_kernel(%arg0: i32, %arg1: memref<1x676x9xbf16, #tpu.memory_space<vmem>>, %arg2: memref<9x128xbf16, #tpu.memory_space<vmem>>, %arg3: memref<1x128xf32, #tpu.memory_space<vmem>>, %arg4: memref<9x128x128xbf16, #tpu.memory_space<vmem>>, %arg5: memref<1x128xf32, #tpu.memory_space<vmem>>, %arg6: memref<9x128x128xbf16, #tpu.memory_space<vmem>>, %arg7: memref<1x128xf32, #tpu.memory_space<vmem>>, %arg8: memref<9x128x128xbf16, #tpu.memory_space<vmem>>, %arg9: memref<1x128xf32, #tpu.memory_space<vmem>>, %arg10: memref<1x16x128xf32, #tpu.memory_space<vmem>>, %arg11: memref<676x128xf32, #tpu.memory_space<vmem>>, %arg12: memref<576x128xf32, #tpu.memory_space<vmem>>, %arg13: memref<144x128xf32, #tpu.memory_space<vmem>>, %arg14: memref<100x128xf32, #tpu.memory_space<vmem>>, %arg15: memref<64x128xf32, #tpu.memory_space<vmem>>) attributes {dimension_semantics = [#tpu.dimension_semantics<parallel>], iteration_bounds = array<i64: 2>, scalar_prefetch = 0 : i64, scratch_operands = 5 : i64, tpu.core_type = #tpu.core_type<tc>, window_params = [{transform_indices = @transform_0, window_bounds = array<i64: 1, 676, 9>}, {pipeline_mode = #tpu.pipeline_mode<synchronous>, transform_indices = @transform_1, window_bounds = array<i64: 9, 128>}, {pipeline_mode = #tpu.pipeline_mode<synchronous>, transform_indices = @transform_2, window_bounds = array<i64: 1, 128>}, {pipeline_mode = #tpu.pipeline_mode<synchronous>, transform_indices = @transform_3, window_bounds = array<i64: 9, 128, 128>}, {pipeline_mode = #tpu.pipeline_mode<synchronous>, transform_indices = @transform_4, window_bounds = array<i64: 1, 128>}, {pipeline_mode = #tpu.pipeline_mode<synchronous>, transform_indices = @transform_5, window_bounds = array<i64: 9, 128, 128>}, {pipeline_mode = #tpu.pipeline_mode<synchronous>, transform_indices = @transform_6, window_bounds = array<i64: 1, 128>}, {pipeline_mode = #tpu.pipeline_mode<synchronous>, transform_indices = @transform_7, window_bounds = array<i64: 9, 128, 128>}, {pipeline_mode = #tpu.pipeline_mode<synchronous>, transform_indices = @transform_8, window_bounds = array<i64: 1, 128>}, {transform_indices = @transform_9, window_bounds = array<i64: 1, 16, 128>}]} {
    %c0 = arith.constant 0 : index
    %c0_0 = arith.constant 0 : index
    %c0_1 = arith.constant 0 : index
    %0 = vector.load %arg1[%c0, %c0_0, %c0_1] : memref<1x676x9xbf16, #tpu.memory_space<vmem>>, vector<1x676x9xbf16>
    %1 = vector.shape_cast %0 : vector<1x676x9xbf16> to vector<676x9xbf16>
    %c0_2 = arith.constant 0 : index
    %c0_3 = arith.constant 0 : index
    %2 = vector.load %arg2[%c0_2, %c0_3] : memref<9x128xbf16, #tpu.memory_space<vmem>>, vector<9x128xbf16>
    %cst = arith.constant dense<0.000000e+00> : vector<676x128xf32>
    %3 = tpu.matmul %1, %2, %cst {dimension_numbers = #tpu.dot_dimension_numbers<[1], [0], [0], [1], [0, 0, 1, 1], [], []>} : vector<676x9xbf16>, vector<9x128xbf16>, vector<676x128xf32> -> vector<676x128xf32>
    %c0_4 = arith.constant 0 : index
    %c0_5 = arith.constant 0 : index
    %4 = vector.load %arg3[%c0_4, %c0_5] : memref<1x128xf32, #tpu.memory_space<vmem>>, vector<1x128xf32>
    %5 = vector.broadcast %4 : vector<1x128xf32> to vector<676x128xf32>
    %6 = arith.addf %3, %5 : vector<676x128xf32>
    %cst_6 = arith.constant 0.000000e+00 : f32
    %7 = vector.broadcast %cst_6 : f32 to vector<676x128xf32>
    %8 = arith.maximumf %6, %7 : vector<676x128xf32>
    %c0_7 = arith.constant 0 : index
    %c0_8 = arith.constant 0 : index
    %9 = vector.load %arg11[%c0_7, %c0_8] : memref<676x128xf32, #tpu.memory_space<vmem>>, vector<676x128xf32>
    tpu.vector_store %arg11[%c0_7, %c0_8], %8 {strides = array<i32>} : memref<676x128xf32, #tpu.memory_space<vmem>>, vector<676x128xf32>,
    %c0_9 = arith.constant 0 : index
    %c0_10 = arith.constant 0 : index
    %10 = vector.load %arg5[%c0_9, %c0_10] : memref<1x128xf32, #tpu.memory_space<vmem>>, vector<1x128xf32>
    %c0_i32 = arith.constant 0 : i32
    %c24_i32 = arith.constant 24 : i32
    %11 = arith.addi %c0_i32, %c24_i32 : i32
    %c1_i32 = arith.constant 1 : i32
    scf.for %arg16 = %c0_i32 to %11 step %c1_i32  : i32 {
      %cst_41 = arith.constant 0.000000e+00 : f32
      %54 = vector.broadcast %cst_41 : f32 to vector<24x128xf32>
      %c0_i32_42 = arith.constant 0 : i32
      %55 = arith.addi %arg16, %c0_i32_42 : i32
      %c26_i32 = arith.constant 26 : i32
      %56 = arith.muli %55, %c26_i32 : i32
      %c0_i32_43 = arith.constant 0 : i32
      %57 = arith.addi %56, %c0_i32_43 : i32
      %58 = arith.index_cast %57 : i32 to index
      %c0_44 = arith.constant 0 : index
      %59 = vector.load %arg11[%58, %c0_44] : memref<676x128xf32, #tpu.memory_space<vmem>>, vector<24x128xf32>
      %60 = arith.truncf %59 : vector<24x128xf32> to vector<24x128xbf16>
      %c0_45 = arith.constant 0 : index
      %c0_46 = arith.constant 0 : index
      %c0_47 = arith.constant 0 : index
      %61 = vector.load %arg4[%c0_45, %c0_46, %c0_47] : memref<9x128x128xbf16, #tpu.memory_space<vmem>>, vector<1x128x128xbf16>
      %62 = vector.shape_cast %61 : vector<1x128x128xbf16> to vector<128x128xbf16>
      %cst_48 = arith.constant dense<0.000000e+00> : vector<24x128xf32>
      %63 = tpu.matmul %60, %62, %cst_48 {dimension_numbers = #tpu.dot_dimension_numbers<[1], [0], [0], [1], [0, 0, 1, 1], [], []>} : vector<24x128xbf16>, vector<128x128xbf16>, vector<24x128xf32> -> vector<24x128xf32>
      %64 = arith.addf %54, %63 : vector<24x128xf32>
      %c0_i32_49 = arith.constant 0 : i32
      %65 = arith.addi %arg16, %c0_i32_49 : i32
      %c26_i32_50 = arith.constant 26 : i32
      %66 = arith.muli %65, %c26_i32_50 : i32
      %c1_i32_51 = arith.constant 1 : i32
      %67 = arith.addi %66, %c1_i32_51 : i32
      %68 = arith.index_cast %67 : i32 to index
      %c0_52 = arith.constant 0 : index
      %69 = vector.load %arg11[%68, %c0_52] : memref<676x128xf32, #tpu.memory_space<vmem>>, vector<24x128xf32>
      %70 = arith.truncf %69 : vector<24x128xf32> to vector<24x128xbf16>
      %c1 = arith.constant 1 : index
      %c0_53 = arith.constant 0 : index
      %c0_54 = arith.constant 0 : index
      %71 = vector.load %arg4[%c1, %c0_53, %c0_54] : memref<9x128x128xbf16, #tpu.memory_space<vmem>>, vector<1x128x128xbf16>
      %72 = vector.shape_cast %71 : vector<1x128x128xbf16> to vector<128x128xbf16>
      %cst_55 = arith.constant dense<0.000000e+00> : vector<24x128xf32>
      %73 = tpu.matmul %70, %72, %cst_55 {dimension_numbers = #tpu.dot_dimension_numbers<[1], [0], [0], [1], [0, 0, 1, 1], [], []>} : vector<24x128xbf16>, vector<128x128xbf16>, vector<24x128xf32> -> vector<24x128xf32>
      %74 = arith.addf %64, %73 : vector<24x128xf32>
      %c0_i32_56 = arith.constant 0 : i32
      %75 = arith.addi %arg16, %c0_i32_56 : i32
      %c26_i32_57 = arith.constant 26 : i32
      %76 = arith.muli %75, %c26_i32_57 : i32
      %c2_i32_58 = arith.constant 2 : i32
      %77 = arith.addi %76, %c2_i32_58 : i32
      %78 = arith.index_cast %77 : i32 to index
      %c0_59 = arith.constant 0 : index
      %79 = vector.load %arg11[%78, %c0_59] : memref<676x128xf32, #tpu.memory_space<vmem>>, vector<24x128xf32>
      %80 = arith.truncf %79 : vector<24x128xf32> to vector<24x128xbf16>
      %c2 = arith.constant 2 : index
      %c0_60 = arith.constant 0 : index
      %c0_61 = arith.constant 0 : index
      %81 = vector.load %arg4[%c2, %c0_60, %c0_61] : memref<9x128x128xbf16, #tpu.memory_space<vmem>>, vector<1x128x128xbf16>
      %82 = vector.shape_cast %81 : vector<1x128x128xbf16> to vector<128x128xbf16>
      %cst_62 = arith.constant dense<0.000000e+00> : vector<24x128xf32>
      %83 = tpu.matmul %80, %82, %cst_62 {dimension_numbers = #tpu.dot_dimension_numbers<[1], [0], [0], [1], [0, 0, 1, 1], [], []>} : vector<24x128xbf16>, vector<128x128xbf16>, vector<24x128xf32> -> vector<24x128xf32>
      %84 = arith.addf %74, %83 : vector<24x128xf32>
      %c1_i32_63 = arith.constant 1 : i32
      %85 = arith.addi %arg16, %c1_i32_63 : i32
      %c26_i32_64 = arith.constant 26 : i32
      %86 = arith.muli %85, %c26_i32_64 : i32
      %c0_i32_65 = arith.constant 0 : i32
      %87 = arith.addi %86, %c0_i32_65 : i32
      %88 = arith.index_cast %87 : i32 to index
      %c0_66 = arith.constant 0 : index
      %89 = vector.load %arg11[%88, %c0_66] : memref<676x128xf32, #tpu.memory_space<vmem>>, vector<24x128xf32>
      %90 = arith.truncf %89 : vector<24x128xf32> to vector<24x128xbf16>
      %c3 = arith.constant 3 : index
      %c0_67 = arith.constant 0 : index
      %c0_68 = arith.constant 0 : index
      %91 = vector.load %arg4[%c3, %c0_67, %c0_68] : memref<9x128x128xbf16, #tpu.memory_space<vmem>>, vector<1x128x128xbf16>
      %92 = vector.shape_cast %91 : vector<1x128x128xbf16> to vector<128x128xbf16>
      %cst_69 = arith.constant dense<0.000000e+00> : vector<24x128xf32>
      %93 = tpu.matmul %90, %92, %cst_69 {dimension_numbers = #tpu.dot_dimension_numbers<[1], [0], [0], [1], [0, 0, 1, 1], [], []>} : vector<24x128xbf16>, vector<128x128xbf16>, vector<24x128xf32> -> vector<24x128xf32>
      %94 = arith.addf %84, %93 : vector<24x128xf32>
      %c1_i32_70 = arith.constant 1 : i32
      %95 = arith.addi %arg16, %c1_i32_70 : i32
      %c26_i32_71 = arith.constant 26 : i32
      %96 = arith.muli %95, %c26_i32_71 : i32
      %c1_i32_72 = arith.constant 1 : i32
      %97 = arith.addi %96, %c1_i32_72 : i32
      %98 = arith.index_cast %97 : i32 to index
      %c0_73 = arith.constant 0 : index
      %99 = vector.load %arg11[%98, %c0_73] : memref<676x128xf32, #tpu.memory_space<vmem>>, vector<24x128xf32>
      %100 = arith.truncf %99 : vector<24x128xf32> to vector<24x128xbf16>
      %c4 = arith.constant 4 : index
      %c0_74 = arith.constant 0 : index
      %c0_75 = arith.constant 0 : index
      %101 = vector.load %arg4[%c4, %c0_74, %c0_75] : memref<9x128x128xbf16, #tpu.memory_space<vmem>>, vector<1x128x128xbf16>
      %102 = vector.shape_cast %101 : vector<1x128x128xbf16> to vector<128x128xbf16>
      %cst_76 = arith.constant dense<0.000000e+00> : vector<24x128xf32>
      %103 = tpu.matmul %100, %102, %cst_76 {dimension_numbers = #tpu.dot_dimension_numbers<[1], [0], [0], [1], [0, 0, 1, 1], [], []>} : vector<24x128xbf16>, vector<128x128xbf16>, vector<24x128xf32> -> vector<24x128xf32>
      %104 = arith.addf %94, %103 : vector<24x128xf32>
      %c1_i32_77 = arith.constant 1 : i32
      %105 = arith.addi %arg16, %c1_i32_77 : i32
      %c26_i32_78 = arith.constant 26 : i32
      %106 = arith.muli %105, %c26_i32_78 : i32
      %c2_i32_79 = arith.constant 2 : i32
      %107 = arith.addi %106, %c2_i32_79 : i32
      %108 = arith.index_cast %107 : i32 to index
      %c0_80 = arith.constant 0 : index
      %109 = vector.load %arg11[%108, %c0_80] : memref<676x128xf32, #tpu.memory_space<vmem>>, vector<24x128xf32>
      %110 = arith.truncf %109 : vector<24x128xf32> to vector<24x128xbf16>
      %c5 = arith.constant 5 : index
      %c0_81 = arith.constant 0 : index
      %c0_82 = arith.constant 0 : index
      %111 = vector.load %arg4[%c5, %c0_81, %c0_82] : memref<9x128x128xbf16, #tpu.memory_space<vmem>>, vector<1x128x128xbf16>
      %112 = vector.shape_cast %111 : vector<1x128x128xbf16> to vector<128x128xbf16>
      %cst_83 = arith.constant dense<0.000000e+00> : vector<24x128xf32>
      %113 = tpu.matmul %110, %112, %cst_83 {dimension_numbers = #tpu.dot_dimension_numbers<[1], [0], [0], [1], [0, 0, 1, 1], [], []>} : vector<24x128xbf16>, vector<128x128xbf16>, vector<24x128xf32> -> vector<24x128xf32>
      %114 = arith.addf %104, %113 : vector<24x128xf32>
      %c2_i32_84 = arith.constant 2 : i32
      %115 = arith.addi %arg16, %c2_i32_84 : i32
      %c26_i32_85 = arith.constant 26 : i32
      %116 = arith.muli %115, %c26_i32_85 : i32
      %c0_i32_86 = arith.constant 0 : i32
      %117 = arith.addi %116, %c0_i32_86 : i32
      %118 = arith.index_cast %117 : i32 to index
      %c0_87 = arith.constant 0 : index
      %119 = vector.load %arg11[%118, %c0_87] : memref<676x128xf32, #tpu.memory_space<vmem>>, vector<24x128xf32>
      %120 = arith.truncf %119 : vector<24x128xf32> to vector<24x128xbf16>
      %c6 = arith.constant 6 : index
      %c0_88 = arith.constant 0 : index
      %c0_89 = arith.constant 0 : index
      %121 = vector.load %arg4[%c6, %c0_88, %c0_89] : memref<9x128x128xbf16, #tpu.memory_space<vmem>>, vector<1x128x128xbf16>
      %122 = vector.shape_cast %121 : vector<1x128x128xbf16> to vector<128x128xbf16>
      %cst_90 = arith.constant dense<0.000000e+00> : vector<24x128xf32>
      %123 = tpu.matmul %120, %122, %cst_90 {dimension_numbers = #tpu.dot_dimension_numbers<[1], [0], [0], [1], [0, 0, 1, 1], [], []>} : vector<24x128xbf16>, vector<128x128xbf16>, vector<24x128xf32> -> vector<24x128xf32>
      %124 = arith.addf %114, %123 : vector<24x128xf32>
      %c2_i32_91 = arith.constant 2 : i32
      %125 = arith.addi %arg16, %c2_i32_91 : i32
      %c26_i32_92 = arith.constant 26 : i32
      %126 = arith.muli %125, %c26_i32_92 : i32
      %c1_i32_93 = arith.constant 1 : i32
      %127 = arith.addi %126, %c1_i32_93 : i32
      %128 = arith.index_cast %127 : i32 to index
      %c0_94 = arith.constant 0 : index
      %129 = vector.load %arg11[%128, %c0_94] : memref<676x128xf32, #tpu.memory_space<vmem>>, vector<24x128xf32>
      %130 = arith.truncf %129 : vector<24x128xf32> to vector<24x128xbf16>
      %c7 = arith.constant 7 : index
      %c0_95 = arith.constant 0 : index
      %c0_96 = arith.constant 0 : index
      %131 = vector.load %arg4[%c7, %c0_95, %c0_96] : memref<9x128x128xbf16, #tpu.memory_space<vmem>>, vector<1x128x128xbf16>
      %132 = vector.shape_cast %131 : vector<1x128x128xbf16> to vector<128x128xbf16>
      %cst_97 = arith.constant dense<0.000000e+00> : vector<24x128xf32>
      %133 = tpu.matmul %130, %132, %cst_97 {dimension_numbers = #tpu.dot_dimension_numbers<[1], [0], [0], [1], [0, 0, 1, 1], [], []>} : vector<24x128xbf16>, vector<128x128xbf16>, vector<24x128xf32> -> vector<24x128xf32>
      %134 = arith.addf %124, %133 : vector<24x128xf32>
      %c2_i32_98 = arith.constant 2 : i32
      %135 = arith.addi %arg16, %c2_i32_98 : i32
      %c26_i32_99 = arith.constant 26 : i32
      %136 = arith.muli %135, %c26_i32_99 : i32
      %c2_i32_100 = arith.constant 2 : i32
      %137 = arith.addi %136, %c2_i32_100 : i32
      %138 = arith.index_cast %137 : i32 to index
      %c0_101 = arith.constant 0 : index
      %139 = vector.load %arg11[%138, %c0_101] : memref<676x128xf32, #tpu.memory_space<vmem>>, vector<24x128xf32>
      %140 = arith.truncf %139 : vector<24x128xf32> to vector<24x128xbf16>
      %c8 = arith.constant 8 : index
      %c0_102 = arith.constant 0 : index
      %c0_103 = arith.constant 0 : index
      %141 = vector.load %arg4[%c8, %c0_102, %c0_103] : memref<9x128x128xbf16, #tpu.memory_space<vmem>>, vector<1x128x128xbf16>
      %142 = vector.shape_cast %141 : vector<1x128x128xbf16> to vector<128x128xbf16>
      %cst_104 = arith.constant dense<0.000000e+00> : vector<24x128xf32>
      %143 = tpu.matmul %140, %142, %cst_104 {dimension_numbers = #tpu.dot_dimension_numbers<[1], [0], [0], [1], [0, 0, 1, 1], [], []>} : vector<24x128xbf16>, vector<128x128xbf16>, vector<24x128xf32> -> vector<24x128xf32>
      %144 = arith.addf %134, %143 : vector<24x128xf32>
      %145 = vector.broadcast %10 : vector<1x128xf32> to vector<24x128xf32>
      %146 = arith.addf %144, %145 : vector<24x128xf32>
      %cst_105 = arith.constant 0.000000e+00 : f32
      %147 = vector.broadcast %cst_105 : f32 to vector<24x128xf32>
      %148 = arith.maximumf %146, %147 : vector<24x128xf32>
      %c24_i32_106 = arith.constant 24 : i32
      %149 = arith.muli %arg16, %c24_i32_106 : i32
      %150 = arith.index_cast %149 : i32 to index
      %c0_107 = arith.constant 0 : index
      %151 = vector.load %arg12[%150, %c0_107] : memref<576x128xf32, #tpu.memory_space<vmem>>, vector<24x128xf32>
      tpu.vector_store %arg12[%150, %c0_107], %148 {strides = array<i32>} : memref<576x128xf32, #tpu.memory_space<vmem>>, vector<24x128xf32>,
    }
    %c24_i32_11 = arith.constant 24 : i32
    %12 = tpu.iota {dimensions = array<i32: 0>} : vector<12x24xi32>
    %13 = tpu.iota {dimensions = array<i32: 1>} : vector<12x24xi32>
    %c2_i32 = arith.constant 2 : i32
    %14 = vector.broadcast %c2_i32 : i32 to vector<12x24xi32>
    %15 = arith.muli %14, %12 : vector<12x24xi32>
    %16 = arith.cmpi eq, %13, %15 : vector<12x24xi32>
    %cst_12 = arith.constant 1.000000e+00 : f32
    %cst_13 = arith.constant 0.000000e+00 : f32
    %17 = vector.broadcast %cst_12 : f32 to vector<12x24xf32>
    %18 = vector.broadcast %cst_13 : f32 to vector<12x24xf32>
    %19 = arith.select %16, %17, %18 : vector<12x24xi1>, vector<12x24xf32>
    %20 = arith.truncf %19 : vector<12x24xf32> to vector<12x24xbf16>
    %c2_i32_14 = arith.constant 2 : i32
    %21 = vector.broadcast %c2_i32_14 : i32 to vector<12x24xi32>
    %22 = arith.muli %21, %12 : vector<12x24xi32>
    %c1_i32_15 = arith.constant 1 : i32
    %23 = vector.broadcast %c1_i32_15 : i32 to vector<12x24xi32>
    %24 = arith.addi %22, %23 : vector<12x24xi32>
    %25 = arith.cmpi eq, %13, %24 : vector<12x24xi32>
    %cst_16 = arith.constant 1.000000e+00 : f32
    %cst_17 = arith.constant 0.000000e+00 : f32
    %26 = vector.broadcast %cst_16 : f32 to vector<12x24xf32>
    %27 = vector.broadcast %cst_17 : f32 to vector<12x24xf32>
    %28 = arith.select %25, %26, %27 : vector<12x24xi1>, vector<12x24xf32>
    %29 = arith.truncf %28 : vector<12x24xf32> to vector<12x24xbf16>
    %c0_i32_18 = arith.constant 0 : i32
    %c12_i32 = arith.constant 12 : i32
    %30 = arith.addi %c0_i32_18, %c12_i32 : i32
    %c1_i32_19 = arith.constant 1 : i32
    scf.for %arg16 = %c0_i32_18 to %30 step %c1_i32_19  : i32 {
      %c2_i32_41 = arith.constant 2 : i32
      %54 = arith.muli %c2_i32_41, %arg16 : i32
      %c24_i32_42 = arith.constant 24 : i32
      %55 = arith.muli %54, %c24_i32_42 : i32
      %56 = arith.index_cast %55 : i32 to index
      %c0_43 = arith.constant 0 : index
      %57 = vector.load %arg12[%56, %c0_43] : memref<576x128xf32, #tpu.memory_space<vmem>>, vector<24x128xf32>
      %c2_i32_44 = arith.constant 2 : i32
      %58 = arith.muli %c2_i32_44, %arg16 : i32
      %c1_i32_45 = arith.constant 1 : i32
      %59 = arith.addi %58, %c1_i32_45 : i32
      %c24_i32_46 = arith.constant 24 : i32
      %60 = arith.muli %59, %c24_i32_46 : i32
      %61 = arith.index_cast %60 : i32 to index
      %c0_47 = arith.constant 0 : index
      %62 = vector.load %arg12[%61, %c0_47] : memref<576x128xf32, #tpu.memory_space<vmem>>, vector<24x128xf32>
      %63 = arith.maximumf %57, %62 : vector<24x128xf32>
      %64 = arith.truncf %63 : vector<24x128xf32> to vector<24x128xbf16>
      %cst_48 = arith.constant dense<0.000000e+00> : vector<12x128xf32>
      %65 = tpu.matmul %20, %64, %cst_48 {dimension_numbers = #tpu.dot_dimension_numbers<[1], [0], [0], [1], [0, 0, 1, 1], [], []>} : vector<12x24xbf16>, vector<24x128xbf16>, vector<12x128xf32> -> vector<12x128xf32>
      %cst_49 = arith.constant dense<0.000000e+00> : vector<12x128xf32>
      %66 = tpu.matmul %29, %64, %cst_49 {dimension_numbers = #tpu.dot_dimension_numbers<[1], [0], [0], [1], [0, 0, 1, 1], [], []>} : vector<12x24xbf16>, vector<24x128xbf16>, vector<12x128xf32> -> vector<12x128xf32>
      %67 = arith.maximumf %65, %66 : vector<12x128xf32>
      %c12_i32_50 = arith.constant 12 : i32
      %68 = arith.muli %arg16, %c12_i32_50 : i32
      %69 = arith.index_cast %68 : i32 to index
      %c0_51 = arith.constant 0 : index
      %70 = vector.load %arg13[%69, %c0_51] : memref<144x128xf32, #tpu.memory_space<vmem>>, vector<12x128xf32>
      tpu.vector_store %arg13[%69, %c0_51], %67 {strides = array<i32>} : memref<144x128xf32, #tpu.memory_space<vmem>>, vector<12x128xf32>,
    }
    %c12_i32_20 = arith.constant 12 : i32
    %c0_21 = arith.constant 0 : index
    %c0_22 = arith.constant 0 : index
    %31 = vector.load %arg7[%c0_21, %c0_22] : memref<1x128xf32, #tpu.memory_space<vmem>>, vector<1x128xf32>
    %c0_i32_23 = arith.constant 0 : i32
    %c10_i32 = arith.constant 10 : i32
    %32 = arith.addi %c0_i32_23, %c10_i32 : i32
    %c1_i32_24 = arith.constant 1 : i32
    scf.for %arg16 = %c0_i32_23 to %32 step %c1_i32_24  : i32 {
      %cst_41 = arith.constant 0.000000e+00 : f32
      %54 = vector.broadcast %cst_41 : f32 to vector<10x128xf32>
      %c0_i32_42 = arith.constant 0 : i32
      %55 = arith.addi %arg16, %c0_i32_42 : i32
      %c12_i32_43 = arith.constant 12 : i32
      %56 = arith.muli %55, %c12_i32_43 : i32
      %c0_i32_44 = arith.constant 0 : i32
      %57 = arith.addi %56, %c0_i32_44 : i32
      %58 = arith.index_cast %57 : i32 to index
      %c0_45 = arith.constant 0 : index
      %59 = vector.load %arg13[%58, %c0_45] : memref<144x128xf32, #tpu.memory_space<vmem>>, vector<10x128xf32>
      %60 = arith.truncf %59 : vector<10x128xf32> to vector<10x128xbf16>
      %c0_46 = arith.constant 0 : index
      %c0_47 = arith.constant 0 : index
      %c0_48 = arith.constant 0 : index
      %61 = vector.load %arg6[%c0_46, %c0_47, %c0_48] : memref<9x128x128xbf16, #tpu.memory_space<vmem>>, vector<1x128x128xbf16>
      %62 = vector.shape_cast %61 : vector<1x128x128xbf16> to vector<128x128xbf16>
      %cst_49 = arith.constant dense<0.000000e+00> : vector<10x128xf32>
      %63 = tpu.matmul %60, %62, %cst_49 {dimension_numbers = #tpu.dot_dimension_numbers<[1], [0], [0], [1], [0, 0, 1, 1], [], []>} : vector<10x128xbf16>, vector<128x128xbf16>, vector<10x128xf32> -> vector<10x128xf32>
      %64 = arith.addf %54, %63 : vector<10x128xf32>
      %c0_i32_50 = arith.constant 0 : i32
      %65 = arith.addi %arg16, %c0_i32_50 : i32
      %c12_i32_51 = arith.constant 12 : i32
      %66 = arith.muli %65, %c12_i32_51 : i32
      %c1_i32_52 = arith.constant 1 : i32
      %67 = arith.addi %66, %c1_i32_52 : i32
      %68 = arith.index_cast %67 : i32 to index
      %c0_53 = arith.constant 0 : index
      %69 = vector.load %arg13[%68, %c0_53] : memref<144x128xf32, #tpu.memory_space<vmem>>, vector<10x128xf32>
      %70 = arith.truncf %69 : vector<10x128xf32> to vector<10x128xbf16>
      %c1 = arith.constant 1 : index
      %c0_54 = arith.constant 0 : index
      %c0_55 = arith.constant 0 : index
      %71 = vector.load %arg6[%c1, %c0_54, %c0_55] : memref<9x128x128xbf16, #tpu.memory_space<vmem>>, vector<1x128x128xbf16>
      %72 = vector.shape_cast %71 : vector<1x128x128xbf16> to vector<128x128xbf16>
      %cst_56 = arith.constant dense<0.000000e+00> : vector<10x128xf32>
      %73 = tpu.matmul %70, %72, %cst_56 {dimension_numbers = #tpu.dot_dimension_numbers<[1], [0], [0], [1], [0, 0, 1, 1], [], []>} : vector<10x128xbf16>, vector<128x128xbf16>, vector<10x128xf32> -> vector<10x128xf32>
      %74 = arith.addf %64, %73 : vector<10x128xf32>
      %c0_i32_57 = arith.constant 0 : i32
      %75 = arith.addi %arg16, %c0_i32_57 : i32
      %c12_i32_58 = arith.constant 12 : i32
      %76 = arith.muli %75, %c12_i32_58 : i32
      %c2_i32_59 = arith.constant 2 : i32
      %77 = arith.addi %76, %c2_i32_59 : i32
      %78 = arith.index_cast %77 : i32 to index
      %c0_60 = arith.constant 0 : index
      %79 = vector.load %arg13[%78, %c0_60] : memref<144x128xf32, #tpu.memory_space<vmem>>, vector<10x128xf32>
      %80 = arith.truncf %79 : vector<10x128xf32> to vector<10x128xbf16>
      %c2 = arith.constant 2 : index
      %c0_61 = arith.constant 0 : index
      %c0_62 = arith.constant 0 : index
      %81 = vector.load %arg6[%c2, %c0_61, %c0_62] : memref<9x128x128xbf16, #tpu.memory_space<vmem>>, vector<1x128x128xbf16>
      %82 = vector.shape_cast %81 : vector<1x128x128xbf16> to vector<128x128xbf16>
      %cst_63 = arith.constant dense<0.000000e+00> : vector<10x128xf32>
      %83 = tpu.matmul %80, %82, %cst_63 {dimension_numbers = #tpu.dot_dimension_numbers<[1], [0], [0], [1], [0, 0, 1, 1], [], []>} : vector<10x128xbf16>, vector<128x128xbf16>, vector<10x128xf32> -> vector<10x128xf32>
      %84 = arith.addf %74, %83 : vector<10x128xf32>
      %c1_i32_64 = arith.constant 1 : i32
      %85 = arith.addi %arg16, %c1_i32_64 : i32
      %c12_i32_65 = arith.constant 12 : i32
      %86 = arith.muli %85, %c12_i32_65 : i32
      %c0_i32_66 = arith.constant 0 : i32
      %87 = arith.addi %86, %c0_i32_66 : i32
      %88 = arith.index_cast %87 : i32 to index
      %c0_67 = arith.constant 0 : index
      %89 = vector.load %arg13[%88, %c0_67] : memref<144x128xf32, #tpu.memory_space<vmem>>, vector<10x128xf32>
      %90 = arith.truncf %89 : vector<10x128xf32> to vector<10x128xbf16>
      %c3 = arith.constant 3 : index
      %c0_68 = arith.constant 0 : index
      %c0_69 = arith.constant 0 : index
      %91 = vector.load %arg6[%c3, %c0_68, %c0_69] : memref<9x128x128xbf16, #tpu.memory_space<vmem>>, vector<1x128x128xbf16>
      %92 = vector.shape_cast %91 : vector<1x128x128xbf16> to vector<128x128xbf16>
      %cst_70 = arith.constant dense<0.000000e+00> : vector<10x128xf32>
      %93 = tpu.matmul %90, %92, %cst_70 {dimension_numbers = #tpu.dot_dimension_numbers<[1], [0], [0], [1], [0, 0, 1, 1], [], []>} : vector<10x128xbf16>, vector<128x128xbf16>, vector<10x128xf32> -> vector<10x128xf32>
      %94 = arith.addf %84, %93 : vector<10x128xf32>
      %c1_i32_71 = arith.constant 1 : i32
      %95 = arith.addi %arg16, %c1_i32_71 : i32
      %c12_i32_72 = arith.constant 12 : i32
      %96 = arith.muli %95, %c12_i32_72 : i32
      %c1_i32_73 = arith.constant 1 : i32
      %97 = arith.addi %96, %c1_i32_73 : i32
      %98 = arith.index_cast %97 : i32 to index
      %c0_74 = arith.constant 0 : index
      %99 = vector.load %arg13[%98, %c0_74] : memref<144x128xf32, #tpu.memory_space<vmem>>, vector<10x128xf32>
      %100 = arith.truncf %99 : vector<10x128xf32> to vector<10x128xbf16>
      %c4 = arith.constant 4 : index
      %c0_75 = arith.constant 0 : index
      %c0_76 = arith.constant 0 : index
      %101 = vector.load %arg6[%c4, %c0_75, %c0_76] : memref<9x128x128xbf16, #tpu.memory_space<vmem>>, vector<1x128x128xbf16>
      %102 = vector.shape_cast %101 : vector<1x128x128xbf16> to vector<128x128xbf16>
      %cst_77 = arith.constant dense<0.000000e+00> : vector<10x128xf32>
      %103 = tpu.matmul %100, %102, %cst_77 {dimension_numbers = #tpu.dot_dimension_numbers<[1], [0], [0], [1], [0, 0, 1, 1], [], []>} : vector<10x128xbf16>, vector<128x128xbf16>, vector<10x128xf32> -> vector<10x128xf32>
      %104 = arith.addf %94, %103 : vector<10x128xf32>
      %c1_i32_78 = arith.constant 1 : i32
      %105 = arith.addi %arg16, %c1_i32_78 : i32
      %c12_i32_79 = arith.constant 12 : i32
      %106 = arith.muli %105, %c12_i32_79 : i32
      %c2_i32_80 = arith.constant 2 : i32
      %107 = arith.addi %106, %c2_i32_80 : i32
      %108 = arith.index_cast %107 : i32 to index
      %c0_81 = arith.constant 0 : index
      %109 = vector.load %arg13[%108, %c0_81] : memref<144x128xf32, #tpu.memory_space<vmem>>, vector<10x128xf32>
      %110 = arith.truncf %109 : vector<10x128xf32> to vector<10x128xbf16>
      %c5 = arith.constant 5 : index
      %c0_82 = arith.constant 0 : index
      %c0_83 = arith.constant 0 : index
      %111 = vector.load %arg6[%c5, %c0_82, %c0_83] : memref<9x128x128xbf16, #tpu.memory_space<vmem>>, vector<1x128x128xbf16>
      %112 = vector.shape_cast %111 : vector<1x128x128xbf16> to vector<128x128xbf16>
      %cst_84 = arith.constant dense<0.000000e+00> : vector<10x128xf32>
      %113 = tpu.matmul %110, %112, %cst_84 {dimension_numbers = #tpu.dot_dimension_numbers<[1], [0], [0], [1], [0, 0, 1, 1], [], []>} : vector<10x128xbf16>, vector<128x128xbf16>, vector<10x128xf32> -> vector<10x128xf32>
      %114 = arith.addf %104, %113 : vector<10x128xf32>
      %c2_i32_85 = arith.constant 2 : i32
      %115 = arith.addi %arg16, %c2_i32_85 : i32
      %c12_i32_86 = arith.constant 12 : i32
      %116 = arith.muli %115, %c12_i32_86 : i32
      %c0_i32_87 = arith.constant 0 : i32
      %117 = arith.addi %116, %c0_i32_87 : i32
      %118 = arith.index_cast %117 : i32 to index
      %c0_88 = arith.constant 0 : index
      %119 = vector.load %arg13[%118, %c0_88] : memref<144x128xf32, #tpu.memory_space<vmem>>, vector<10x128xf32>
      %120 = arith.truncf %119 : vector<10x128xf32> to vector<10x128xbf16>
      %c6 = arith.constant 6 : index
      %c0_89 = arith.constant 0 : index
      %c0_90 = arith.constant 0 : index
      %121 = vector.load %arg6[%c6, %c0_89, %c0_90] : memref<9x128x128xbf16, #tpu.memory_space<vmem>>, vector<1x128x128xbf16>
      %122 = vector.shape_cast %121 : vector<1x128x128xbf16> to vector<128x128xbf16>
      %cst_91 = arith.constant dense<0.000000e+00> : vector<10x128xf32>
      %123 = tpu.matmul %120, %122, %cst_91 {dimension_numbers = #tpu.dot_dimension_numbers<[1], [0], [0], [1], [0, 0, 1, 1], [], []>} : vector<10x128xbf16>, vector<128x128xbf16>, vector<10x128xf32> -> vector<10x128xf32>
      %124 = arith.addf %114, %123 : vector<10x128xf32>
      %c2_i32_92 = arith.constant 2 : i32
      %125 = arith.addi %arg16, %c2_i32_92 : i32
      %c12_i32_93 = arith.constant 12 : i32
      %126 = arith.muli %125, %c12_i32_93 : i32
      %c1_i32_94 = arith.constant 1 : i32
      %127 = arith.addi %126, %c1_i32_94 : i32
      %128 = arith.index_cast %127 : i32 to index
      %c0_95 = arith.constant 0 : index
      %129 = vector.load %arg13[%128, %c0_95] : memref<144x128xf32, #tpu.memory_space<vmem>>, vector<10x128xf32>
      %130 = arith.truncf %129 : vector<10x128xf32> to vector<10x128xbf16>
      %c7 = arith.constant 7 : index
      %c0_96 = arith.constant 0 : index
      %c0_97 = arith.constant 0 : index
      %131 = vector.load %arg6[%c7, %c0_96, %c0_97] : memref<9x128x128xbf16, #tpu.memory_space<vmem>>, vector<1x128x128xbf16>
      %132 = vector.shape_cast %131 : vector<1x128x128xbf16> to vector<128x128xbf16>
      %cst_98 = arith.constant dense<0.000000e+00> : vector<10x128xf32>
      %133 = tpu.matmul %130, %132, %cst_98 {dimension_numbers = #tpu.dot_dimension_numbers<[1], [0], [0], [1], [0, 0, 1, 1], [], []>} : vector<10x128xbf16>, vector<128x128xbf16>, vector<10x128xf32> -> vector<10x128xf32>
      %134 = arith.addf %124, %133 : vector<10x128xf32>
      %c2_i32_99 = arith.constant 2 : i32
      %135 = arith.addi %arg16, %c2_i32_99 : i32
      %c12_i32_100 = arith.constant 12 : i32
      %136 = arith.muli %135, %c12_i32_100 : i32
      %c2_i32_101 = arith.constant 2 : i32
      %137 = arith.addi %136, %c2_i32_101 : i32
      %138 = arith.index_cast %137 : i32 to index
      %c0_102 = arith.constant 0 : index
      %139 = vector.load %arg13[%138, %c0_102] : memref<144x128xf32, #tpu.memory_space<vmem>>, vector<10x128xf32>
      %140 = arith.truncf %139 : vector<10x128xf32> to vector<10x128xbf16>
      %c8 = arith.constant 8 : index
      %c0_103 = arith.constant 0 : index
      %c0_104 = arith.constant 0 : index
      %141 = vector.load %arg6[%c8, %c0_103, %c0_104] : memref<9x128x128xbf16, #tpu.memory_space<vmem>>, vector<1x128x128xbf16>
      %142 = vector.shape_cast %141 : vector<1x128x128xbf16> to vector<128x128xbf16>
      %cst_105 = arith.constant dense<0.000000e+00> : vector<10x128xf32>
      %143 = tpu.matmul %140, %142, %cst_105 {dimension_numbers = #tpu.dot_dimension_numbers<[1], [0], [0], [1], [0, 0, 1, 1], [], []>} : vector<10x128xbf16>, vector<128x128xbf16>, vector<10x128xf32> -> vector<10x128xf32>
      %144 = arith.addf %134, %143 : vector<10x128xf32>
      %145 = vector.broadcast %31 : vector<1x128xf32> to vector<10x128xf32>
      %146 = arith.addf %144, %145 : vector<10x128xf32>
      %cst_106 = arith.constant 0.000000e+00 : f32
      %147 = vector.broadcast %cst_106 : f32 to vector<10x128xf32>
      %148 = arith.maximumf %146, %147 : vector<10x128xf32>
      %c10_i32_107 = arith.constant 10 : i32
      %149 = arith.muli %arg16, %c10_i32_107 : i32
      %150 = arith.index_cast %149 : i32 to index
      %c0_108 = arith.constant 0 : index
      %151 = vector.load %arg14[%150, %c0_108] : memref<100x128xf32, #tpu.memory_space<vmem>>, vector<10x128xf32>
      tpu.vector_store %arg14[%150, %c0_108], %148 {strides = array<i32>} : memref<100x128xf32, #tpu.memory_space<vmem>>, vector<10x128xf32>,
    }
    %c10_i32_25 = arith.constant 10 : i32
    %c0_26 = arith.constant 0 : index
    %c0_27 = arith.constant 0 : index
    %33 = vector.load %arg9[%c0_26, %c0_27] : memref<1x128xf32, #tpu.memory_space<vmem>>, vector<1x128xf32>
    %c0_i32_28 = arith.constant 0 : i32
    %c8_i32 = arith.constant 8 : i32
    %34 = arith.addi %c0_i32_28, %c8_i32 : i32
    %c1_i32_29 = arith.constant 1 : i32
    scf.for %arg16 = %c0_i32_28 to %34 step %c1_i32_29  : i32 {
      %cst_41 = arith.constant 0.000000e+00 : f32
      %54 = vector.broadcast %cst_41 : f32 to vector<8x128xf32>
      %c0_i32_42 = arith.constant 0 : i32
      %55 = arith.addi %arg16, %c0_i32_42 : i32
      %c10_i32_43 = arith.constant 10 : i32
      %56 = arith.muli %55, %c10_i32_43 : i32
      %c0_i32_44 = arith.constant 0 : i32
      %57 = arith.addi %56, %c0_i32_44 : i32
      %58 = arith.index_cast %57 : i32 to index
      %c0_45 = arith.constant 0 : index
      %59 = vector.load %arg14[%58, %c0_45] : memref<100x128xf32, #tpu.memory_space<vmem>>, vector<8x128xf32>
      %60 = arith.truncf %59 : vector<8x128xf32> to vector<8x128xbf16>
      %c0_46 = arith.constant 0 : index
      %c0_47 = arith.constant 0 : index
      %c0_48 = arith.constant 0 : index
      %61 = vector.load %arg8[%c0_46, %c0_47, %c0_48] : memref<9x128x128xbf16, #tpu.memory_space<vmem>>, vector<1x128x128xbf16>
      %62 = vector.shape_cast %61 : vector<1x128x128xbf16> to vector<128x128xbf16>
      %cst_49 = arith.constant dense<0.000000e+00> : vector<8x128xf32>
      %63 = tpu.matmul %60, %62, %cst_49 {dimension_numbers = #tpu.dot_dimension_numbers<[1], [0], [0], [1], [0, 0, 1, 1], [], []>} : vector<8x128xbf16>, vector<128x128xbf16>, vector<8x128xf32> -> vector<8x128xf32>
      %64 = arith.addf %54, %63 : vector<8x128xf32>
      %c0_i32_50 = arith.constant 0 : i32
      %65 = arith.addi %arg16, %c0_i32_50 : i32
      %c10_i32_51 = arith.constant 10 : i32
      %66 = arith.muli %65, %c10_i32_51 : i32
      %c1_i32_52 = arith.constant 1 : i32
      %67 = arith.addi %66, %c1_i32_52 : i32
      %68 = arith.index_cast %67 : i32 to index
      %c0_53 = arith.constant 0 : index
      %69 = vector.load %arg14[%68, %c0_53] : memref<100x128xf32, #tpu.memory_space<vmem>>, vector<8x128xf32>
      %70 = arith.truncf %69 : vector<8x128xf32> to vector<8x128xbf16>
      %c1 = arith.constant 1 : index
      %c0_54 = arith.constant 0 : index
      %c0_55 = arith.constant 0 : index
      %71 = vector.load %arg8[%c1, %c0_54, %c0_55] : memref<9x128x128xbf16, #tpu.memory_space<vmem>>, vector<1x128x128xbf16>
      %72 = vector.shape_cast %71 : vector<1x128x128xbf16> to vector<128x128xbf16>
      %cst_56 = arith.constant dense<0.000000e+00> : vector<8x128xf32>
      %73 = tpu.matmul %70, %72, %cst_56 {dimension_numbers = #tpu.dot_dimension_numbers<[1], [0], [0], [1], [0, 0, 1, 1], [], []>} : vector<8x128xbf16>, vector<128x128xbf16>, vector<8x128xf32> -> vector<8x128xf32>
      %74 = arith.addf %64, %73 : vector<8x128xf32>
      %c0_i32_57 = arith.constant 0 : i32
      %75 = arith.addi %arg16, %c0_i32_57 : i32
      %c10_i32_58 = arith.constant 10 : i32
      %76 = arith.muli %75, %c10_i32_58 : i32
      %c2_i32_59 = arith.constant 2 : i32
      %77 = arith.addi %76, %c2_i32_59 : i32
      %78 = arith.index_cast %77 : i32 to index
      %c0_60 = arith.constant 0 : index
      %79 = vector.load %arg14[%78, %c0_60] : memref<100x128xf32, #tpu.memory_space<vmem>>, vector<8x128xf32>
      %80 = arith.truncf %79 : vector<8x128xf32> to vector<8x128xbf16>
      %c2 = arith.constant 2 : index
      %c0_61 = arith.constant 0 : index
      %c0_62 = arith.constant 0 : index
      %81 = vector.load %arg8[%c2, %c0_61, %c0_62] : memref<9x128x128xbf16, #tpu.memory_space<vmem>>, vector<1x128x128xbf16>
      %82 = vector.shape_cast %81 : vector<1x128x128xbf16> to vector<128x128xbf16>
      %cst_63 = arith.constant dense<0.000000e+00> : vector<8x128xf32>
      %83 = tpu.matmul %80, %82, %cst_63 {dimension_numbers = #tpu.dot_dimension_numbers<[1], [0], [0], [1], [0, 0, 1, 1], [], []>} : vector<8x128xbf16>, vector<128x128xbf16>, vector<8x128xf32> -> vector<8x128xf32>
      %84 = arith.addf %74, %83 : vector<8x128xf32>
      %c1_i32_64 = arith.constant 1 : i32
      %85 = arith.addi %arg16, %c1_i32_64 : i32
      %c10_i32_65 = arith.constant 10 : i32
      %86 = arith.muli %85, %c10_i32_65 : i32
      %c0_i32_66 = arith.constant 0 : i32
      %87 = arith.addi %86, %c0_i32_66 : i32
      %88 = arith.index_cast %87 : i32 to index
      %c0_67 = arith.constant 0 : index
      %89 = vector.load %arg14[%88, %c0_67] : memref<100x128xf32, #tpu.memory_space<vmem>>, vector<8x128xf32>
      %90 = arith.truncf %89 : vector<8x128xf32> to vector<8x128xbf16>
      %c3 = arith.constant 3 : index
      %c0_68 = arith.constant 0 : index
      %c0_69 = arith.constant 0 : index
      %91 = vector.load %arg8[%c3, %c0_68, %c0_69] : memref<9x128x128xbf16, #tpu.memory_space<vmem>>, vector<1x128x128xbf16>
      %92 = vector.shape_cast %91 : vector<1x128x128xbf16> to vector<128x128xbf16>
      %cst_70 = arith.constant dense<0.000000e+00> : vector<8x128xf32>
      %93 = tpu.matmul %90, %92, %cst_70 {dimension_numbers = #tpu.dot_dimension_numbers<[1], [0], [0], [1], [0, 0, 1, 1], [], []>} : vector<8x128xbf16>, vector<128x128xbf16>, vector<8x128xf32> -> vector<8x128xf32>
      %94 = arith.addf %84, %93 : vector<8x128xf32>
      %c1_i32_71 = arith.constant 1 : i32
      %95 = arith.addi %arg16, %c1_i32_71 : i32
      %c10_i32_72 = arith.constant 10 : i32
      %96 = arith.muli %95, %c10_i32_72 : i32
      %c1_i32_73 = arith.constant 1 : i32
      %97 = arith.addi %96, %c1_i32_73 : i32
      %98 = arith.index_cast %97 : i32 to index
      %c0_74 = arith.constant 0 : index
      %99 = vector.load %arg14[%98, %c0_74] : memref<100x128xf32, #tpu.memory_space<vmem>>, vector<8x128xf32>
      %100 = arith.truncf %99 : vector<8x128xf32> to vector<8x128xbf16>
      %c4 = arith.constant 4 : index
      %c0_75 = arith.constant 0 : index
      %c0_76 = arith.constant 0 : index
      %101 = vector.load %arg8[%c4, %c0_75, %c0_76] : memref<9x128x128xbf16, #tpu.memory_space<vmem>>, vector<1x128x128xbf16>
      %102 = vector.shape_cast %101 : vector<1x128x128xbf16> to vector<128x128xbf16>
      %cst_77 = arith.constant dense<0.000000e+00> : vector<8x128xf32>
      %103 = tpu.matmul %100, %102, %cst_77 {dimension_numbers = #tpu.dot_dimension_numbers<[1], [0], [0], [1], [0, 0, 1, 1], [], []>} : vector<8x128xbf16>, vector<128x128xbf16>, vector<8x128xf32> -> vector<8x128xf32>
      %104 = arith.addf %94, %103 : vector<8x128xf32>
      %c1_i32_78 = arith.constant 1 : i32
      %105 = arith.addi %arg16, %c1_i32_78 : i32
      %c10_i32_79 = arith.constant 10 : i32
      %106 = arith.muli %105, %c10_i32_79 : i32
      %c2_i32_80 = arith.constant 2 : i32
      %107 = arith.addi %106, %c2_i32_80 : i32
      %108 = arith.index_cast %107 : i32 to index
      %c0_81 = arith.constant 0 : index
      %109 = vector.load %arg14[%108, %c0_81] : memref<100x128xf32, #tpu.memory_space<vmem>>, vector<8x128xf32>
      %110 = arith.truncf %109 : vector<8x128xf32> to vector<8x128xbf16>
      %c5 = arith.constant 5 : index
      %c0_82 = arith.constant 0 : index
      %c0_83 = arith.constant 0 : index
      %111 = vector.load %arg8[%c5, %c0_82, %c0_83] : memref<9x128x128xbf16, #tpu.memory_space<vmem>>, vector<1x128x128xbf16>
      %112 = vector.shape_cast %111 : vector<1x128x128xbf16> to vector<128x128xbf16>
      %cst_84 = arith.constant dense<0.000000e+00> : vector<8x128xf32>
      %113 = tpu.matmul %110, %112, %cst_84 {dimension_numbers = #tpu.dot_dimension_numbers<[1], [0], [0], [1], [0, 0, 1, 1], [], []>} : vector<8x128xbf16>, vector<128x128xbf16>, vector<8x128xf32> -> vector<8x128xf32>
      %114 = arith.addf %104, %113 : vector<8x128xf32>
      %c2_i32_85 = arith.constant 2 : i32
      %115 = arith.addi %arg16, %c2_i32_85 : i32
      %c10_i32_86 = arith.constant 10 : i32
      %116 = arith.muli %115, %c10_i32_86 : i32
      %c0_i32_87 = arith.constant 0 : i32
      %117 = arith.addi %116, %c0_i32_87 : i32
      %118 = arith.index_cast %117 : i32 to index
      %c0_88 = arith.constant 0 : index
      %119 = vector.load %arg14[%118, %c0_88] : memref<100x128xf32, #tpu.memory_space<vmem>>, vector<8x128xf32>
      %120 = arith.truncf %119 : vector<8x128xf32> to vector<8x128xbf16>
      %c6 = arith.constant 6 : index
      %c0_89 = arith.constant 0 : index
      %c0_90 = arith.constant 0 : index
      %121 = vector.load %arg8[%c6, %c0_89, %c0_90] : memref<9x128x128xbf16, #tpu.memory_space<vmem>>, vector<1x128x128xbf16>
      %122 = vector.shape_cast %121 : vector<1x128x128xbf16> to vector<128x128xbf16>
      %cst_91 = arith.constant dense<0.000000e+00> : vector<8x128xf32>
      %123 = tpu.matmul %120, %122, %cst_91 {dimension_numbers = #tpu.dot_dimension_numbers<[1], [0], [0], [1], [0, 0, 1, 1], [], []>} : vector<8x128xbf16>, vector<128x128xbf16>, vector<8x128xf32> -> vector<8x128xf32>
      %124 = arith.addf %114, %123 : vector<8x128xf32>
      %c2_i32_92 = arith.constant 2 : i32
      %125 = arith.addi %arg16, %c2_i32_92 : i32
      %c10_i32_93 = arith.constant 10 : i32
      %126 = arith.muli %125, %c10_i32_93 : i32
      %c1_i32_94 = arith.constant 1 : i32
      %127 = arith.addi %126, %c1_i32_94 : i32
      %128 = arith.index_cast %127 : i32 to index
      %c0_95 = arith.constant 0 : index
      %129 = vector.load %arg14[%128, %c0_95] : memref<100x128xf32, #tpu.memory_space<vmem>>, vector<8x128xf32>
      %130 = arith.truncf %129 : vector<8x128xf32> to vector<8x128xbf16>
      %c7 = arith.constant 7 : index
      %c0_96 = arith.constant 0 : index
      %c0_97 = arith.constant 0 : index
      %131 = vector.load %arg8[%c7, %c0_96, %c0_97] : memref<9x128x128xbf16, #tpu.memory_space<vmem>>, vector<1x128x128xbf16>
      %132 = vector.shape_cast %131 : vector<1x128x128xbf16> to vector<128x128xbf16>
      %cst_98 = arith.constant dense<0.000000e+00> : vector<8x128xf32>
      %133 = tpu.matmul %130, %132, %cst_98 {dimension_numbers = #tpu.dot_dimension_numbers<[1], [0], [0], [1], [0, 0, 1, 1], [], []>} : vector<8x128xbf16>, vector<128x128xbf16>, vector<8x128xf32> -> vector<8x128xf32>
      %134 = arith.addf %124, %133 : vector<8x128xf32>
      %c2_i32_99 = arith.constant 2 : i32
      %135 = arith.addi %arg16, %c2_i32_99 : i32
      %c10_i32_100 = arith.constant 10 : i32
      %136 = arith.muli %135, %c10_i32_100 : i32
      %c2_i32_101 = arith.constant 2 : i32
      %137 = arith.addi %136, %c2_i32_101 : i32
      %138 = arith.index_cast %137 : i32 to index
      %c0_102 = arith.constant 0 : index
      %139 = vector.load %arg14[%138, %c0_102] : memref<100x128xf32, #tpu.memory_space<vmem>>, vector<8x128xf32>
      %140 = arith.truncf %139 : vector<8x128xf32> to vector<8x128xbf16>
      %c8 = arith.constant 8 : index
      %c0_103 = arith.constant 0 : index
      %c0_104 = arith.constant 0 : index
      %141 = vector.load %arg8[%c8, %c0_103, %c0_104] : memref<9x128x128xbf16, #tpu.memory_space<vmem>>, vector<1x128x128xbf16>
      %142 = vector.shape_cast %141 : vector<1x128x128xbf16> to vector<128x128xbf16>
      %cst_105 = arith.constant dense<0.000000e+00> : vector<8x128xf32>
      %143 = tpu.matmul %140, %142, %cst_105 {dimension_numbers = #tpu.dot_dimension_numbers<[1], [0], [0], [1], [0, 0, 1, 1], [], []>} : vector<8x128xbf16>, vector<128x128xbf16>, vector<8x128xf32> -> vector<8x128xf32>
      %144 = arith.addf %134, %143 : vector<8x128xf32>
      %145 = vector.broadcast %33 : vector<1x128xf32> to vector<8x128xf32>
      %146 = arith.addf %144, %145 : vector<8x128xf32>
      %cst_106 = arith.constant 0.000000e+00 : f32
      %147 = vector.broadcast %cst_106 : f32 to vector<8x128xf32>
      %148 = arith.maximumf %146, %147 : vector<8x128xf32>
      %c8_i32_107 = arith.constant 8 : i32
      %149 = arith.muli %arg16, %c8_i32_107 : i32
      %150 = arith.index_cast %149 : i32 to index
      %c0_108 = arith.constant 0 : index
      %151 = vector.load %arg15[%150, %c0_108] : memref<64x128xf32, #tpu.memory_space<vmem>>, vector<8x128xf32>
      tpu.vector_store %arg15[%150, %c0_108], %148 {strides = array<i32>} : memref<64x128xf32, #tpu.memory_space<vmem>>, vector<8x128xf32>,
    }
    %c8_i32_30 = arith.constant 8 : i32
    %35 = tpu.iota {dimensions = array<i32: 0>} : vector<4x8xi32>
    %36 = tpu.iota {dimensions = array<i32: 1>} : vector<4x8xi32>
    %c2_i32_31 = arith.constant 2 : i32
    %37 = vector.broadcast %c2_i32_31 : i32 to vector<4x8xi32>
    %38 = arith.muli %37, %35 : vector<4x8xi32>
    %39 = arith.cmpi eq, %36, %38 : vector<4x8xi32>
    %cst_32 = arith.constant 1.000000e+00 : f32
    %cst_33 = arith.constant 0.000000e+00 : f32
    %40 = vector.broadcast %cst_32 : f32 to vector<4x8xf32>
    %41 = vector.broadcast %cst_33 : f32 to vector<4x8xf32>
    %42 = arith.select %39, %40, %41 : vector<4x8xi1>, vector<4x8xf32>
    %43 = arith.truncf %42 : vector<4x8xf32> to vector<4x8xbf16>
    %c2_i32_34 = arith.constant 2 : i32
    %44 = vector.broadcast %c2_i32_34 : i32 to vector<4x8xi32>
    %45 = arith.muli %44, %35 : vector<4x8xi32>
    %c1_i32_35 = arith.constant 1 : i32
    %46 = vector.broadcast %c1_i32_35 : i32 to vector<4x8xi32>
    %47 = arith.addi %45, %46 : vector<4x8xi32>
    %48 = arith.cmpi eq, %36, %47 : vector<4x8xi32>
    %cst_36 = arith.constant 1.000000e+00 : f32
    %cst_37 = arith.constant 0.000000e+00 : f32
    %49 = vector.broadcast %cst_36 : f32 to vector<4x8xf32>
    %50 = vector.broadcast %cst_37 : f32 to vector<4x8xf32>
    %51 = arith.select %48, %49, %50 : vector<4x8xi1>, vector<4x8xf32>
    %52 = arith.truncf %51 : vector<4x8xf32> to vector<4x8xbf16>
    %c0_i32_38 = arith.constant 0 : i32
    %c4_i32 = arith.constant 4 : i32
    %53 = arith.addi %c0_i32_38, %c4_i32 : i32
    %c1_i32_39 = arith.constant 1 : i32
    scf.for %arg16 = %c0_i32_38 to %53 step %c1_i32_39  : i32 {
      %c2_i32_41 = arith.constant 2 : i32
      %54 = arith.muli %c2_i32_41, %arg16 : i32
      %c8_i32_42 = arith.constant 8 : i32
      %55 = arith.muli %54, %c8_i32_42 : i32
      %56 = arith.index_cast %55 : i32 to index
      %c0_43 = arith.constant 0 : index
      %57 = vector.load %arg15[%56, %c0_43] : memref<64x128xf32, #tpu.memory_space<vmem>>, vector<8x128xf32>
      %c2_i32_44 = arith.constant 2 : i32
      %58 = arith.muli %c2_i32_44, %arg16 : i32
      %c1_i32_45 = arith.constant 1 : i32
      %59 = arith.addi %58, %c1_i32_45 : i32
      %c8_i32_46 = arith.constant 8 : i32
      %60 = arith.muli %59, %c8_i32_46 : i32
      %61 = arith.index_cast %60 : i32 to index
      %c0_47 = arith.constant 0 : index
      %62 = vector.load %arg15[%61, %c0_47] : memref<64x128xf32, #tpu.memory_space<vmem>>, vector<8x128xf32>
      %63 = arith.maximumf %57, %62 : vector<8x128xf32>
      %64 = arith.truncf %63 : vector<8x128xf32> to vector<8x128xbf16>
      %cst_48 = arith.constant dense<0.000000e+00> : vector<4x128xf32>
      %65 = tpu.matmul %43, %64, %cst_48 {dimension_numbers = #tpu.dot_dimension_numbers<[1], [0], [0], [1], [0, 0, 1, 1], [], []>} : vector<4x8xbf16>, vector<8x128xbf16>, vector<4x128xf32> -> vector<4x128xf32>
      %cst_49 = arith.constant dense<0.000000e+00> : vector<4x128xf32>
      %66 = tpu.matmul %52, %64, %cst_49 {dimension_numbers = #tpu.dot_dimension_numbers<[1], [0], [0], [1], [0, 0, 1, 1], [], []>} : vector<4x8xbf16>, vector<8x128xbf16>, vector<4x128xf32> -> vector<4x128xf32>
      %67 = arith.maximumf %65, %66 : vector<4x128xf32>
      %c4_i32_50 = arith.constant 4 : i32
      %68 = arith.muli %arg16, %c4_i32_50 : i32
      %c0_51 = arith.constant 0 : index
      %69 = arith.index_cast %68 : i32 to index
      %c0_52 = arith.constant 0 : index
      %70 = vector.load %arg10[%c0_51, %69, %c0_52] : memref<1x16x128xf32, #tpu.memory_space<vmem>>, vector<1x4x128xf32>
      %71 = vector.shape_cast %70 : vector<1x4x128xf32> to vector<4x128xf32>
      %72 = vector.shape_cast %67 : vector<4x128xf32> to vector<1x4x128xf32>
      tpu.vector_store %arg10[%c0_51, %69, %c0_52], %72 {strides = array<i32>} : memref<1x16x128xf32, #tpu.memory_space<vmem>>, vector<1x4x128xf32>,
    }
    %c4_i32_40 = arith.constant 4 : i32
    return
  }
  func.func @transform_0(%arg0: i32) -> (i32, i32, i32) {
    %c0_i32 = arith.constant 0 : i32
    %c0_i32_0 = arith.constant 0 : i32
    %c0_i32_1 = arith.constant 0 : i32
    return %arg0, %c0_i32, %c0_i32_0 : i32, i32, i32
  }
  func.func @transform_1(%arg0: i32) -> (i32, i32) {
    %c0_i32 = arith.constant 0 : i32
    %c0_i32_0 = arith.constant 0 : i32
    %c0_i32_1 = arith.constant 0 : i32
    return %c0_i32, %c0_i32_0 : i32, i32
  }
  func.func @transform_2(%arg0: i32) -> (i32, i32) {
    %c0_i32 = arith.constant 0 : i32
    %c0_i32_0 = arith.constant 0 : i32
    %c0_i32_1 = arith.constant 0 : i32
    return %c0_i32, %c0_i32_0 : i32, i32
  }
  func.func @transform_3(%arg0: i32) -> (i32, i32, i32) {
    %c0_i32 = arith.constant 0 : i32
    %c0_i32_0 = arith.constant 0 : i32
    %c0_i32_1 = arith.constant 0 : i32
    %c0_i32_2 = arith.constant 0 : i32
    return %c0_i32, %c0_i32_0, %c0_i32_1 : i32, i32, i32
  }
  func.func @transform_4(%arg0: i32) -> (i32, i32) {
    %c0_i32 = arith.constant 0 : i32
    %c0_i32_0 = arith.constant 0 : i32
    %c0_i32_1 = arith.constant 0 : i32
    return %c0_i32, %c0_i32_0 : i32, i32
  }
  func.func @transform_5(%arg0: i32) -> (i32, i32, i32) {
    %c0_i32 = arith.constant 0 : i32
    %c0_i32_0 = arith.constant 0 : i32
    %c0_i32_1 = arith.constant 0 : i32
    %c0_i32_2 = arith.constant 0 : i32
    return %c0_i32, %c0_i32_0, %c0_i32_1 : i32, i32, i32
  }
  func.func @transform_6(%arg0: i32) -> (i32, i32) {
    %c0_i32 = arith.constant 0 : i32
    %c0_i32_0 = arith.constant 0 : i32
    %c0_i32_1 = arith.constant 0 : i32
    return %c0_i32, %c0_i32_0 : i32, i32
  }
  func.func @transform_7(%arg0: i32) -> (i32, i32, i32) {
    %c0_i32 = arith.constant 0 : i32
    %c0_i32_0 = arith.constant 0 : i32
    %c0_i32_1 = arith.constant 0 : i32
    %c0_i32_2 = arith.constant 0 : i32
    return %c0_i32, %c0_i32_0, %c0_i32_1 : i32, i32, i32
  }
  func.func @transform_8(%arg0: i32) -> (i32, i32) {
    %c0_i32 = arith.constant 0 : i32
    %c0_i32_0 = arith.constant 0 : i32
    %c0_i32_1 = arith.constant 0 : i32
    return %c0_i32, %c0_i32_0 : i32, i32
  }
  func.func @transform_9(%arg0: i32) -> (i32, i32, i32) {
    %c0_i32 = arith.constant 0 : i32
    %c0_i32_0 = arith.constant 0 : i32
    %c0_i32_1 = arith.constant 0 : i32
    return %arg0, %c0_i32, %c0_i32_0 : i32, i32, i32
  }
}

module attributes {stable_mosaic.version = 11 : i64} {
  func.func @_fc_kernel(%arg0: i32, %arg1: memref<8x2048xf32, #tpu.memory_space<vmem>>, %arg2: memref<2048x256xbf16, #tpu.memory_space<vmem>>, %arg3: memref<1x256xf32, #tpu.memory_space<vmem>>, %arg4: memref<256x256xbf16, #tpu.memory_space<vmem>>, %arg5: memref<1x256xf32, #tpu.memory_space<vmem>>, %arg6: memref<256x128xbf16, #tpu.memory_space<vmem>>, %arg7: memref<1x128xf32, #tpu.memory_space<vmem>>, %arg8: memref<8x128xf32, #tpu.memory_space<vmem>>) attributes {dimension_semantics = [#tpu.dimension_semantics<parallel>], iteration_bounds = array<i64: 1>, scalar_prefetch = 0 : i64, scratch_operands = 0 : i64, tpu.core_type = #tpu.core_type<tc>, window_params = [{transform_indices = @transform_0, window_bounds = array<i64: 8, 2048>}, {pipeline_mode = #tpu.pipeline_mode<synchronous>, transform_indices = @transform_1, window_bounds = array<i64: 2048, 256>}, {pipeline_mode = #tpu.pipeline_mode<synchronous>, transform_indices = @transform_2, window_bounds = array<i64: 1, 256>}, {pipeline_mode = #tpu.pipeline_mode<synchronous>, transform_indices = @transform_3, window_bounds = array<i64: 256, 256>}, {pipeline_mode = #tpu.pipeline_mode<synchronous>, transform_indices = @transform_4, window_bounds = array<i64: 1, 256>}, {pipeline_mode = #tpu.pipeline_mode<synchronous>, transform_indices = @transform_5, window_bounds = array<i64: 256, 128>}, {pipeline_mode = #tpu.pipeline_mode<synchronous>, transform_indices = @transform_6, window_bounds = array<i64: 1, 128>}, {transform_indices = @transform_7, window_bounds = array<i64: 8, 128>}]} {
    %c0 = arith.constant 0 : index
    %c0_0 = arith.constant 0 : index
    %0 = vector.load %arg1[%c0, %c0_0] : memref<8x2048xf32, #tpu.memory_space<vmem>>, vector<8x2048xf32>
    %1 = arith.truncf %0 : vector<8x2048xf32> to vector<8x2048xbf16>
    %c0_1 = arith.constant 0 : index
    %c0_2 = arith.constant 0 : index
    %2 = vector.load %arg2[%c0_1, %c0_2] : memref<2048x256xbf16, #tpu.memory_space<vmem>>, vector<2048x256xbf16>
    %cst = arith.constant dense<0.000000e+00> : vector<8x256xf32>
    %3 = tpu.matmul %1, %2, %cst {dimension_numbers = #tpu.dot_dimension_numbers<[1], [0], [0], [1], [0, 0, 1, 1], [], []>} : vector<8x2048xbf16>, vector<2048x256xbf16>, vector<8x256xf32> -> vector<8x256xf32>
    %c0_3 = arith.constant 0 : index
    %c0_4 = arith.constant 0 : index
    %4 = vector.load %arg3[%c0_3, %c0_4] : memref<1x256xf32, #tpu.memory_space<vmem>>, vector<1x256xf32>
    %5 = vector.broadcast %4 : vector<1x256xf32> to vector<8x256xf32>
    %6 = arith.addf %3, %5 : vector<8x256xf32>
    %cst_5 = arith.constant 0.000000e+00 : f32
    %7 = vector.broadcast %cst_5 : f32 to vector<8x256xf32>
    %8 = arith.maximumf %6, %7 : vector<8x256xf32>
    %9 = arith.truncf %8 : vector<8x256xf32> to vector<8x256xbf16>
    %c0_6 = arith.constant 0 : index
    %c0_7 = arith.constant 0 : index
    %10 = vector.load %arg4[%c0_6, %c0_7] : memref<256x256xbf16, #tpu.memory_space<vmem>>, vector<256x256xbf16>
    %cst_8 = arith.constant dense<0.000000e+00> : vector<8x256xf32>
    %11 = tpu.matmul %9, %10, %cst_8 {dimension_numbers = #tpu.dot_dimension_numbers<[1], [0], [0], [1], [0, 0, 1, 1], [], []>} : vector<8x256xbf16>, vector<256x256xbf16>, vector<8x256xf32> -> vector<8x256xf32>
    %c0_9 = arith.constant 0 : index
    %c0_10 = arith.constant 0 : index
    %12 = vector.load %arg5[%c0_9, %c0_10] : memref<1x256xf32, #tpu.memory_space<vmem>>, vector<1x256xf32>
    %13 = vector.broadcast %12 : vector<1x256xf32> to vector<8x256xf32>
    %14 = arith.addf %11, %13 : vector<8x256xf32>
    %cst_11 = arith.constant 0.000000e+00 : f32
    %15 = vector.broadcast %cst_11 : f32 to vector<8x256xf32>
    %16 = arith.maximumf %14, %15 : vector<8x256xf32>
    %17 = arith.truncf %16 : vector<8x256xf32> to vector<8x256xbf16>
    %c0_12 = arith.constant 0 : index
    %c0_13 = arith.constant 0 : index
    %18 = vector.load %arg6[%c0_12, %c0_13] : memref<256x128xbf16, #tpu.memory_space<vmem>>, vector<256x128xbf16>
    %cst_14 = arith.constant dense<0.000000e+00> : vector<8x128xf32>
    %19 = tpu.matmul %17, %18, %cst_14 {dimension_numbers = #tpu.dot_dimension_numbers<[1], [0], [0], [1], [0, 0, 1, 1], [], []>} : vector<8x256xbf16>, vector<256x128xbf16>, vector<8x128xf32> -> vector<8x128xf32>
    %c0_15 = arith.constant 0 : index
    %c0_16 = arith.constant 0 : index
    %20 = vector.load %arg7[%c0_15, %c0_16] : memref<1x128xf32, #tpu.memory_space<vmem>>, vector<1x128xf32>
    %21 = vector.broadcast %20 : vector<1x128xf32> to vector<8x128xf32>
    %22 = arith.addf %19, %21 : vector<8x128xf32>
    %c0_17 = arith.constant 0 : index
    %c0_18 = arith.constant 0 : index
    %23 = vector.load %arg8[%c0_17, %c0_18] : memref<8x128xf32, #tpu.memory_space<vmem>>, vector<8x128xf32>
    tpu.vector_store %arg8[%c0_17, %c0_18], %22 {strides = array<i32>} : memref<8x128xf32, #tpu.memory_space<vmem>>, vector<8x128xf32>,
    return
  }
  func.func @transform_0(%arg0: i32) -> (i32, i32) {
    %c0_i32 = arith.constant 0 : i32
    %c0_i32_0 = arith.constant 0 : i32
    return %arg0, %c0_i32 : i32, i32
  }
  func.func @transform_1(%arg0: i32) -> (i32, i32) {
    %c0_i32 = arith.constant 0 : i32
    %c0_i32_0 = arith.constant 0 : i32
    %c0_i32_1 = arith.constant 0 : i32
    return %c0_i32, %c0_i32_0 : i32, i32
  }
  func.func @transform_2(%arg0: i32) -> (i32, i32) {
    %c0_i32 = arith.constant 0 : i32
    %c0_i32_0 = arith.constant 0 : i32
    %c0_i32_1 = arith.constant 0 : i32
    return %c0_i32, %c0_i32_0 : i32, i32
  }
  func.func @transform_3(%arg0: i32) -> (i32, i32) {
    %c0_i32 = arith.constant 0 : i32
    %c0_i32_0 = arith.constant 0 : i32
    %c0_i32_1 = arith.constant 0 : i32
    return %c0_i32, %c0_i32_0 : i32, i32
  }
  func.func @transform_4(%arg0: i32) -> (i32, i32) {
    %c0_i32 = arith.constant 0 : i32
    %c0_i32_0 = arith.constant 0 : i32
    %c0_i32_1 = arith.constant 0 : i32
    return %c0_i32, %c0_i32_0 : i32, i32
  }
  func.func @transform_5(%arg0: i32) -> (i32, i32) {
    %c0_i32 = arith.constant 0 : i32
    %c0_i32_0 = arith.constant 0 : i32
    %c0_i32_1 = arith.constant 0 : i32
    return %c0_i32, %c0_i32_0 : i32, i32
  }
  func.func @transform_6(%arg0: i32) -> (i32, i32) {
    %c0_i32 = arith.constant 0 : i32
    %c0_i32_0 = arith.constant 0 : i32
    %c0_i32_1 = arith.constant 0 : i32
    return %c0_i32, %c0_i32_0 : i32, i32
  }
  func.func @transform_7(%arg0: i32) -> (i32, i32) {
    %c0_i32 = arith.constant 0 : i32
    %c0_i32_0 = arith.constant 0 : i32
    return %arg0, %c0_i32 : i32, i32
  }
}

</mosaic_0001>

<bundles_post_ra>
// kernel: custom_model_forward.2
= control target key start
LH: loop header
LB: loop body
LE: loop exit
PB: predicated region body
PF: predicated region fallthrough
CT: control target
= control target key end

     0   :  { %s7174_s30 = smov 0   ;;  %s8439_s0 = inlined_call_operand.vmem [shape: bf16[2,676,9], index: 0, kind: input, shape index: {}]   ;;  %s8440_s1 = inlined_call_operand.vmem [shape: bf16[9,128], index: 1, kind: input, shape index: {}]   ;;  %s8441_s2 = inlined_call_operand.vmem [shape: f32[1,128], index: 2, kind: input, shape index: {}]   ;;  %s8442_s3 = inlined_call_operand.vmem [shape: bf16[9,128,128], index: 3, kind: input, shape index: {}]   ;;  %s8443_s4 = inlined_call_operand.vmem [shape: f32[1,128], index: 4, kind: input, shape index: {}]   ;;  %s8444_s5 = inlined_call_operand.vmem [shape: bf16[9,128,128], index: 5, kind: input, shape index: {}]   ;;  %s8445_s6 = inlined_call_operand.vmem [shape: f32[1,128], index: 6, kind: input, shape index: {}]   ;;  %s8446_s7 = inlined_call_operand.vmem [shape: bf16[9,128,128], index: 7, kind: input, shape index: {}]   ;;  %s8447_s8 = inlined_call_operand.vmem [shape: f32[1,128], index: 8, kind: input, shape index: {}]   ;;  %s8448_s9 = inlined_call_operand.vmem [shape: f32[2,16,128], index: 9, kind: output, shape index: {}]  }
   0x1 LB: > { %s4929_s10 = sadd.s32 4294967295, %s7091_s30   ;;  %p4933_p0 = scmp.ge.s32.totalorder %s7091_s30, 1  ;;  %s7091_s30 = sphi %s7174_s30, %s19_s30  }
   0x2   : > { %p287_p1 = scmp.lt.s32.totalorder %s7091_s30, 3 }
   0x4   : > { %p288_p2 = pnand %p4933_p0, %p287_p1 }
   0x5   : > { %p323_p3 = scmp.lt.s32.totalorder (!%p288_p2), %s4929_s10, 1  ;;  %s7465_s25 = smov (!%p288_p2), 0  }
   0x6   : > { %291 = sbr.rel (%p288_p2) target bundleno = 1915 (0x77b), region = 56 }
   0xb   : > { %vm776_vm0 = vcmask 1043456   ;;  %v7113_v0 = vmov 0.0   ;;  %v6805_v1 = vld [vmem:[%s8440_s1] sm:$0x1f]   ;;  %vm777_vm1 = vcmask 1044480   ;;  %v7114_v2 = vmov 65535  }
   0xc   : > { %6001 = vmatprep.subr.bf16.mxu0 %v7113_v0  ;;  %6743 = vmatprep.subr.bf16.mxu1 %v7113_v0  ;;  %v778_v3 = vsel %vm776_vm0, 4294967295, %v7114_v2  ;;  %vm7115_vm2 = vmmov 0   ;;  %s8450_s10 = smov (!%p323_p3, %s4929_s10), 1  ;;  %vm646_vm3 = vcmask 72704   ;;  %v7373_v49 = vld [vmem:[%s8441_s2] ss:$0 sm:$0xff] }
   0xd   : > { %6003 = vmatprep.mubr.msk.bf16.mxu0 %vm7115_vm2, %v7113_v0  ;;  %6091 = vmatprep.mubr.msk.bf16.mxu1 %vm7115_vm2, %v7113_v0  ;;  %v779_v4 = vsel %vm777_vm1, %v778_v3, 0  ;;  %s6745_s13 = smul.u32 340, %s8450_s10  ;;  %s5693_s14 = sshll.u32 %s8450_s10, 4 }
   0xe   : > { %v781_v5 = vand.u32 %v6805_v1, %v779_v4  ;;  %s7195_s17 = scalar_lea.vmem %s8448_s9, %s5693_s14 }
   0xf   : > { %s7200_s20 = scalar_lea.vmem %s8439_s0, %s6745_s13 }
  0x10   : > { %6002 = vmatpush3.bf16.msra.mxu0 %v781_v5  ;;  %6744 = vmatpush3.bf16.msra.mxu1 %v781_v5  ;;  %v6806_v6 = vld [vmem:[%s7200_s20] sm:$0xff]   ;;  %v6807_v7 = vld [vmem:[%s7200_s20 + $0xb0] sm:$0xff]   ;;  %v6808_v8 = vld [vmem:[%s7200_s20 + $0x8] sm:$0xff]  }
  0x11   : > { %v6809_v9 = vld [vmem:[%s7200_s20 + $0xb8] sm:$0xff]   ;;  %v6810_v10 = vld [vmem:[%s7200_s20 + $0x10] sm:$0xff]   ;;  %v6811_v11 = vld [vmem:[%s7200_s20 + $0xc0] sm:$0xff]  }
  0x12   : > { %v6812_v12 = vld [vmem:[%s7200_s20 + $0x18] sm:$0xff]   ;;  %v6813_v13 = vld [vmem:[%s7200_s20 + $0xc8] sm:$0xff]   ;;  %v6814_v14 = vld [vmem:[%s7200_s20 + $0x20] sm:$0xff]  }
  0x13   : > { %6004 = vmatmul.mubr.msk.bf16.vlgmr.msra.gmra.mxu0 %vm646_vm3, %v6806_v6  ;;  %6092 = vmatmul.mubr.msk.bf16.vlgmr.msra.gmra.mxu1 %vm646_vm3, %v6807_v7  ;;  %v6815_v15 = vld [vmem:[%s7200_s20 + $0xd0] sm:$0xff]   ;;  %v6816_v16 = vld [vmem:[%s7200_s20 + $0x28] sm:$0xff]   ;;  %v6817_v17 = vld [vmem:[%s7200_s20 + $0xd8] sm:$0xff]  }
  0x14   : > { %6007 = vmatprep.mubr.msk.bf16.mxu0 %vm7115_vm2, %v7113_v0  ;;  %6095 = vmatprep.mubr.msk.bf16.mxu1 %vm7115_vm2, %v7113_v0  ;;  %v6818_v18 = vld [vmem:[%s7200_s20 + $0x30] sm:$0xff]   ;;  %v6819_v19 = vld [vmem:[%s7200_s20 + $0xe0] sm:$0xff]   ;;  %v6820_v20 = vld [vmem:[%s7200_s20 + $0x38] sm:$0xff]  }
  0x15   : > { %v6821_v21 = vld [vmem:[%s7200_s20 + $0xe8] sm:$0xff]   ;;  %v6822_v22 = vld [vmem:[%s7200_s20 + $0x40] sm:$0xff]   ;;  %v6823_v23 = vld [vmem:[%s7200_s20 + $0xf0] sm:$0xff]  }
  0x16   : > { %v6824_v24 = vld [vmem:[%s7200_s20 + $0x48] sm:$0xff]   ;;  %v6825_v25 = vld [vmem:[%s7200_s20 + $0xf8] sm:$0xff]   ;;  %v6826_v26 = vld [vmem:[%s7200_s20 + $0x50] sm:$0xff]  }
  0x17   : > { %v6827_v27 = vld [vmem:[%s7200_s20 + $0x100] sm:$0xff]   ;;  %v6828_v28 = vld [vmem:[%s7200_s20 + $0x58] sm:$0xff]   ;;  %v6829_v29 = vld [vmem:[%s7200_s20 + $0x108] sm:$0xff]  }
  0x18   : > { %v6830_v30 = vld [vmem:[%s7200_s20 + $0x60] sm:$0xff]   ;;  %v6831_v31 = vld [vmem:[%s7200_s20 + $0x110] sm:$0xff]   ;;  %v6832_v32 = vld [vmem:[%s7200_s20 + $0x68] sm:$0xff]  }
  0x19   : > { %v6833_v33 = vld [vmem:[%s7200_s20 + $0x118] sm:$0xff]   ;;  %v6834_v34 = vld [vmem:[%s7200_s20 + $0x70] sm:$0xff]   ;;  %v6835_v35 = vld [vmem:[%s7200_s20 + $0x120] sm:$0xff]  }
  0x1a   : > { %v6836_v36 = vld [vmem:[%s7200_s20 + $0x78] sm:$0xff]   ;;  %v6837_v37 = vld [vmem:[%s7200_s20 + $0x128] sm:$0xff]   ;;  %v6838_v38 = vld [vmem:[%s7200_s20 + $0x80] sm:$0xff]  }
  0x1b   : > { %6008 = vmatmul.mubr.msk.bf16.gmra.mxu0 %vm646_vm3, %v6808_v8  ;;  %6096 = vmatmul.mubr.msk.bf16.gmra.mxu1 %vm646_vm3, %v6809_v9  ;;  %v6839_v39 = vld [vmem:[%s7200_s20 + $0x130] sm:$0xff]   ;;  %v6840_v40 = vld [vmem:[%s7200_s20 + $0x88] sm:$0xff]   ;;  %v6841_v41 = vld [vmem:[%s7200_s20 + $0x138] sm:$0xff]  }
  0x1c   : > { %6011 = vmatprep.mubr.msk.bf16.mxu0 %vm7115_vm2, %v7113_v0  ;;  %6099 = vmatprep.mubr.msk.bf16.mxu1 %vm7115_vm2, %v7113_v0  ;;  %v6842_v42 = vld [vmem:[%s7200_s20 + $0x90] sm:$0xff]   ;;  %v6843_v43 = vld [vmem:[%s7200_s20 + $0x140] sm:$0xff]   ;;  %v6844_v44 = vld [vmem:[%s7200_s20 + $0x98] sm:$0xff]  }
  0x1d   : > { %v6845_v45 = vld [vmem:[%s7200_s20 + $0x148] sm:$0xff]   ;;  %v6846_v46 = vld [vmem:[%s7200_s20 + $0xa0] sm:$0xff]   ;;  %v6847_v47 = vld [vmem:[%s7200_s20 + $0x150] ss:$0 sps:$4 sm:$0x33]  }
  0x1e   : > { %v6848_v48 = vld [vmem:[%s7200_s20 + $0xa8] sm:$0xff]  }
  0x23   : > { %6012 = vmatmul.mubr.msk.bf16.gmra.mxu0 %vm646_vm3, %v6810_v10  ;;  %6100 = vmatmul.mubr.msk.bf16.gmra.mxu1 %vm646_vm3, %v6811_v11 }
  0x24   : > { %6015 = vmatprep.mubr.msk.bf16.mxu0 %vm7115_vm2, %v7113_v0  ;;  %6103 = vmatprep.mubr.msk.bf16.mxu1 %vm7115_vm2, %v7113_v0 }
  0x2b   : > { %6016 = vmatmul.mubr.msk.bf16.gmra.mxu0 %vm646_vm3, %v6812_v12  ;;  %6104 = vmatmul.mubr.msk.bf16.gmra.mxu1 %vm646_vm3, %v6813_v13 }
  0x2c   : > { %6019 = vmatprep.mubr.msk.bf16.mxu0 %vm7115_vm2, %v7113_v0  ;;  %6107 = vmatprep.mubr.msk.bf16.mxu1 %vm7115_vm2, %v7113_v0 }
  0x33   : > { %6020 = vmatmul.mubr.msk.bf16.gmra.mxu0 %vm646_vm3, %v6814_v14  ;;  %6108 = vmatmul.mubr.msk.bf16.gmra.mxu1 %vm646_vm3, %v6815_v15 }
  0x34   : > { %6023 = vmatprep.mubr.msk.bf16.mxu0 %vm7115_vm2, %v7113_v0  ;;  %6111 = vmatprep.mubr.msk.bf16.mxu1 %vm7115_vm2, %v7113_v0 }
  0x3b   : > { %6024 = vmatmul.mubr.msk.bf16.gmra.mxu0 %vm646_vm3, %v6816_v16  ;;  %6112 = vmatmul.mubr.msk.bf16.gmra.mxu1 %vm646_vm3, %v6817_v17 }
  0x3c   : > { %6027 = vmatprep.mubr.msk.bf16.mxu0 %vm7115_vm2, %v7113_v0  ;;  %6115 = vmatprep.mubr.msk.bf16.mxu1 %vm7115_vm2, %v7113_v0 }
  0x43   : > { %6028 = vmatmul.mubr.msk.bf16.gmra.mxu0 %vm646_vm3, %v6818_v18  ;;  %6116 = vmatmul.mubr.msk.bf16.gmra.mxu1 %vm646_vm3, %v6819_v19 }
  0x44   : > { %6031 = vmatprep.mubr.msk.bf16.mxu0 %vm7115_vm2, %v7113_v0  ;;  %6119 = vmatprep.mubr.msk.bf16.mxu1 %vm7115_vm2, %v7113_v0 }
  0x4b   : > { %6032 = vmatmul.mubr.msk.bf16.gmra.mxu0 %vm646_vm3, %v6820_v20  ;;  %6120 = vmatmul.mubr.msk.bf16.gmra.mxu1 %vm646_vm3, %v6821_v21 }
  0x4c   : > { %6035 = vmatprep.mubr.msk.bf16.mxu0 %vm7115_vm2, %v7113_v0  ;;  %6123 = vmatprep.mubr.msk.bf16.mxu1 %vm7115_vm2, %v7113_v0 }
  0x53   : > { %6036 = vmatmul.mubr.msk.bf16.gmra.mxu0 %vm646_vm3, %v6822_v22  ;;  %6124 = vmatmul.mubr.msk.bf16.gmra.mxu1 %vm646_vm3, %v6823_v23 }
  0x54   : > { %6039 = vmatprep.mubr.msk.bf16.mxu0 %vm7115_vm2, %v7113_v0  ;;  %6127 = vmatprep.mubr.msk.bf16.mxu1 %vm7115_vm2, %v7113_v0 }
  0x5b   : > { %6040 = vmatmul.mubr.msk.bf16.gmra.mxu0 %vm646_vm3, %v6824_v24  ;;  %6128 = vmatmul.mubr.msk.bf16.gmra.mxu1 %vm646_vm3, %v6825_v25 }
  0x5c   : > { %6043 = vmatprep.mubr.msk.bf16.mxu0 %vm7115_vm2, %v7113_v0  ;;  %6131 = vmatprep.mubr.msk.bf16.mxu1 %vm7115_vm2, %v7113_v0 }
  0x63   : > { %6044 = vmatmul.mubr.msk.bf16.gmra.mxu0 %vm646_vm3, %v6826_v26  ;;  %6132 = vmatmul.mubr.msk.bf16.gmra.mxu1 %vm646_vm3, %v6827_v27 }
  0x64   : > { %6047 = vmatprep.mubr.msk.bf16.mxu0 %vm7115_vm2, %v7113_v0  ;;  %6135 = vmatprep.mubr.msk.bf16.mxu1 %vm7115_vm2, %v7113_v0 }
  0x6b   : > { %6048 = vmatmul.mubr.msk.bf16.gmra.mxu0 %vm646_vm3, %v6828_v28  ;;  %6136 = vmatmul.mubr.msk.bf16.gmra.mxu1 %vm646_vm3, %v6829_v29 }
  0x6c   : > { %6051 = vmatprep.mubr.msk.bf16.mxu0 %vm7115_vm2, %v7113_v0  ;;  %6139 = vmatprep.mubr.msk.bf16.mxu1 %vm7115_vm2, %v7113_v0 }
  0x73   : > { %6052 = vmatmul.mubr.msk.bf16.gmra.mxu0 %vm646_vm3, %v6830_v30  ;;  %6140 = vmatmul.mubr.msk.bf16.gmra.mxu1 %vm646_vm3, %v6831_v31 }
  0x74   : > { %6055 = vmatprep.mubr.msk.bf16.mxu0 %vm7115_vm2, %v7113_v0  ;;  %6143 = vmatprep.mubr.msk.bf16.mxu1 %vm7115_vm2, %v7113_v0 }
  0x7b   : > { %6056 = vmatmul.mubr.msk.bf16.gmra.mxu0 %vm646_vm3, %v6832_v32  ;;  %6144 = vmatmul.mubr.msk.bf16.gmra.mxu1 %vm646_vm3, %v6833_v33 }
  0x7c   : > { %6059 = vmatprep.mubr.msk.bf16.mxu0 %vm7115_vm2, %v7113_v0  ;;  %6147 = vmatprep.mubr.msk.bf16.mxu1 %vm7115_vm2, %v7113_v0 }
  0x83   : > { %6060 = vmatmul.mubr.msk.bf16.gmra.mxu0 %vm646_vm3, %v6834_v34  ;;  %6148 = vmatmul.mubr.msk.bf16.gmra.mxu1 %vm646_vm3, %v6835_v35 }
  0x84   : > { %6063 = vmatprep.mubr.msk.bf16.mxu0 %vm7115_vm2, %v7113_v0  ;;  %6151 = vmatprep.mubr.msk.bf16.mxu1 %vm7115_vm2, %v7113_v0 }
  0x8b   : > { %6064 = vmatmul.mubr.msk.bf16.gmra.mxu0 %vm646_vm3, %v6836_v36  ;;  %6152 = vmatmul.mubr.msk.bf16.gmra.mxu1 %vm646_vm3, %v6837_v37 }
  0x8c   : > { %6067 = vmatprep.mubr.msk.bf16.mxu0 %vm7115_vm2, %v7113_v0  ;;  %6155 = vmatprep.mubr.msk.bf16.mxu1 %vm7115_vm2, %v7113_v0 }
  0x93   : > { %6068 = vmatmul.mubr.msk.bf16.gmra.mxu0 %vm646_vm3, %v6838_v38  ;;  %6156 = vmatmul.mubr.msk.bf16.gmra.mxu1 %vm646_vm3, %v6839_v39 }
  0x94   : > { %6071 = vmatprep.mubr.msk.bf16.mxu0 %vm7115_vm2, %v7113_v0  ;;  %6159 = vmatprep.mubr.msk.bf16.mxu1 %vm7115_vm2, %v7113_v0 }
  0x9b   : > { %6072 = vmatmul.mubr.msk.bf16.gmra.mxu0 %vm646_vm3, %v6840_v40  ;;  %6160 = vmatmul.mubr.msk.bf16.gmra.mxu1 %vm646_vm3, %v6841_v41 }
  0x9c   : > { %6075 = vmatprep.mubr.msk.bf16.mxu0 %vm7115_vm2, %v7113_v0  ;;  %6163 = vmatprep.mubr.msk.bf16.mxu1 %vm7115_vm2, %v7113_v0 }
  0xa3   : > { %6076 = vmatmul.mubr.msk.bf16.gmra.mxu0 %vm646_vm3, %v6842_v42  ;;  %6164 = vmatmul.mubr.msk.bf16.gmra.mxu1 %vm646_vm3, %v6843_v43 }
  0xa4   : > { %6079 = vmatprep.mubr.msk.bf16.mxu0 %vm7115_vm2, %v7113_v0  ;;  %6167 = vmatprep.mubr.msk.bf16.mxu1 %vm7115_vm2, %v7113_v0 }
  0xab   : > { %6080 = vmatmul.mubr.msk.bf16.gmra.mxu0 %vm646_vm3, %v6844_v44  ;;  %6168 = vmatmul.mubr.msk.bf16.gmra.mxu1 %vm646_vm3, %v6845_v45 }
  0xac   : > { %6083 = vmatprep.mubr.msk.bf16.mxu0 %vm7115_vm2, %v7113_v0  ;;  %6171 = vmatprep.mubr.msk.bf16.mxu1 %vm7115_vm2, %v7113_v0 }
  0xb3   : > { %6084 = vmatmul.mubr.msk.bf16.gmra.mxu0 %vm646_vm3, %v6846_v46  ;;  %6172 = vmatmul.mubr.msk.bf16.gmra.mxu1 %vm646_vm3, %v6847_v47 }
  0xb4   : > { %6087 = vmatprep.mubr.msk.bf16.mxu0 %vm7115_vm2, %v7113_v0 }
  0xbb   : > { %6088 = vmatmul.mubr.msk.bf16.gmra.mxu0 %vm646_vm3, %v6848_v48 }
  0xd3   : > { %v817_v50 = vpop.f32.mrf.mxu0  ;;  %v993_v52 = vpop.f32.mrf.mxu1 }
  0xd4   : > { %v818_v51 = vadd.f32 %v7373_v49, %v817_v50  ;;  %v994_v54 = vadd.f32 %v7373_v49, %v993_v52 }
  0xd5   : > { %v6005_v53 = vpop.f32.mrf.mxu0  ;;  %v6093_v56 = vpop.f32.mrf.mxu1 }
  0xd6   : > { %v1159_v55 = vmax.f32 %v818_v51, 0.0  ;;  %v1203_v58 = vmax.f32 %v994_v54, 0.0 }
  0xd7   : > { %v820_v57 = vpop.f32.mrf.mxu0  ;;  %v996_v60 = vpop.f32.mrf.mxu1 }
  0xd8   : > { %1244 = vst [vmem:[#allocation2] sm:$0xff] %v1159_v55  ;;  %v821_v59 = vadd.f32 %v7373_v49, %v820_v57  ;;  %1288 = vst [vmem:[#allocation2 + $0x160] sm:$0xff] %v1203_v58  ;;  %v997_v62 = vadd.f32 %v7373_v49, %v996_v60 }
  0xd9   : > { %v6006_v61 = vpop.f32.mrf.mxu0  ;;  %v6094_v1 = vpop.f32.mrf.mxu1 }
  0xda   : > { %v1160_v63 = vmax.f32 %v821_v59, 0.0  ;;  %v1204_v3 = vmax.f32 %v997_v62, 0.0 }
  0xdb   : > { %v825_v2 = vpop.f32.mrf.mxu0  ;;  %v1001_v5 = vpop.f32.mrf.mxu1 }
  0xdc   : > { %1245 = vst [vmem:[#allocation2 + $0x8] sm:$0xff] %v1160_v63  ;;  %v826_v4 = vadd.f32 %v7373_v49, %v825_v2  ;;  %1289 = vst [vmem:[#allocation2 + $0x168] sm:$0xff] %v1204_v3  ;;  %v1002_v7 = vadd.f32 %v7373_v49, %v1001_v5 }
  0xdd   : > { %v6009_v6 = vpop.f32.mrf.mxu0  ;;  %v6097_v9 = vpop.f32.mrf.mxu1 }
  0xde   : > { %v1161_v8 = vmax.f32 %v826_v4, 0.0  ;;  %v1205_v11 = vmax.f32 %v1002_v7, 0.0 }
  0xdf   : > { %v828_v10 = vpop.f32.mrf.mxu0  ;;  %v1004_v13 = vpop.f32.mrf.mxu1 }
  0xe0   : > { %1246 = vst [vmem:[#allocation2 + $0x10] sm:$0xff] %v1161_v8  ;;  %v829_v12 = vadd.f32 %v7373_v49, %v828_v10  ;;  %1290 = vst [vmem:[#allocation2 + $0x170] sm:$0xff] %v1205_v11  ;;  %v1005_v15 = vadd.f32 %v7373_v49, %v1004_v13 }
  0xe1   : > { %v6010_v14 = vpop.f32.mrf.mxu0  ;;  %v6098_v17 = vpop.f32.mrf.mxu1 }
  0xe2   : > { %v1162_v16 = vmax.f32 %v829_v12, 0.0  ;;  %v1206_v19 = vmax.f32 %v1005_v15, 0.0 }
  0xe3   : > { %v833_v18 = vpop.f32.mrf.mxu0  ;;  %v1009_v21 = vpop.f32.mrf.mxu1 }
  0xe4   : > { %1247 = vst [vmem:[#allocation2 + $0x18] sm:$0xff] %v1162_v16  ;;  %v834_v20 = vadd.f32 %v7373_v49, %v833_v18  ;;  %1291 = vst [vmem:[#allocation2 + $0x178] sm:$0xff] %v1206_v19  ;;  %v1010_v23 = vadd.f32 %v7373_v49, %v1009_v21 }
  0xe5   : > { %v6013_v22 = vpop.f32.mrf.mxu0  ;;  %v6101_v25 = vpop.f32.mrf.mxu1 }
  0xe6   : > { %v1163_v24 = vmax.f32 %v834_v20, 0.0  ;;  %v1207_v27 = vmax.f32 %v1010_v23, 0.0 }
  0xe7   : > { %v836_v26 = vpop.f32.mrf.mxu0  ;;  %v1012_v29 = vpop.f32.mrf.mxu1 }
  0xe8   : > { %1248 = vst [vmem:[#allocation2 + $0x20] sm:$0xff] %v1163_v24  ;;  %v837_v28 = vadd.f32 %v7373_v49, %v836_v26  ;;  %1292 = vst [vmem:[#allocation2 + $0x180] sm:$0xff] %v1207_v27  ;;  %v1013_v31 = vadd.f32 %v7373_v49, %v1012_v29  ;;  %v7403_v24 = vld [vmem:[%s8443_s4] ss:$0 sm:$0xff] }
  0xe9   : > { %v6014_v30 = vpop.f32.mrf.mxu0  ;;  %v6102_v33 = vpop.f32.mrf.mxu1 }
  0xea   : > { %v1164_v32 = vmax.f32 %v837_v28, 0.0  ;;  %v1208_v35 = vmax.f32 %v1013_v31, 0.0 }
  0xeb   : > { %v841_v34 = vpop.f32.mrf.mxu0  ;;  %v1017_v37 = vpop.f32.mrf.mxu1 }
  0xec   : > { %1249 = vst [vmem:[#allocation2 + $0x28] sm:$0xff] %v1164_v32  ;;  %v842_v36 = vadd.f32 %v7373_v49, %v841_v34  ;;  %1293 = vst [vmem:[#allocation2 + $0x188] sm:$0xff] %v1208_v35  ;;  %v1018_v39 = vadd.f32 %v7373_v49, %v1017_v37 }
  0xed   : > { %v6017_v38 = vpop.f32.mrf.mxu0  ;;  %v6105_v41 = vpop.f32.mrf.mxu1 }
  0xee   : > { %v1165_v40 = vmax.f32 %v842_v36, 0.0  ;;  %v1209_v43 = vmax.f32 %v1018_v39, 0.0 }
  0xef   : > { %v844_v42 = vpop.f32.mrf.mxu0  ;;  %v1020_v45 = vpop.f32.mrf.mxu1 }
  0xf0   : > { %1250 = vst [vmem:[#allocation2 + $0x30] sm:$0xff] %v1165_v40  ;;  %v845_v44 = vadd.f32 %v7373_v49, %v844_v42  ;;  %1294 = vst [vmem:[#allocation2 + $0x190] sm:$0xff] %v1209_v43  ;;  %v1021_v47 = vadd.f32 %v7373_v49, %v1020_v45 }
  0xf1   : > { %v6018_v46 = vpop.f32.mrf.mxu0  ;;  %v6106_v50 = vpop.f32.mrf.mxu1 }
  0xf2   : > { %v1166_v48 = vmax.f32 %v845_v44, 0.0  ;;  %v1210_v52 = vmax.f32 %v1021_v47, 0.0 }
  0xf3   : > { %v849_v51 = vpop.f32.mrf.mxu0  ;;  %v1025_v54 = vpop.f32.mrf.mxu1 }
  0xf4   : > { %1251 = vst [vmem:[#allocation2 + $0x38] sm:$0xff] %v1166_v48  ;;  %v850_v53 = vadd.f32 %v7373_v49, %v849_v51  ;;  %1295 = vst [vmem:[#allocation2 + $0x198] sm:$0xff] %v1210_v52  ;;  %v1026_v56 = vadd.f32 %v7373_v49, %v1025_v54 }
  0xf5   : > { %v6021_v55 = vpop.f32.mrf.mxu0  ;;  %v6109_v58 = vpop.f32.mrf.mxu1 }
  0xf6   : > { %v1167_v57 = vmax.f32 %v850_v53, 0.0  ;;  %v1211_v60 = vmax.f32 %v1026_v56, 0.0 }
  0xf7   : > { %v852_v59 = vpop.f32.mrf.mxu0  ;;  %v1028_v62 = vpop.f32.mrf.mxu1 }
  0xf8   : > { %1252 = vst [vmem:[#allocation2 + $0x40] sm:$0xff] %v1167_v57  ;;  %v853_v61 = vadd.f32 %v7373_v49, %v852_v59  ;;  %1296 = vst [vmem:[#allocation2 + $0x1a0] sm:$0xff] %v1211_v60  ;;  %v1029_v1 = vadd.f32 %v7373_v49, %v1028_v62 }
  0xf9   : > { %v6022_v63 = vpop.f32.mrf.mxu0  ;;  %v6110_v3 = vpop.f32.mrf.mxu1 }
  0xfa   : > { %v1168_v2 = vmax.f32 %v853_v61, 0.0  ;;  %v1212_v5 = vmax.f32 %v1029_v1, 0.0 }
  0xfb   : > { %v857_v4 = vpop.f32.mrf.mxu0  ;;  %v1033_v7 = vpop.f32.mrf.mxu1 }
  0xfc   : > { %1253 = vst [vmem:[#allocation2 + $0x48] sm:$0xff] %v1168_v2  ;;  %v858_v6 = vadd.f32 %v7373_v49, %v857_v4  ;;  %1297 = vst [vmem:[#allocation2 + $0x1a8] sm:$0xff] %v1212_v5  ;;  %v1034_v9 = vadd.f32 %v7373_v49, %v1033_v7 }
  0xfd   : > { %v6025_v8 = vpop.f32.mrf.mxu0  ;;  %v6113_v11 = vpop.f32.mrf.mxu1 }
  0xfe   : > { %v1169_v10 = vmax.f32 %v858_v6, 0.0  ;;  %v1213_v13 = vmax.f32 %v1034_v9, 0.0 }
  0xff   : > { %v860_v12 = vpop.f32.mrf.mxu0  ;;  %v1036_v15 = vpop.f32.mrf.mxu1 }
 0x100   : > { %1254 = vst [vmem:[#allocation2 + $0x50] sm:$0xff] %v1169_v10  ;;  %v861_v14 = vadd.f32 %v7373_v49, %v860_v12  ;;  %1298 = vst [vmem:[#allocation2 + $0x1b0] sm:$0xff] %v1213_v13  ;;  %v1037_v17 = vadd.f32 %v7373_v49, %v1036_v15 }
 0x101   : > { %v6026_v16 = vpop.f32.mrf.mxu0  ;;  %v6114_v19 = vpop.f32.mrf.mxu1 }
 0x102   : > { %v1170_v18 = vmax.f32 %v861_v14, 0.0  ;;  %v1214_v21 = vmax.f32 %v1037_v17, 0.0 }
 0x103   : > { %v865_v20 = vpop.f32.mrf.mxu0  ;;  %v1041_v23 = vpop.f32.mrf.mxu1 }
 0x104   : > { %1255 = vst [vmem:[#allocation2 + $0x58] sm:$0xff] %v1170_v18  ;;  %v866_v22 = vadd.f32 %v7373_v49, %v865_v20  ;;  %1299 = vst [vmem:[#allocation2 + $0x1b8] sm:$0xff] %v1214_v21  ;;  %v1042_v26 = vadd.f32 %v7373_v49, %v1041_v23 }
 0x105   : > { %v6029_v25 = vpop.f32.mrf.mxu0  ;;  %v6117_v28 = vpop.f32.mrf.mxu1 }
 0x106   : > { %v1171_v27 = vmax.f32 %v866_v22, 0.0  ;;  %v1215_v30 = vmax.f32 %v1042_v26, 0.0 }
 0x107   : > { %v868_v29 = vpop.f32.mrf.mxu0  ;;  %v1044_v32 = vpop.f32.mrf.mxu1 }
 0x108   : > { %1256 = vst [vmem:[#allocation2 + $0x60] sm:$0xff] %v1171_v27  ;;  %v869_v31 = vadd.f32 %v7373_v49, %v868_v29  ;;  %1300 = vst [vmem:[#allocation2 + $0x1c0] sm:$0xff] %v1215_v30  ;;  %v1045_v34 = vadd.f32 %v7373_v49, %v1044_v32 }
 0x109   : > { %v6030_v33 = vpop.f32.mrf.mxu0  ;;  %v6118_v36 = vpop.f32.mrf.mxu1 }
 0x10a   : > { %v1172_v35 = vmax.f32 %v869_v31, 0.0  ;;  %v1216_v38 = vmax.f32 %v1045_v34, 0.0 }
 0x10b   : > { %v873_v37 = vpop.f32.mrf.mxu0  ;;  %v1049_v40 = vpop.f32.mrf.mxu1 }
 0x10c   : > { %1257 = vst [vmem:[#allocation2 + $0x68] sm:$0xff] %v1172_v35  ;;  %v874_v39 = vadd.f32 %v7373_v49, %v873_v37  ;;  %1301 = vst [vmem:[#allocation2 + $0x1c8] sm:$0xff] %v1216_v38  ;;  %v1050_v42 = vadd.f32 %v7373_v49, %v1049_v40 }
 0x10d   : > { %v6033_v41 = vpop.f32.mrf.mxu0  ;;  %v6121_v44 = vpop.f32.mrf.mxu1 }
 0x10e   : > { %v1173_v43 = vmax.f32 %v874_v39, 0.0  ;;  %v1217_v46 = vmax.f32 %v1050_v42, 0.0 }
 0x10f   : > { %v876_v45 = vpop.f32.mrf.mxu0  ;;  %v1052_v48 = vpop.f32.mrf.mxu1 }
 0x110   : > { %1258 = vst [vmem:[#allocation2 + $0x70] sm:$0xff] %v1173_v43  ;;  %v877_v47 = vadd.f32 %v7373_v49, %v876_v45  ;;  %1302 = vst [vmem:[#allocation2 + $0x1d0] sm:$0xff] %v1217_v46  ;;  %v1053_v51 = vadd.f32 %v7373_v49, %v1052_v48 }
 0x111   : > { %v6034_v50 = vpop.f32.mrf.mxu0  ;;  %v6122_v53 = vpop.f32.mrf.mxu1 }
 0x112   : > { %v1174_v52 = vmax.f32 %v877_v47, 0.0  ;;  %v1218_v55 = vmax.f32 %v1053_v51, 0.0 }
 0x113   : > { %v881_v54 = vpop.f32.mrf.mxu0  ;;  %v1057_v57 = vpop.f32.mrf.mxu1 }
 0x114   : > { %1259 = vst [vmem:[#allocation2 + $0x78] sm:$0xff] %v1174_v52  ;;  %v882_v56 = vadd.f32 %v7373_v49, %v881_v54  ;;  %1303 = vst [vmem:[#allocation2 + $0x1d8] sm:$0xff] %v1218_v55  ;;  %v1058_v59 = vadd.f32 %v7373_v49, %v1057_v57 }
 0x115   : > { %v6037_v58 = vpop.f32.mrf.mxu0  ;;  %v6125_v61 = vpop.f32.mrf.mxu1 }
 0x116   : > { %v1175_v60 = vmax.f32 %v882_v56, 0.0  ;;  %v1219_v63 = vmax.f32 %v1058_v59, 0.0 }
 0x117   : > { %v884_v62 = vpop.f32.mrf.mxu0  ;;  %v1060_v2 = vpop.f32.mrf.mxu1 }
 0x118   : > { %1260 = vst [vmem:[#allocation2 + $0x80] sm:$0xff] %v1175_v60  ;;  %v885_v1 = vadd.f32 %v7373_v49, %v884_v62  ;;  %1304 = vst [vmem:[#allocation2 + $0x1e0] sm:$0xff] %v1219_v63  ;;  %v1061_v4 = vadd.f32 %v7373_v49, %v1060_v2 }
 0x119   : > { %v6038_v3 = vpop.f32.mrf.mxu0  ;;  %v6126_v6 = vpop.f32.mrf.mxu1 }
 0x11a   : > { %v1176_v5 = vmax.f32 %v885_v1, 0.0  ;;  %v1220_v8 = vmax.f32 %v1061_v4, 0.0 }
 0x11b   : > { %v889_v7 = vpop.f32.mrf.mxu0  ;;  %v1065_v10 = vpop.f32.mrf.mxu1 }
 0x11c   : > { %1261 = vst [vmem:[#allocation2 + $0x88] sm:$0xff] %v1176_v5  ;;  %v890_v9 = vadd.f32 %v7373_v49, %v889_v7  ;;  %1305 = vst [vmem:[#allocation2 + $0x1e8] sm:$0xff] %v1220_v8  ;;  %v1066_v12 = vadd.f32 %v7373_v49, %v1065_v10 }
 0x11d   : > { %v6041_v11 = vpop.f32.mrf.mxu0  ;;  %v6129_v14 = vpop.f32.mrf.mxu1 }
 0x11e   : > { %v1177_v13 = vmax.f32 %v890_v9, 0.0  ;;  %v1221_v16 = vmax.f32 %v1066_v12, 0.0 }
 0x11f   : > { %v892_v15 = vpop.f32.mrf.mxu0  ;;  %v1068_v18 = vpop.f32.mrf.mxu1 }
 0x120   : > { %1262 = vst [vmem:[#allocation2 + $0x90] sm:$0xff] %v1177_v13  ;;  %v893_v17 = vadd.f32 %v7373_v49, %v892_v15  ;;  %1306 = vst [vmem:[#allocation2 + $0x1f0] sm:$0xff] %v1221_v16  ;;  %v1069_v20 = vadd.f32 %v7373_v49, %v1068_v18 }
 0x121   : > { %v6042_v19 = vpop.f32.mrf.mxu0  ;;  %v6130_v22 = vpop.f32.mrf.mxu1 }
 0x122   : > { %v1178_v21 = vmax.f32 %v893_v17, 0.0  ;;  %v1222_v25 = vmax.f32 %v1069_v20, 0.0 }
 0x123   : > { %v897_v23 = vpop.f32.mrf.mxu0  ;;  %v1073_v27 = vpop.f32.mrf.mxu1 }
 0x124   : > { %1263 = vst [vmem:[#allocation2 + $0x98] sm:$0xff] %v1178_v21  ;;  %v898_v26 = vadd.f32 %v7373_v49, %v897_v23  ;;  %1307 = vst [vmem:[#allocation2 + $0x1f8] sm:$0xff] %v1222_v25  ;;  %v1074_v29 = vadd.f32 %v7373_v49, %v1073_v27 }
 0x125   : > { %v6045_v28 = vpop.f32.mrf.mxu0  ;;  %v6133_v31 = vpop.f32.mrf.mxu1 }
 0x126   : > { %v1179_v30 = vmax.f32 %v898_v26, 0.0  ;;  %v1223_v33 = vmax.f32 %v1074_v29, 0.0 }
 0x127   : > { %v900_v32 = vpop.f32.mrf.mxu0  ;;  %v1076_v35 = vpop.f32.mrf.mxu1 }
 0x128   : > { %1264 = vst [vmem:[#allocation2 + $0xa0] sm:$0xff] %v1179_v30  ;;  %v901_v34 = vadd.f32 %v7373_v49, %v900_v32  ;;  %1308 = vst [vmem:[#allocation2 + $0x200] sm:$0xff] %v1223_v33  ;;  %v1077_v37 = vadd.f32 %v7373_v49, %v1076_v35 }
 0x129   : > { %v6046_v36 = vpop.f32.mrf.mxu0  ;;  %v6134_v39 = vpop.f32.mrf.mxu1 }
 0x12a   : > { %v1180_v38 = vmax.f32 %v901_v34, 0.0  ;;  %v1224_v41 = vmax.f32 %v1077_v37, 0.0 }
 0x12b   : > { %v905_v40 = vpop.f32.mrf.mxu0  ;;  %v1081_v43 = vpop.f32.mrf.mxu1 }
 0x12c   : > { %1265 = vst [vmem:[#allocation2 + $0xa8] sm:$0xff] %v1180_v38  ;;  %v906_v42 = vadd.f32 %v7373_v49, %v905_v40  ;;  %1309 = vst [vmem:[#allocation2 + $0x208] sm:$0xff] %v1224_v41  ;;  %v1082_v45 = vadd.f32 %v7373_v49, %v1081_v43 }
 0x12d   : > { %v6049_v44 = vpop.f32.mrf.mxu0  ;;  %v6137_v47 = vpop.f32.mrf.mxu1 }
 0x12e   : > { %v1181_v46 = vmax.f32 %v906_v42, 0.0  ;;  %v1225_v50 = vmax.f32 %v1082_v45, 0.0 }
 0x12f   : > { %v908_v48 = vpop.f32.mrf.mxu0  ;;  %v1084_v52 = vpop.f32.mrf.mxu1 }
 0x130   : > { %1266 = vst [vmem:[#allocation2 + $0xb0] sm:$0xff] %v1181_v46  ;;  %v909_v51 = vadd.f32 %v7373_v49, %v908_v48  ;;  %1310 = vst [vmem:[#allocation2 + $0x210] sm:$0xff] %v1225_v50  ;;  %v1085_v54 = vadd.f32 %v7373_v49, %v1084_v52 }
 0x131   : > { %v6050_v53 = vpop.f32.mrf.mxu0  ;;  %v6138_v56 = vpop.f32.mrf.mxu1 }
 0x132   : > { %v1182_v55 = vmax.f32 %v909_v51, 0.0  ;;  %v1226_v58 = vmax.f32 %v1085_v54, 0.0 }
 0x133   : > { %v913_v57 = vpop.f32.mrf.mxu0  ;;  %v1089_v60 = vpop.f32.mrf.mxu1 }
 0x134   : > { %1267 = vst [vmem:[#allocation2 + $0xb8] sm:$0xff] %v1182_v55  ;;  %v914_v59 = vadd.f32 %v7373_v49, %v913_v57  ;;  %1311 = vst [vmem:[#allocation2 + $0x218] sm:$0xff] %v1226_v58  ;;  %v1090_v62 = vadd.f32 %v7373_v49, %v1089_v60 }
 0x135   : > { %v6053_v61 = vpop.f32.mrf.mxu0  ;;  %v6141_v1 = vpop.f32.mrf.mxu1 }
 0x136   : > { %v1183_v63 = vmax.f32 %v914_v59, 0.0  ;;  %v1227_v3 = vmax.f32 %v1090_v62, 0.0 }
 0x137   : > { %v916_v2 = vpop.f32.mrf.mxu0  ;;  %v1092_v5 = vpop.f32.mrf.mxu1 }
 0x138   : > { %1268 = vst [vmem:[#allocation2 + $0xc0] sm:$0xff] %v1183_v63  ;;  %v917_v4 = vadd.f32 %v7373_v49, %v916_v2  ;;  %1312 = vst [vmem:[#allocation2 + $0x220] sm:$0xff] %v1227_v3  ;;  %v1093_v7 = vadd.f32 %v7373_v49, %v1092_v5 }
 0x139   : > { %v6054_v6 = vpop.f32.mrf.mxu0  ;;  %v6142_v9 = vpop.f32.mrf.mxu1 }
 0x13a   : > { %v1184_v8 = vmax.f32 %v917_v4, 0.0  ;;  %v1228_v11 = vmax.f32 %v1093_v7, 0.0 }
 0x13b   : > { %v921_v10 = vpop.f32.mrf.mxu0  ;;  %v1097_v13 = vpop.f32.mrf.mxu1 }
 0x13c   : > { %1269 = vst [vmem:[#allocation2 + $0xc8] sm:$0xff] %v1184_v8  ;;  %v922_v12 = vadd.f32 %v7373_v49, %v921_v10  ;;  %1313 = vst [vmem:[#allocation2 + $0x228] sm:$0xff] %v1228_v11  ;;  %v1098_v15 = vadd.f32 %v7373_v49, %v1097_v13 }
 0x13d   : > { %v6057_v14 = vpop.f32.mrf.mxu0  ;;  %v6145_v17 = vpop.f32.mrf.mxu1 }
 0x13e   : > { %v1185_v16 = vmax.f32 %v922_v12, 0.0  ;;  %v1229_v19 = vmax.f32 %v1098_v15, 0.0 }
 0x13f   : > { %v924_v18 = vpop.f32.mrf.mxu0  ;;  %v1100_v21 = vpop.f32.mrf.mxu1 }
 0x140   : > { %1270 = vst [vmem:[#allocation2 + $0xd0] sm:$0xff] %v1185_v16  ;;  %v925_v20 = vadd.f32 %v7373_v49, %v924_v18  ;;  %1314 = vst [vmem:[#allocation2 + $0x230] sm:$0xff] %v1229_v19  ;;  %v1101_v23 = vadd.f32 %v7373_v49, %v1100_v21 }
 0x141   : > { %v6058_v22 = vpop.f32.mrf.mxu0  ;;  %v6146_v26 = vpop.f32.mrf.mxu1 }
 0x142   : > { %v1186_v25 = vmax.f32 %v925_v20, 0.0  ;;  %v1230_v28 = vmax.f32 %v1101_v23, 0.0 }
 0x143   : > { %v929_v27 = vpop.f32.mrf.mxu0  ;;  %v1105_v30 = vpop.f32.mrf.mxu1 }
 0x144   : > { %1271 = vst [vmem:[#allocation2 + $0xd8] sm:$0xff] %v1186_v25  ;;  %v930_v29 = vadd.f32 %v7373_v49, %v929_v27  ;;  %1315 = vst [vmem:[#allocation2 + $0x238] sm:$0xff] %v1230_v28  ;;  %v1106_v32 = vadd.f32 %v7373_v49, %v1105_v30 }
 0x145   : > { %v6061_v31 = vpop.f32.mrf.mxu0  ;;  %v6149_v34 = vpop.f32.mrf.mxu1 }
 0x146   : > { %v1187_v33 = vmax.f32 %v930_v29, 0.0  ;;  %v1231_v36 = vmax.f32 %v1106_v32, 0.0 }
 0x147   : > { %v932_v35 = vpop.f32.mrf.mxu0  ;;  %v1108_v38 = vpop.f32.mrf.mxu1 }
 0x148   : > { %1272 = vst [vmem:[#allocation2 + $0xe0] sm:$0xff] %v1187_v33  ;;  %v933_v37 = vadd.f32 %v7373_v49, %v932_v35  ;;  %1316 = vst [vmem:[#allocation2 + $0x240] sm:$0xff] %v1231_v36  ;;  %v1109_v40 = vadd.f32 %v7373_v49, %v1108_v38 }
 0x149   : > { %v6062_v39 = vpop.f32.mrf.mxu0  ;;  %v6150_v42 = vpop.f32.mrf.mxu1 }
 0x14a   : > { %v1188_v41 = vmax.f32 %v933_v37, 0.0  ;;  %v1232_v44 = vmax.f32 %v1109_v40, 0.0 }
 0x14b   : > { %v937_v43 = vpop.f32.mrf.mxu0  ;;  %v1113_v46 = vpop.f32.mrf.mxu1 }
 0x14c   : > { %1273 = vst [vmem:[#allocation2 + $0xe8] sm:$0xff] %v1188_v41  ;;  %v938_v45 = vadd.f32 %v7373_v49, %v937_v43  ;;  %1317 = vst [vmem:[#allocation2 + $0x248] sm:$0xff] %v1232_v44  ;;  %v1114_v48 = vadd.f32 %v7373_v49, %v1113_v46 }
 0x14d   : > { %v6065_v47 = vpop.f32.mrf.mxu0  ;;  %v6153_v51 = vpop.f32.mrf.mxu1 }
 0x14e   : > { %v1189_v50 = vmax.f32 %v938_v45, 0.0  ;;  %v1233_v53 = vmax.f32 %v1114_v48, 0.0 }
 0x14f   : > { %v940_v52 = vpop.f32.mrf.mxu0  ;;  %v1116_v55 = vpop.f32.mrf.mxu1 }
 0x150   : > { %1274 = vst [vmem:[#allocation2 + $0xf0] sm:$0xff] %v1189_v50  ;;  %v941_v54 = vadd.f32 %v7373_v49, %v940_v52  ;;  %1318 = vst [vmem:[#allocation2 + $0x250] sm:$0xff] %v1233_v53  ;;  %v1117_v57 = vadd.f32 %v7373_v49, %v1116_v55 }
 0x151   : > { %v6066_v56 = vpop.f32.mrf.mxu0  ;;  %v6154_v59 = vpop.f32.mrf.mxu1 }
 0x152   : > { %v1190_v58 = vmax.f32 %v941_v54, 0.0  ;;  %v1234_v61 = vmax.f32 %v1117_v57, 0.0 }
 0x153   : > { %v945_v60 = vpop.f32.mrf.mxu0  ;;  %v1121_v63 = vpop.f32.mrf.mxu1 }
 0x154   : > { %1275 = vst [vmem:[#allocation2 + $0xf8] sm:$0xff] %v1190_v58  ;;  %v946_v62 = vadd.f32 %v7373_v49, %v945_v60  ;;  %1319 = vst [vmem:[#allocation2 + $0x258] sm:$0xff] %v1234_v61  ;;  %v1122_v2 = vadd.f32 %v7373_v49, %v1121_v63 }
 0x155   : > { %v6069_v1 = vpop.f32.mrf.mxu0  ;;  %v6157_v4 = vpop.f32.mrf.mxu1 }
 0x156   : > { %v1191_v3 = vmax.f32 %v946_v62, 0.0  ;;  %v1235_v6 = vmax.f32 %v1122_v2, 0.0 }
 0x157   : > { %v948_v5 = vpop.f32.mrf.mxu0  ;;  %v1124_v8 = vpop.f32.mrf.mxu1 }
 0x158   : > { %1276 = vst [vmem:[#allocation2 + $0x100] sm:$0xff] %v1191_v3  ;;  %v949_v7 = vadd.f32 %v7373_v49, %v948_v5  ;;  %1320 = vst [vmem:[#allocation2 + $0x260] sm:$0xff] %v1235_v6  ;;  %v1125_v10 = vadd.f32 %v7373_v49, %v1124_v8 }
 0x159   : > { %v6070_v9 = vpop.f32.mrf.mxu0  ;;  %v6158_v12 = vpop.f32.mrf.mxu1 }
 0x15a   : > { %v1192_v11 = vmax.f32 %v949_v7, 0.0  ;;  %v1236_v14 = vmax.f32 %v1125_v10, 0.0 }
 0x15b   : > { %v953_v13 = vpop.f32.mrf.mxu0  ;;  %v1129_v16 = vpop.f32.mrf.mxu1 }
 0x15c   : > { %1277 = vst [vmem:[#allocation2 + $0x108] sm:$0xff] %v1192_v11  ;;  %v954_v15 = vadd.f32 %v7373_v49, %v953_v13  ;;  %1321 = vst [vmem:[#allocation2 + $0x268] sm:$0xff] %v1236_v14  ;;  %v1130_v18 = vadd.f32 %v7373_v49, %v1129_v16 }
 0x15d   : > { %v6073_v17 = vpop.f32.mrf.mxu0  ;;  %v6161_v20 = vpop.f32.mrf.mxu1 }
 0x15e   : > { %v1193_v19 = vmax.f32 %v954_v15, 0.0  ;;  %v1237_v22 = vmax.f32 %v1130_v18, 0.0 }
 0x15f   : > { %v956_v21 = vpop.f32.mrf.mxu0  ;;  %v1132_v25 = vpop.f32.mrf.mxu1 }
 0x160   : > { %1278 = vst [vmem:[#allocation2 + $0x110] sm:$0xff] %v1193_v19  ;;  %v957_v23 = vadd.f32 %v7373_v49, %v956_v21  ;;  %1322 = vst [vmem:[#allocation2 + $0x270] sm:$0xff] %v1237_v22  ;;  %v1133_v27 = vadd.f32 %v7373_v49, %v1132_v25 }
 0x161   : > { %v6074_v26 = vpop.f32.mrf.mxu0  ;;  %v6162_v29 = vpop.f32.mrf.mxu1 }
 0x162   : > { %v1194_v28 = vmax.f32 %v957_v23, 0.0  ;;  %v1238_v31 = vmax.f32 %v1133_v27, 0.0 }
 0x163   : > { %v961_v30 = vpop.f32.mrf.mxu0  ;;  %v1137_v33 = vpop.f32.mrf.mxu1 }
 0x164   : > { %1279 = vst [vmem:[#allocation2 + $0x118] sm:$0xff] %v1194_v28  ;;  %v962_v32 = vadd.f32 %v7373_v49, %v961_v30  ;;  %1323 = vst [vmem:[#allocation2 + $0x278] sm:$0xff] %v1238_v31  ;;  %v1138_v35 = vadd.f32 %v7373_v49, %v1137_v33 }
 0x165   : > { %v6077_v34 = vpop.f32.mrf.mxu0  ;;  %v6165_v37 = vpop.f32.mrf.mxu1 }
 0x166   : > { %v1195_v36 = vmax.f32 %v962_v32, 0.0  ;;  %v1239_v39 = vmax.f32 %v1138_v35, 0.0 }
 0x167   : > { %v964_v38 = vpop.f32.mrf.mxu0  ;;  %v1140_v41 = vpop.f32.mrf.mxu1 }
 0x168   : > { %1280 = vst [vmem:[#allocation2 + $0x120] sm:$0xff] %v1195_v36  ;;  %v965_v40 = vadd.f32 %v7373_v49, %v964_v38  ;;  %1324 = vst [vmem:[#allocation2 + $0x280] sm:$0xff] %v1239_v39  ;;  %v1141_v43 = vadd.f32 %v7373_v49, %v1140_v41 }
 0x169   : > { %v6078_v42 = vpop.f32.mrf.mxu0  ;;  %v6166_v45 = vpop.f32.mrf.mxu1 }
 0x16a   : > { %v1196_v44 = vmax.f32 %v965_v40, 0.0  ;;  %v1240_v47 = vmax.f32 %v1141_v43, 0.0 }
 0x16b   : > { %v969_v46 = vpop.f32.mrf.mxu0  ;;  %v1145_v50 = vpop.f32.mrf.mxu1 }
 0x16c   : > { %1281 = vst [vmem:[#allocation2 + $0x128] sm:$0xff] %v1196_v44  ;;  %v970_v48 = vadd.f32 %v7373_v49, %v969_v46  ;;  %1325 = vst [vmem:[#allocation2 + $0x288] sm:$0xff] %v1240_v47  ;;  %v1146_v52 = vadd.f32 %v7373_v49, %v1145_v50 }
 0x16d   : > { %v6081_v51 = vpop.f32.mrf.mxu0  ;;  %v6169_v54 = vpop.f32.mrf.mxu1 }
 0x16e   : > { %v1197_v53 = vmax.f32 %v970_v48, 0.0  ;;  %v1241_v56 = vmax.f32 %v1146_v52, 0.0 }
 0x16f   : > { %v972_v55 = vpop.f32.mrf.mxu0  ;;  %v1148_v58 = vpop.f32.mrf.mxu1 }
 0x170   : > { %1282 = vst [vmem:[#allocation2 + $0x130] sm:$0xff] %v1197_v53  ;;  %v973_v57 = vadd.f32 %v7373_v49, %v972_v55  ;;  %1326 = vst [vmem:[#allocation2 + $0x290] sm:$0xff] %v1241_v56  ;;  %v1149_v60 = vadd.f32 %v7373_v49, %v1148_v58 }
 0x171   : > { %v6082_v59 = vpop.f32.mrf.mxu0  ;;  %v6170_v62 = vpop.f32.mrf.mxu1 }
 0x172   : > { %v1198_v61 = vmax.f32 %v973_v57, 0.0  ;;  %v1242_v1 = vmax.f32 %v1149_v60, 0.0 }
 0x173   : > { %v977_v63 = vpop.f32.mrf.mxu0  ;;  %v1153_v3 = vpop.f32.mrf.mxu1 }
 0x174   : > { %1283 = vst [vmem:[#allocation2 + $0x138] sm:$0xff] %v1198_v61  ;;  %v978_v2 = vadd.f32 %v7373_v49, %v977_v63  ;;  %1327 = vst [vmem:[#allocation2 + $0x298] sm:$0xff] %v1242_v1  ;;  %v1154_v5 = vadd.f32 %v7373_v49, %v1153_v3 }
 0x175   : > { %v6085_v4 = vpop.f32.mrf.mxu0  ;;  %v6173_v7 = vpop.f32.mrf.mxu1 }
 0x176   : > { %v1199_v6 = vmax.f32 %v978_v2, 0.0  ;;  %v1243_v9 = vmax.f32 %v1154_v5, 0.0 }
 0x177   : > { %v980_v8 = vpop.f32.mrf.mxu0  ;;  %v1156_v11 = vpop.f32.mrf.mxu1 }
 0x178   : > { %1284 = vst [vmem:[#allocation2 + $0x140] sm:$0xff] %v1199_v6  ;;  %v981_v10 = vadd.f32 %v7373_v49, %v980_v8  ;;  %1328 = vst [vmem:[#allocation2 + $0x2a0] sm:$0xf] %v1243_v9 }
 0x179   : > { %v6086_v12 = vpop.f32.mrf.mxu0  ;;  %v6174_v14 = vpop.f32.mrf.mxu1 }
 0x17a   : > { %v1200_v13 = vmax.f32 %v981_v10, 0.0 }
 0x17b   : > { %v985_v15 = vpop.f32.mrf.mxu0 }
 0x17c   : > { %1285 = vst [vmem:[#allocation2 + $0x148] sm:$0xff] %v1200_v13  ;;  %v986_v16 = vadd.f32 %v7373_v49, %v985_v15 }
 0x17d   : > { %v6089_v17 = vpop.f32.mrf.mxu0 }
 0x17e   : > { %v1201_v18 = vmax.f32 %v986_v16, 0.0 }
 0x17f   : > { %v988_v19 = vpop.f32.mrf.mxu0 }
 0x180   : > { %1286 = vst [vmem:[#allocation2 + $0x150] sm:$0xff] %v1201_v18  ;;  %v989_v20 = vadd.f32 %v7373_v49, %v988_v19 }
 0x181   : > { %v6090_v21 = vpop.f32.mrf.mxu0 }
 0x182   : > { %v1202_v22 = vmax.f32 %v989_v20, 0.0 }
 0x184   : > { %1287 = vst [vmem:[#allocation2 + $0x158] sm:$0xff] %v1202_v22 }
 0x185 LB: >> { %v6849_v23 = vld [vmem:[%s8442_s3 + $0x78] sm:$0xff]   ;;  %v6851_v49 = vld [vmem:[%s8442_s3 + $0x70] sm:$0xff]   ;;  %v6853_v27 = vld [vmem:[%s8442_s3 + $0x68] sm:$0xff]   ;;  %s1336_s23 = smul.u32 26, %s7095_s25  ;;  %s7095_s25 = sphi %s7465_s25, %s1335_s25  }
 0x186   : >> { %v6850_v25 = vld [vmem:[%s8442_s3 + $0x38] sm:$0xff]   ;;  %6175 = vmatprep.subr.bf16.mxu0 %v6849_v23  ;;  %v6852_v26 = vld [vmem:[%s8442_s3 + $0x30] sm:$0xff]   ;;  %v6854_v28 = vld [vmem:[%s8442_s3 + $0x28] sm:$0xff]  }
 0x187   : >> { %6195 = vmatprep.subr.bf16.mxu1 %v6850_v25  ;;  %6176 = vmatpush3.bf16.msra.mxu0 %v6849_v23  ;;  %v6855_v29 = vld [vmem:[%s8442_s3 + $0x60] sm:$0xff]   ;;  %v6857_v31 = vld [vmem:[%s8442_s3 + $0x58] sm:$0xff]   ;;  %v6859_v33 = vld [vmem:[%s8442_s3 + $0x50] sm:$0xff]   ;;  %s7504_s11 = scalar_lea.vmem [#allocation2], %s1336_s23 }
 0x188   : >> { %6196 = vmatpush3.bf16.msra.mxu1 %v6850_v25  ;;  %6177 = vmatprep.subr.bf16.mxu0 %v6851_v49  ;;  %v6856_v30 = vld [vmem:[%s8442_s3 + $0x20] sm:$0xff]   ;;  %v6858_v32 = vld [vmem:[%s8442_s3 + $0x18] sm:$0xff]   ;;  %v6860_v37 = vld [vmem:[%s8442_s3 + $0x10] sm:$0xff]  }
 0x189   : >> { %6197 = vmatprep.subr.bf16.mxu1 %v6852_v26  ;;  %v6861_v41 = vld [vmem:[%s8442_s3 + $0x48] sm:$0xff]   ;;  %v6863_v43 = vld [vmem:[%s8442_s3 + $0x40] sm:$0xff]   ;;  %v6865_v47 = vld [vmem:[%s8442_s3 + $0xb8] sm:$0xff]  }
 0x18a   : >> { %v6862_v42 = vld [vmem:[%s8442_s3 + $0x8] sm:$0xff]   ;;  %v6864_v44 = vld [vmem:[%s8442_s3] sm:$0xff]   ;;  %v6866_v48 = vld [vmem:[%s8442_s3 + $0xf8] sm:$0xff]  }
 0x18b   : >> { %6178 = vmatpush3.bf16.msra.mxu0 %v6851_v49  ;;  %v5025_v34 = vld [vmem:[%s7504_s11 + $0x1] sm:$0xff]  ;;  %v5026_v35 = vld [vmem:[%s7504_s11 + $0x9] sm:$0xff]  ;;  %v5027_v45 = vld [vmem:[%s7504_s11 + $0x11] sm:$0xff] }
 0x18c   : >> { %6198 = vmatpush3.bf16.msra.mxu1 %v6852_v26  ;;  %6179 = vmatprep.subr.bf16.mxu0 %v6853_v27  ;;  %v1338_v36 = vld [vmem:[%s7504_s11] sm:$0xff]  ;;  %v1364_v38 = vpack.c.bf16 %v5026_v35, %v5025_v34  ;;  %v1339_v39 = vld [vmem:[%s7504_s11 + $0x8] sm:$0xff]  ;;  %v1340_v46 = vld [vmem:[%s7504_s11 + $0x10] sm:$0xff]  ;;  %v1365_v50 = vpack.c.bf16 %v5027_v45, %v5027_v45 }
 0x18d   : >> { %6199 = vmatprep.subr.bf16.mxu1 %v6854_v28  ;;  %v1341_v40 = vpack.c.bf16 %v1339_v39, %v1338_v36  ;;  %v1342_v51 = vpack.c.bf16 %v1340_v46, %v1340_v46  ;;  %v6867_v52 = vld [vmem:[%s8442_s3 + $0xb0] sm:$0xff]   ;;  %v5060_v54 = vld [vmem:[%s7504_s11 + $0x2] sm:$0xff]  ;;  %v5087_v58 = vld [vmem:[%s7504_s11 + $0x1a] sm:$0xff] }
 0x18e   : >> { %6191 = vmatprep.mubr.bf16.mxu0 %v1364_v38  ;;  %v6868_v53 = vld [vmem:[%s8442_s3 + $0xf0] sm:$0xff]   ;;  %v6869_v57 = vld [vmem:[%s8442_s3 + $0xa8] sm:$0xff]   ;;  %v6871_v62 = vld [vmem:[%s8442_s3 + $0xa0] sm:$0xff]  }
 0x18f   : >> { %6180 = vmatpush3.bf16.msra.mxu0 %v6853_v27  ;;  %6211 = vmatprep.mubr.bf16.mxu1 %v1341_v40  ;;  %v5061_v55 = vld [vmem:[%s7504_s11 + $0xa] sm:$0xff]  ;;  %v5088_v59 = vld [vmem:[%s7504_s11 + $0x22] sm:$0xff]  ;;  %v6873_v1 = vld [vmem:[%s8442_s3 + $0x98] sm:$0xff]  }
 0x190   : >> { %6200 = vmatpush3.bf16.msra.mxu1 %v6854_v28  ;;  %6181 = vmatprep.subr.bf16.mxu0 %v6855_v29  ;;  %v1580_v56 = vpack.c.bf16 %v5061_v55, %v5060_v54  ;;  %v6870_v60 = vld [vmem:[%s8442_s3 + $0xe8] sm:$0xff]   ;;  %v1704_v61 = vpack.c.bf16 %v5088_v59, %v5087_v58  ;;  %v6872_v63 = vld [vmem:[%s8442_s3 + $0xe0] sm:$0xff]   ;;  %v6874_v2 = vld [vmem:[%s8442_s3 + $0xd8] sm:$0xff]  }
 0x191   : >> { %6201 = vmatprep.subr.bf16.mxu1 %v6856_v30  ;;  %v6875_v3 = vld [vmem:[%s8442_s3 + $0x90] sm:$0xff]   ;;  %v6877_v5 = vld [vmem:[%s8442_s3 + $0x88] sm:$0xff]   ;;  %v6879_v7 = vld [vmem:[%s8442_s3 + $0x80] sm:$0xff]  }
 0x192   : >> { %v6876_v4 = vld [vmem:[%s8442_s3 + $0xd0] sm:$0xff]   ;;  %v6878_v6 = vld [vmem:[%s8442_s3 + $0xc8] sm:$0xff]   ;;  %v6880_v8 = vld [vmem:[%s8442_s3 + $0xc0] sm:$0xff]  }
 0x193   : >> { %6182 = vmatpush3.bf16.msra.mxu0 %v6855_v29  ;;  %v5062_v9 = vld [vmem:[%s7504_s11 + $0x12] sm:$0xff]  ;;  %v5089_v11 = vld [vmem:[%s7504_s11 + $0x2a] sm:$0xff]  ;;  %v5114_v13 = vld [vmem:[%s7504_s11 + $0x1b] sm:$0xff] }
 0x194   : >> { %6202 = vmatpush3.bf16.msra.mxu1 %v6856_v30  ;;  %6183 = vmatprep.subr.bf16.mxu0 %v6857_v31  ;;  %v6881_v10 = vld [vmem:[%s8442_s3 + $0x138] sm:$0xff]   ;;  %v5115_v14 = vld [vmem:[%s7504_s11 + $0x23] sm:$0xff]  ;;  %v1581_v15 = vpack.c.bf16 %v5062_v9, %v5062_v9  ;;  %v1705_v17 = vpack.c.bf16 %v5089_v11, %v5089_v11  ;;  %v6883_v19 = vld [vmem:[%s8442_s3 + $0x130] sm:$0xff]  }
 0x195   : >> { %6203 = vmatprep.subr.bf16.mxu1 %v6858_v32  ;;  %v6882_v12 = vld [vmem:[%s8442_s3 + $0x178] sm:$0xff]   ;;  %v5142_v18 = vld [vmem:[%s7504_s11 + $0x24] sm:$0xff]  ;;  %v6884_v20 = vld [vmem:[%s8442_s3 + $0x170] sm:$0xff]   ;;  %v1827_v21 = vpack.c.bf16 %v5115_v14, %v5114_v13 }
 0x196   : >> { %v5141_v16 = vld [vmem:[%s7504_s11 + $0x1c] sm:$0xff]  ;;  %v6885_v23 = vld [vmem:[%s8442_s3 + $0x128] sm:$0xff]   ;;  %v6891_v29 = vld [vmem:[%s8442_s3 + $0x110] sm:$0xff]  }
 0x197   : >> { %6184 = vmatpush3.bf16.msra.mxu0 %v6857_v31  ;;  %v1950_v22 = vpack.c.bf16 %v5142_v18, %v5141_v16  ;;  %v6886_v25 = vld [vmem:[%s8442_s3 + $0x168] sm:$0xff]   ;;  %v6887_v49 = vld [vmem:[%s8442_s3 + $0x120] sm:$0xff]   ;;  %v6889_v27 = vld [vmem:[%s8442_s3 + $0x118] sm:$0xff]  }
 0x198   : >> { %6204 = vmatpush3.bf16.msra.mxu1 %v6858_v32  ;;  %6185 = vmatprep.subr.bf16.mxu0 %v6859_v33  ;;  %v6888_v26 = vld [vmem:[%s8442_s3 + $0x160] sm:$0xff]   ;;  %v6890_v28 = vld [vmem:[%s8442_s3 + $0x158] sm:$0xff]   ;;  %v6892_v30 = vld [vmem:[%s8442_s3 + $0x150] sm:$0xff]  }
 0x199   : >> { %6205 = vmatprep.subr.bf16.mxu1 %v6860_v37  ;;  %v6893_v31 = vld [vmem:[%s8442_s3 + $0x108] sm:$0xff]   ;;  %v6896_v34 = vld [vmem:[%s8442_s3 + $0x140] sm:$0xff]   ;;  %v6897_v36 = vld [vmem:[%s8442_s3 + $0x1b8] sm:$0xff]  }
 0x19a   : >> { %v6894_v32 = vld [vmem:[%s8442_s3 + $0x148] sm:$0xff]   ;;  %v6898_v38 = vld [vmem:[%s8442_s3 + $0x1f8] sm:$0xff]   ;;  %v6899_v45 = vld [vmem:[%s8442_s3 + $0x1b0] sm:$0xff]  }
 0x19b   : >> { %6186 = vmatpush3.bf16.msra.mxu0 %v6859_v33  ;;  %v6895_v33 = vld [vmem:[%s8442_s3 + $0x100] sm:$0xff]   ;;  %v5116_v35 = vld [vmem:[%s7504_s11 + $0x2b] sm:$0xff]  ;;  %v5168_v40 = vld [vmem:[%s7504_s11 + $0x34] sm:$0xff] }
 0x19c   : >> { %6206 = vmatpush3.bf16.msra.mxu1 %v6860_v37  ;;  %6187 = vmatprep.subr.bf16.mxu0 %v6861_v41  ;;  %v5143_v37 = vld [vmem:[%s7504_s11 + $0x2c] sm:$0xff]  ;;  %v1828_v39 = vpack.c.bf16 %v5116_v35, %v5116_v35  ;;  %v6905_v54 = vld [vmem:[%s8442_s3 + $0x198] sm:$0xff]   ;;  %v6916_v9 = vld [vmem:[%s8442_s3 + $0x220] sm:$0xff]  }
 0x19d   : >> { %6207 = vmatprep.subr.bf16.mxu1 %v6862_v42  ;;  %v6900_v46 = vld [vmem:[%s8442_s3 + $0x1f0] sm:$0xff]   ;;  %v6906_v55 = vld [vmem:[%s8442_s3 + $0x1d8] sm:$0xff]   ;;  %v6909_v58 = vld [vmem:[%s8442_s3 + $0x188] sm:$0xff]  }
 0x19e   : >> { %v6910_v59 = vld [vmem:[%s8442_s3 + $0x1c8] sm:$0xff]   ;;  %v6918_v11 = vld [vmem:[%s8442_s3 + $0x210] sm:$0xff]   ;;  %v6920_v13 = vld [vmem:[%s8442_s3 + $0x200] sm:$0xff]  }
 0x19f   : >> { %6188 = vmatpush3.bf16.msra.mxu0 %v6861_v41  ;;  %v5169_v41 = vld [vmem:[%s7504_s11 + $0x3c] sm:$0xff]  ;;  %v5224_v14 = vld [vmem:[%s7504_s11 + $0x46] sm:$0xff] }
 0x1a0   : >> { %6208 = vmatpush3.bf16.msra.mxu1 %v6862_v42  ;;  %6189 = vmatprep.subr.bf16.mxu0 %v6863_v43  ;;  %v1951_v42 = vpack.c.bf16 %v5143_v37, %v5143_v37 }
 0x1a1   : >> { %6209 = vmatprep.subr.bf16.mxu1 %v6864_v44 }
 0x1a3   : >> { %6190 = vmatpush3.bf16.msra.mxu0 %v6863_v43  ;;  %v5195_v43 = vld [vmem:[%s7504_s11 + $0x35] sm:$0xff] }
 0x1a4   : >> { %6210 = vmatpush3.bf16.msra.mxu1 %v6864_v44  ;;  %6215 = vmatprep.subr.bf16.mxu0 %v6865_v47  ;;  %v5196_v44 = vld [vmem:[%s7504_s11 + $0x3d] sm:$0xff] }
 0x1a5   : >> { %6235 = vmatprep.subr.bf16.mxu1 %v6866_v48 }
 0x1a6   : >> { %6192 = vmatmul.mubr.bf16.vlgmr.msra.gmra.mxu0 %v1365_v50  ;;  %v6901_v50 = vld [vmem:[%s8442_s3 + $0x1a8] sm:$0xff]  }
 0x1a7   : >> { %6212 = vmatmul.mubr.bf16.vlgmr.msra.gmra.mxu1 %v1342_v51  ;;  %6216 = vmatpush3.bf16.msra.mxu0 %v6865_v47  ;;  %v2074_v47 = vpack.c.bf16 %v5169_v41, %v5168_v40  ;;  %v6902_v51 = vld [vmem:[%s8442_s3 + $0x1e8] sm:$0xff]  }
 0x1a8   : >> { %6236 = vmatpush3.bf16.msra.mxu1 %v6866_v48  ;;  %6217 = vmatprep.subr.bf16.mxu0 %v6867_v52  ;;  %v2197_v48 = vpack.c.bf16 %v5196_v44, %v5195_v43 }
 0x1a9   : >> { %6237 = vmatprep.subr.bf16.mxu1 %v6868_v53  ;;  %6231 = vmatprep.mubr.bf16.mxu0 %v1580_v56  ;;  %v6907_v56 = vld [vmem:[%s8442_s3 + $0x190] sm:$0xff]  }
 0x1aa   : >> { %6251 = vmatprep.mubr.bf16.mxu1 %v1704_v61  ;;  %v6912_v61 = vld [vmem:[%s8442_s3 + $0x1c0] sm:$0xff]  }
 0x1ab   : >> { %6218 = vmatpush3.bf16.msra.mxu0 %v6867_v52  ;;  %v6903_v52 = vld [vmem:[%s8442_s3 + $0x1a0] sm:$0xff]  }
 0x1ac   : >> { %6238 = vmatpush3.bf16.msra.mxu1 %v6868_v53  ;;  %6219 = vmatprep.subr.bf16.mxu0 %v6869_v57  ;;  %v6904_v53 = vld [vmem:[%s8442_s3 + $0x1e0] sm:$0xff]  }
 0x1ad   : >> { %6239 = vmatprep.subr.bf16.mxu1 %v6870_v60 }
 0x1af   : >> { %6220 = vmatpush3.bf16.msra.mxu0 %v6869_v57  ;;  %v6908_v57 = vld [vmem:[%s8442_s3 + $0x1d0] sm:$0xff]  }
 0x1b0   : >> { %6240 = vmatpush3.bf16.msra.mxu1 %v6870_v60  ;;  %6221 = vmatprep.subr.bf16.mxu0 %v6871_v62  ;;  %v6911_v60 = vld [vmem:[%s8442_s3 + $0x180] sm:$0xff]  }
 0x1b1   : >> { %6241 = vmatprep.subr.bf16.mxu1 %v6872_v63 }
 0x1b3   : >> { %6222 = vmatpush3.bf16.msra.mxu0 %v6871_v62  ;;  %v5170_v62 = vld [vmem:[%s7504_s11 + $0x44] sm:$0xff] }
 0x1b4   : >> { %6242 = vmatpush3.bf16.msra.mxu1 %v6872_v63  ;;  %6223 = vmatprep.subr.bf16.mxu0 %v6873_v1  ;;  %v6913_v63 = vld [vmem:[%s8442_s3 + $0x238] sm:$0xff]  }
 0x1b5   : >> { %6243 = vmatprep.subr.bf16.mxu1 %v6874_v2 }
 0x1b7   : >> { %6224 = vmatpush3.bf16.msra.mxu0 %v6873_v1  ;;  %v5197_v1 = vld [vmem:[%s7504_s11 + $0x45] sm:$0xff] }
 0x1b8   : >> { %6244 = vmatpush3.bf16.msra.mxu1 %v6874_v2  ;;  %6225 = vmatprep.subr.bf16.mxu0 %v6875_v3  ;;  %v5222_v2 = vld [vmem:[%s7504_s11 + $0x36] sm:$0xff] }
 0x1b9   : >> { %6245 = vmatprep.subr.bf16.mxu1 %v6876_v4 }
 0x1bb   : >> { %6226 = vmatpush3.bf16.msra.mxu0 %v6875_v3  ;;  %v5223_v3 = vld [vmem:[%s7504_s11 + $0x3e] sm:$0xff]  ;;  %s2450_s11 = smul.u32 24, %s7095_s25  ;;  %s1335_s25 = sadd.s32 1, %s7095_s25  }
 0x1bc   : >> { %6246 = vmatpush3.bf16.msra.mxu1 %v6876_v4  ;;  %6227 = vmatprep.subr.bf16.mxu0 %v6877_v5  ;;  %v2075_v4 = vpack.c.bf16 %v5170_v62, %v5170_v62  ;;  %p1332_p4 = scmp.ge.s32.totalorder %s1335_s25, 24  }
 0x1bd   : >> { %6247 = vmatprep.subr.bf16.mxu1 %v6878_v6  ;;  %s2451_s15 = scalar_lea.vmem [#allocation3], %s2450_s11  ;;  %s7733_s25 = smov (%p1332_p4), 0  }
 0x1bf   : >> { %6228 = vmatpush3.bf16.msra.mxu0 %v6877_v5  ;;  %v2198_v5 = vpack.c.bf16 %v5197_v1, %v5197_v1 }
 0x1c0   : >> { %6248 = vmatpush3.bf16.msra.mxu1 %v6878_v6  ;;  %6229 = vmatprep.subr.bf16.mxu0 %v6879_v7  ;;  %v6914_v6 = vld [vmem:[%s8442_s3 + $0x230] sm:$0xff]  }
 0x1c1   : >> { %6249 = vmatprep.subr.bf16.mxu1 %v6880_v8 }
 0x1c3   : >> { %6230 = vmatpush3.bf16.msra.mxu0 %v6879_v7  ;;  %v2320_v7 = vpack.c.bf16 %v5223_v3, %v5222_v2 }
 0x1c4   : >> { %6250 = vmatpush3.bf16.msra.mxu1 %v6880_v8  ;;  %6255 = vmatprep.subr.bf16.mxu0 %v6881_v10  ;;  %v6915_v8 = vld [vmem:[%s8442_s3 + $0x228] sm:$0xff]  }
 0x1c5   : >> { %6275 = vmatprep.subr.bf16.mxu1 %v6882_v12 }
 0x1c6   : >> { %6232 = vmatmul.mubr.bf16.vlgmr.msra.gmra.mxu0 %v1581_v15  ;;  %v2321_v15 = vpack.c.bf16 %v5224_v14, %v5224_v14 }
 0x1c7   : >> { %6256 = vmatpush3.bf16.msra.mxu0 %v6881_v10  ;;  %6252 = vmatmul.mubr.bf16.vlgmr.msra.gmra.mxu1 %v1705_v17  ;;  %v6917_v10 = vld [vmem:[%s8442_s3 + $0x218] sm:$0xff]  }
 0x1c8   : >> { %6276 = vmatpush3.bf16.msra.mxu1 %v6882_v12  ;;  %6257 = vmatprep.subr.bf16.mxu0 %v6883_v19  ;;  %v6919_v12 = vld [vmem:[%s8442_s3 + $0x208] sm:$0xff]  }
 0x1c9   : >> { %6277 = vmatprep.subr.bf16.mxu1 %v6884_v20  ;;  %6271 = vmatprep.mubr.bf16.mxu0 %v1827_v21 }
 0x1ca   : >> { %6291 = vmatprep.mubr.bf16.mxu1 %v1950_v22 }
 0x1cb   : >> { %6258 = vmatpush3.bf16.msra.mxu0 %v6883_v19 }
 0x1cc   : >> { %6278 = vmatpush3.bf16.msra.mxu1 %v6884_v20  ;;  %6259 = vmatprep.subr.bf16.mxu0 %v6885_v23 }
 0x1cd   : >> { %6279 = vmatprep.subr.bf16.mxu1 %v6886_v25 }
 0x1cf   : >> { %6260 = vmatpush3.bf16.msra.mxu0 %v6885_v23 }
 0x1d0   : >> { %6280 = vmatpush3.bf16.msra.mxu1 %v6886_v25  ;;  %6261 = vmatprep.subr.bf16.mxu0 %v6887_v49 }
 0x1d1   : >> { %6281 = vmatprep.subr.bf16.mxu1 %v6888_v26 }
 0x1d3   : >> { %6262 = vmatpush3.bf16.msra.mxu0 %v6887_v49 }
 0x1d4   : >> { %6282 = vmatpush3.bf16.msra.mxu1 %v6888_v26  ;;  %6263 = vmatprep.subr.bf16.mxu0 %v6889_v27 }
 0x1d5   : >> { %6283 = vmatprep.subr.bf16.mxu1 %v6890_v28 }
 0x1d7   : >> { %6264 = vmatpush3.bf16.msra.mxu0 %v6889_v27 }
 0x1d8   : >> { %6284 = vmatpush3.bf16.msra.mxu1 %v6890_v28  ;;  %6265 = vmatprep.subr.bf16.mxu0 %v6891_v29 }
 0x1d9   : >> { %6285 = vmatprep.subr.bf16.mxu1 %v6892_v30 }
 0x1db   : >> { %6266 = vmatpush3.bf16.msra.mxu0 %v6891_v29 }
 0x1dc   : >> { %6286 = vmatpush3.bf16.msra.mxu1 %v6892_v30  ;;  %6267 = vmatprep.subr.bf16.mxu0 %v6893_v31 }
 0x1dd   : >> { %6287 = vmatprep.subr.bf16.mxu1 %v6894_v32 }
 0x1df   : >> { %6268 = vmatpush3.bf16.msra.mxu0 %v6893_v31 }
 0x1e0   : >> { %6288 = vmatpush3.bf16.msra.mxu1 %v6894_v32  ;;  %6269 = vmatprep.subr.bf16.mxu0 %v6895_v33 }
 0x1e1   : >> { %6289 = vmatprep.subr.bf16.mxu1 %v6896_v34 }
 0x1e3   : >> { %6270 = vmatpush3.bf16.msra.mxu0 %v6895_v33 }
 0x1e4   : >> { %6290 = vmatpush3.bf16.msra.mxu1 %v6896_v34  ;;  %6295 = vmatprep.subr.bf16.mxu0 %v6897_v36 }
 0x1e5   : >> { %6315 = vmatprep.subr.bf16.mxu1 %v6898_v38 }
 0x1e6   : >> { %6272 = vmatmul.mubr.bf16.vlgmr.msra.gmra.mxu0 %v1828_v39 }
 0x1e7   : >> { %6296 = vmatpush3.bf16.msra.mxu0 %v6897_v36  ;;  %6292 = vmatmul.mubr.bf16.vlgmr.msra.gmra.mxu1 %v1951_v42 }
 0x1e8   : >> { %6316 = vmatpush3.bf16.msra.mxu1 %v6898_v38  ;;  %6297 = vmatprep.subr.bf16.mxu0 %v6899_v45 }
 0x1e9   : >> { %6317 = vmatprep.subr.bf16.mxu1 %v6900_v46  ;;  %6311 = vmatprep.mubr.bf16.mxu0 %v2074_v47 }
 0x1ea   : >> { %6331 = vmatprep.mubr.bf16.mxu1 %v2197_v48 }
 0x1eb   : >> { %6298 = vmatpush3.bf16.msra.mxu0 %v6899_v45 }
 0x1ec   : >> { %6318 = vmatpush3.bf16.msra.mxu1 %v6900_v46  ;;  %6299 = vmatprep.subr.bf16.mxu0 %v6901_v50 }
 0x1ed   : >> { %6319 = vmatprep.subr.bf16.mxu1 %v6902_v51 }
 0x1ef   : >> { %6300 = vmatpush3.bf16.msra.mxu0 %v6901_v50 }
 0x1f0   : >> { %6320 = vmatpush3.bf16.msra.mxu1 %v6902_v51  ;;  %6301 = vmatprep.subr.bf16.mxu0 %v6903_v52 }
 0x1f1   : >> { %6321 = vmatprep.subr.bf16.mxu1 %v6904_v53 }
 0x1f3   : >> { %6302 = vmatpush3.bf16.msra.mxu0 %v6903_v52 }
 0x1f4   : >> { %6322 = vmatpush3.bf16.msra.mxu1 %v6904_v53  ;;  %6303 = vmatprep.subr.bf16.mxu0 %v6905_v54 }
 0x1f5   : >> { %6323 = vmatprep.subr.bf16.mxu1 %v6906_v55 }
 0x1f7   : >> { %6304 = vmatpush3.bf16.msra.mxu0 %v6905_v54 }
 0x1f8   : >> { %6324 = vmatpush3.bf16.msra.mxu1 %v6906_v55  ;;  %6305 = vmatprep.subr.bf16.mxu0 %v6907_v56 }
 0x1f9   : >> { %6325 = vmatprep.subr.bf16.mxu1 %v6908_v57 }
 0x1fb   : >> { %6306 = vmatpush3.bf16.msra.mxu0 %v6907_v56 }
 0x1fc   : >> { %6326 = vmatpush3.bf16.msra.mxu1 %v6908_v57  ;;  %6307 = vmatprep.subr.bf16.mxu0 %v6909_v58 }
 0x1fd   : >> { %6327 = vmatprep.subr.bf16.mxu1 %v6910_v59 }
 0x1ff   : >> { %6308 = vmatpush3.bf16.msra.mxu0 %v6909_v58 }
 0x200   : >> { %6328 = vmatpush3.bf16.msra.mxu1 %v6910_v59  ;;  %6309 = vmatprep.subr.bf16.mxu0 %v6911_v60 }
 0x201   : >> { %6329 = vmatprep.subr.bf16.mxu1 %v6912_v61 }
 0x203   : >> { %6310 = vmatpush3.bf16.msra.mxu0 %v6911_v60 }
 0x204   : >> { %6330 = vmatpush3.bf16.msra.mxu1 %v6912_v61  ;;  %6335 = vmatprep.subr.bf16.mxu0 %v6913_v63 }
 0x206   : >> { %6312 = vmatmul.mubr.bf16.vlgmr.msra.gmra.mxu0 %v2075_v4 }
 0x207   : >> { %6336 = vmatpush3.bf16.msra.mxu0 %v6913_v63  ;;  %6332 = vmatmul.mubr.bf16.vlgmr.msra.gmra.mxu1 %v2198_v5 }
 0x208   : >> { %6337 = vmatprep.subr.bf16.mxu0 %v6914_v6  ;;  %6351 = vmatprep.mubr.bf16.mxu0 %v2320_v7 }
 0x20b   : >> { %6338 = vmatpush3.bf16.msra.mxu0 %v6914_v6 }
 0x20c   : >> { %6339 = vmatprep.subr.bf16.mxu0 %v6915_v8 }
 0x20f   : >> { %6340 = vmatpush3.bf16.msra.mxu0 %v6915_v8 }
 0x210   : >> { %6341 = vmatprep.subr.bf16.mxu0 %v6916_v9 }
 0x213   : >> { %6342 = vmatpush3.bf16.msra.mxu0 %v6916_v9 }
 0x214   : >> { %6343 = vmatprep.subr.bf16.mxu0 %v6917_v10 }
 0x217   : >> { %6344 = vmatpush3.bf16.msra.mxu0 %v6917_v10 }
 0x218   : >> { %6345 = vmatprep.subr.bf16.mxu0 %v6918_v11 }
 0x21b   : >> { %6346 = vmatpush3.bf16.msra.mxu0 %v6918_v11 }
 0x21c   : >> { %6347 = vmatprep.subr.bf16.mxu0 %v6919_v12 }
 0x21f   : >> { %6348 = vmatpush3.bf16.msra.mxu0 %v6919_v12 }
 0x220   : >> { %6349 = vmatprep.subr.bf16.mxu0 %v6920_v13 }
 0x223   : >> { %6350 = vmatpush3.bf16.msra.mxu0 %v6920_v13 }
 0x226   : >> { %6352 = vmatmul.mubr.bf16.vlgmr.msra.gmra.mxu0 %v2321_v15 }
 0x266   : >> { %v6193_v16 = vpop.f32.mrf.mxu0 }
 0x267   : >> { %v6213_v17 = vpop.f32.mrf.mxu1 }
 0x268   : >> { %v1570_v18 = vadd.f32 %v6213_v17, %v6193_v16  ;;  %v1465_v19 = vpop.f32.mrf.mxu0 }
 0x269   : >> { %v1561_v20 = vpop.f32.mrf.mxu1 }
 0x26a   : >> { %v1562_v21 = vadd.f32 %v1561_v20, %v1465_v19  ;;  %v6194_v22 = vpop.f32.mrf.mxu0  ;;  %v2455_v20 = vlaneseq (%p1332_p4) }
 0x26b   : >> { %v6214_v23 = vpop.f32.mrf.mxu1 }
 0x26c   : >> { %v1468_v25 = vpop.f32.mrf.mxu0  ;;  %v2459_v22 = vand.u32 (%p1332_p4), 127, %v2455_v20 }
 0x26d   : >> { %v1564_v49 = vpop.f32.mrf.mxu1 }
 0x26e   : >> { %v1565_v26 = vadd.f32 %v1564_v49, %v1468_v25 }
 0x286   : >> { %v6233_v27 = vpop.f32.mrf.mxu0 }
 0x287   : >> { %v1697_v28 = vadd.f32 %v6233_v27, %v1570_v18  ;;  %v6253_v29 = vpop.f32.mrf.mxu1 }
 0x288   : >> { %v1681_v30 = vpop.f32.mrf.mxu0 }
 0x289   : >> { %v1695_v31 = vadd.f32 %v1681_v30, %v1562_v21  ;;  %v1821_v32 = vadd.f32 %v6253_v29, %v1697_v28  ;;  %v1805_v33 = vpop.f32.mrf.mxu1  ;;  %v2456_v21 = vshrl.u32 (%p1332_p4), %v2455_v20, 7 }
 0x28a   : >> { %v6234_v34 = vpop.f32.mrf.mxu0 }
 0x28b   : >> { %v1819_v35 = vadd.f32 %v1805_v33, %v1695_v31  ;;  %v6254_v36 = vpop.f32.mrf.mxu1  ;;  %v2457_v23 = vadd.s32 (%p1332_p4), 8, %v2456_v21  ;;  %v2460_v25 = vmul.u32 (%p1332_p4), 2, %v2456_v21 }
 0x28c   : >> { %v1684_v37 = vpop.f32.mrf.mxu0 }
 0x28d   : >> { %v1808_v38 = vpop.f32.mrf.mxu1  ;;  %v1696_v54 = vadd.f32 %v1684_v37, %v1565_v26  ;;  %v2461_v49 = vmul.u32 (%p1332_p4), 2, %v2457_v23  ;;  %vm2462_vm4 = vcmp.eq.s32.totalorder (%p1332_p4), %v2459_v22, %v2460_v25  ;;  %v2467_v26 = vadd.s32 (%p1332_p4), 1, %v2460_v25 }
 0x28e   : > { %v7724_v27 = vsel (%p1332_p4), %vm2462_vm4, 1.0, %v7113_v0 }
 0x28f   : >> { %v1820_v57 = vadd.f32 %v1808_v38, %v1696_v54  ;;  %vm2463_vm5 = vcmp.eq.s32.totalorder (%p1332_p4), %v2459_v22, %v2461_v49  ;;  %v2468_v28 = vadd.s32 (%p1332_p4), 1, %v2461_v49  ;;  %vm2469_vm6 = vcmp.eq.s32.totalorder (%p1332_p4), %v2459_v22, %v2467_v26 }
 0x290   : > { %v2465_v29 = vsel (%p1332_p4), %vm2463_vm5, 1.0, %v7113_v0  ;;  %v7728_v30 = vsel (%p1332_p4), %vm2469_vm6, 1.0, %v7113_v0 }
 0x291   : > { %vm2470_vm7 = vcmp.eq.s32.totalorder (%p1332_p4), %v2459_v22, %v2468_v28 }
 0x292   : > { %v2472_v31 = vsel (%p1332_p4), %vm2470_vm7, 1.0, %v7113_v0 }
 0x2a6   : >> { %v6273_v39 = vpop.f32.mrf.mxu0 }
 0x2a7   : >> { %v6293_v40 = vpop.f32.mrf.mxu1  ;;  %v1944_v55 = vadd.f32 %v6273_v39, %v1821_v32  ;;  %v2473_v32 = vpack.c.bf16 (%p1332_p4), %v2472_v31, %v7728_v30 }
 0x2a8   : >> { %v1928_v41 = vpop.f32.mrf.mxu0 }
 0x2a9   : >> { %v2051_v42 = vpop.f32.mrf.mxu1  ;;  %v1942_v56 = vadd.f32 %v1928_v41, %v1819_v35  ;;  %v2067_v58 = vadd.f32 %v6293_v40, %v1944_v55 }
 0x2aa   : >> { %v6274_v43 = vpop.f32.mrf.mxu0 }
 0x2ab   : >> { %v6294_v44 = vpop.f32.mrf.mxu1  ;;  %v2065_v59 = vadd.f32 %v2051_v42, %v1942_v56 }
 0x2ac   : >> { %v1931_v45 = vpop.f32.mrf.mxu0 }
 0x2ad   : >> { %v2054_v46 = vpop.f32.mrf.mxu1  ;;  %v1943_v60 = vadd.f32 %v1931_v45, %v1820_v57 }
 0x2af   : >> { %v2066_v1 = vadd.f32 %v2054_v46, %v1943_v60 }
 0x2c6   : >> { %v6313_v47 = vpop.f32.mrf.mxu0 }
 0x2c7   : >> { %v6333_v48 = vpop.f32.mrf.mxu1  ;;  %v2191_v61 = vadd.f32 %v6313_v47, %v2067_v58 }
 0x2c8   : >> { %v2175_v50 = vpop.f32.mrf.mxu0 }
 0x2c9   : >> { %v2298_v51 = vpop.f32.mrf.mxu1  ;;  %v2189_v62 = vadd.f32 %v2175_v50, %v2065_v59  ;;  %v2314_v2 = vadd.f32 %v6333_v48, %v2191_v61 }
 0x2ca   : >> { %v6314_v52 = vpop.f32.mrf.mxu0 }
 0x2cb   : >> { %v6334_v53 = vpop.f32.mrf.mxu1  ;;  %v2312_v4 = vadd.f32 %v2298_v51, %v2189_v62 }
 0x2cc   : >> { %v2178_v63 = vpop.f32.mrf.mxu0 }
 0x2cd   : >> { %v2190_v5 = vadd.f32 %v2178_v63, %v2066_v1  ;;  %v2301_v7 = vpop.f32.mrf.mxu1 }
 0x2cf   : >> { %v2313_v12 = vadd.f32 %v2301_v7, %v2190_v5 }
 0x2e6   : >> { %v6353_v3 = vpop.f32.mrf.mxu0 }
 0x2e7   : >> { %v2437_v6 = vadd.f32 %v6353_v3, %v2314_v2 }
 0x2e8   : >> { %v2421_v8 = vpop.f32.mrf.mxu0 }
 0x2e9   : >> { %v2446_v9 = vadd.f32 %v7403_v24, %v2437_v6  ;;  %v2435_v10 = vadd.f32 %v2421_v8, %v2312_v4 }
 0x2ea   : >> { %v6354_v11 = vpop.f32.mrf.mxu0 }
 0x2eb   : >> { %v2449_v13 = vmax.f32 %v2446_v9, 0.0  ;;  %v2444_v14 = vadd.f32 %v7403_v24, %v2435_v10 }
 0x2ec   : >> { %v2424_v15 = vpop.f32.mrf.mxu0 }
 0x2ed   : >> { %2454 = vst [vmem:[%s2451_s15 + $0x10] sm:$0xff] %v2449_v13  ;;  %v2447_v16 = vmax.f32 %v2444_v14, 0.0  ;;  %v2436_v17 = vadd.f32 %v2424_v15, %v2313_v12 }
 0x2ef   : >> { %2452 = vst [vmem:[%s2451_s15] sm:$0xff] %v2447_v16  ;;  %v2445_v18 = vadd.f32 %v7403_v24, %v2436_v17  ;;  %1334 = sbr.rel (!%p1332_p4) target bundleno = 389 (0x185), region = 181  ;;  %v2466_v24 = vpack.c.bf16 (%p1332_p4), %v2465_v29, %v7724_v27 }
 0x2f1   : >> { %v2448_v19 = vmax.f32 %v2445_v18, 0.0 }
 0x2f3   : >> { %2453 = vst [vmem:[%s2451_s15 + $0x8] sm:$0xff] %v2448_v19 }
 0x2f4 LB: >> { %v7116_v33 = vmov 0.0   ;;  %s2480_s16 = smul.u32 48, %s7099_s25  ;;  %vm7117_vm8 = vmmov 0   ;;  %vm2497_vm9 = vcmask 195584   ;;  %s7099_s25 = sphi %s7733_s25, %s2479_s25  }
 0x2f5   : >> { %6355 = vmatprep.subr.bf16.mxu0 %v7116_v33  ;;  %6363 = vmatprep.subr.bf16.mxu1 %v7116_v33  ;;  %s2591_s19 = smul.u32 12, %s7099_s25  ;;  %s2479_s25 = sadd.s32 1, %s7099_s25  }
 0x2f6   : >> { %6359 = vmatprep.mubr.msk.bf16.mxu0 %vm7117_vm8, %v7116_v33  ;;  %6367 = vmatprep.mubr.msk.bf16.mxu1 %vm7117_vm8, %v7116_v33  ;;  %s2481_s18 = scalar_lea.vmem [#allocation3], %s2480_s16  ;;  %p2476_p5 = scmp.ge.s32.totalorder %s2479_s25, 12  }
 0x2f7   : >> { %s2592_s20 = scalar_lea.vmem [#allocation4], %s2591_s19  ;;  %v7747_v56 = vld [vmem:[%s8445_s6] ss:$0 sm:$0xff] (%p2476_p5)  ;;  %s7749_s23 = smov (%p2476_p5), 0  }
 0x2fa   : >> { %v2484_v34 = vld [vmem:[%s2481_s18 + $0x10] sm:$0xff]  ;;  %v5254_v0 = vld [vmem:[%s2481_s18 + $0x28] sm:$0xff]  ;;  %v2482_v35 = vld [vmem:[%s2481_s18] sm:$0xff] }
 0x2fb   : >> { %v2494_v36 = vmax.f32 %v2484_v34, %v5254_v0  ;;  %v2483_v37 = vld [vmem:[%s2481_s18 + $0x8] sm:$0xff]  ;;  %v5252_v38 = vld [vmem:[%s2481_s18 + $0x18] sm:$0xff]  ;;  %v5253_v39 = vld [vmem:[%s2481_s18 + $0x20] sm:$0xff] }
 0x2fc   : >> { %v2492_v40 = vmax.f32 %v2482_v35, %v5252_v38  ;;  %v2493_v41 = vmax.f32 %v2483_v37, %v5253_v39 }
 0x2fd   : >> { %v2496_v42 = vpack.c.bf16 %v2494_v36, %v2494_v36 }
 0x2fe   : >> { %v2495_v44 = vpack.c.bf16 %v2493_v41, %v2492_v40 }
 0x2ff   : >> { %v2502_v43 = vsel %vm776_vm0, %v2496_v42, 0 }
 0x300   : >> { %6356 = vmatpush3.bf16.msra.mxu0 %v2502_v43  ;;  %6364 = vmatpush3.bf16.msra.mxu1 %v2502_v43 }
 0x301   : >> { %6357 = vmatprep.subr.bf16.mxu0 %v7116_v33  ;;  %6365 = vmatprep.subr.bf16.mxu1 %v7116_v33 }
 0x304   : >> { %6358 = vmatpush3.bf16.msra.mxu0 %v2495_v44  ;;  %6366 = vmatpush3.bf16.msra.mxu1 %v2495_v44 }
 0x307   : >> { %6360 = vmatmul.mubr.msk.bf16.vlgmr.msra.gmra.mxu0 %vm2497_vm9, %v2466_v24  ;;  %6368 = vmatmul.mubr.msk.bf16.vlgmr.msra.gmra.mxu1 %vm2497_vm9, %v2473_v32 }
 0x3c7   : >> { %v2538_v45 = vpop.f32.mrf.mxu0  ;;  %v2582_v46 = vpop.f32.mrf.mxu1 }
 0x3c8   : >> { %v2589_v47 = vmax.f32 %v2538_v45, %v2582_v46 }
 0x3c9   : >> { %v6361_v48 = vpop.f32.mrf.mxu0  ;;  %v6369_v50 = vpop.f32.mrf.mxu1 }
 0x3ca   : >> { %2593 = vst [vmem:[%s2592_s20] sm:$0xff] %v2589_v47  ;;  %2478 = sbr.rel (!%p2476_p5) target bundleno = 756 (0x2f4), region = 192 }
 0x3cb   : >> { %v2541_v51 = vpop.f32.mrf.mxu0  ;;  %v2585_v52 = vpop.f32.mrf.mxu1 }
 0x3cc   : >> { %v2590_v53 = vmax.f32 %v2541_v51, %v2585_v52 }
 0x3cd   : >> { %v6362_v54 = vpop.f32.mrf.mxu0  ;;  %v6370_v55 = vpop.f32.mrf.mxu1 }
 0x3ce   : >> { %2594 = vst [vmem:[%s2592_s20 + $0x8] sm:$0xf] %v2590_v53 }
 0x3cf LB: >> { %v6921_v57 = vld [vmem:[%s8444_s5 + $0x78] sm:$0xff]   ;;  %v7118_v58 = vmov 0.0   ;;  %v6923_v60 = vld [vmem:[%s8444_s5 + $0x70] sm:$0xff]   ;;  %vm7119_vm10 = vmmov 0   ;;  %v6925_v62 = vld [vmem:[%s8444_s5 + $0x68] sm:$0xff]   ;;  %s2602_s27 = smul.u32 12, %s7103_s23  ;;  %s7103_s23 = sphi %s7749_s23, %s2601_s23  }
 0x3d0   : >> { %6371 = vmatprep.subr.bf16.mxu0 %v7118_v58  ;;  %6391 = vmatprep.subr.bf16.mxu1 %v7118_v58  ;;  %v6922_v59 = vld [vmem:[%s8444_s5 + $0x38] sm:$0xff]   ;;  %v6924_v61 = vld [vmem:[%s8444_s5 + $0x30] sm:$0xff]   ;;  %v6926_v63 = vld [vmem:[%s8444_s5 + $0x28] sm:$0xff]  }
 0x3d1   : >> { %6372 = vmatpush3.bf16.msra.mxu0 %v6921_v57  ;;  %6387 = vmatprep.mubr.msk.bf16.mxu0 %vm7119_vm10, %v7118_v58  ;;  %v6927_v1 = vld [vmem:[%s8444_s5 + $0x60] sm:$0xff]   ;;  %v6929_v3 = vld [vmem:[%s8444_s5 + $0x58] sm:$0xff]   ;;  %v6931_v5 = vld [vmem:[%s8444_s5 + $0x50] sm:$0xff]   ;;  %s7818_s18 = scalar_lea.vmem [#allocation4], %s2602_s27 }
 0x3d2   : >> { %6392 = vmatpush3.bf16.msra.mxu1 %v6922_v59  ;;  %6373 = vmatprep.subr.bf16.mxu0 %v7118_v58  ;;  %v6928_v2 = vld [vmem:[%s8444_s5 + $0x20] sm:$0xff]   ;;  %v6930_v4 = vld [vmem:[%s8444_s5 + $0x18] sm:$0xff]   ;;  %v6932_v6 = vld [vmem:[%s8444_s5 + $0x10] sm:$0xff]  }
 0x3d3   : >> { %6393 = vmatprep.subr.bf16.mxu1 %v7118_v58  ;;  %6407 = vmatprep.mubr.msk.bf16.mxu1 %vm7119_vm10, %v7118_v58  ;;  %v6933_v7 = vld [vmem:[%s8444_s5 + $0x48] sm:$0xff]   ;;  %v6935_v9 = vld [vmem:[%s8444_s5 + $0x40] sm:$0xff]   ;;  %v6937_v17 = vld [vmem:[%s8444_s5 + $0xb8] sm:$0xff]  }
 0x3d4   : >> { %v6934_v8 = vld [vmem:[%s8444_s5 + $0x8] sm:$0xff]   ;;  %v6936_v11 = vld [vmem:[%s8444_s5] sm:$0xff]   ;;  %v6938_v18 = vld [vmem:[%s8444_s5 + $0xf8] sm:$0xff]  }
 0x3d5   : >> { %6374 = vmatpush3.bf16.msra.mxu0 %v6923_v60  ;;  %v5257_v10 = vld [vmem:[%s7818_s18 + $0x1] sm:$0xff]  ;;  %v5258_v12 = vld [vmem:[%s7818_s18 + $0x9] sm:$0x3]  ;;  %v6939_v19 = vld [vmem:[%s8444_s5 + $0xb0] sm:$0xff]  }
 0x3d6   : >> { %6394 = vmatpush3.bf16.msra.mxu1 %v6924_v61  ;;  %6375 = vmatprep.subr.bf16.mxu0 %v7118_v58  ;;  %v2604_v13 = vld [vmem:[%s7818_s18] sm:$0xff]  ;;  %v2605_v14 = vld [vmem:[%s7818_s18 + $0x8] sm:$0x3]  ;;  %v2627_v15 = vpack.c.bf16 %v5258_v12, %v5257_v10  ;;  %v6940_v20 = vld [vmem:[%s8444_s5 + $0xf0] sm:$0xff]  }
 0x3d7   : >> { %6395 = vmatprep.subr.bf16.mxu1 %v7118_v58  ;;  %v2606_v16 = vpack.c.bf16 %v2605_v14, %v2604_v13  ;;  %v6941_v21 = vld [vmem:[%s8444_s5 + $0xa8] sm:$0xff]   ;;  %v6943_v23 = vld [vmem:[%s8444_s5 + $0xa0] sm:$0xff]   ;;  %v6945_v49 = vld [vmem:[%s8444_s5 + $0x98] sm:$0xff]  }
 0x3d8   : >> { %v6942_v22 = vld [vmem:[%s8444_s5 + $0xe8] sm:$0xff]   ;;  %v6944_v25 = vld [vmem:[%s8444_s5 + $0xe0] sm:$0xff]   ;;  %v6946_v26 = vld [vmem:[%s8444_s5 + $0xd8] sm:$0xff]  }
 0x3d9   : >> { %6376 = vmatpush3.bf16.msra.mxu0 %v6925_v62  ;;  %v6947_v28 = vld [vmem:[%s8444_s5 + $0x90] sm:$0xff]   ;;  %v6949_v24 = vld [vmem:[%s8444_s5 + $0x88] sm:$0xff]   ;;  %v6951_v32 = vld [vmem:[%s8444_s5 + $0x80] sm:$0xff]  }
 0x3da   : >> { %6396 = vmatpush3.bf16.msra.mxu1 %v6926_v63  ;;  %6377 = vmatprep.subr.bf16.mxu0 %v7118_v58  ;;  %v6948_v29 = vld [vmem:[%s8444_s5 + $0xd0] sm:$0xff]   ;;  %v6950_v31 = vld [vmem:[%s8444_s5 + $0xc8] sm:$0xff]   ;;  %v6952_v34 = vld [vmem:[%s8444_s5 + $0xc0] sm:$0xff]  }
 0x3db   : >> { %6397 = vmatprep.subr.bf16.mxu1 %v7118_v58  ;;  %v5291_v33 = vld [vmem:[%s7818_s18 + $0x2] sm:$0xff]  ;;  %v5292_v0 = vld [vmem:[%s7818_s18 + $0xa] sm:$0x3]  ;;  %v5317_v35 = vld [vmem:[%s7818_s18 + $0xc] sm:$0xff] }
 0x3dc   : >> { %v5318_v36 = vld [vmem:[%s7818_s18 + $0x14] sm:$0x3]  ;;  %v2827_v37 = vpack.c.bf16 %v5292_v0, %v5291_v33  ;;  %v6953_v38 = vld [vmem:[%s8444_s5 + $0x138] sm:$0xff]   ;;  %v6957_v43 = vld [vmem:[%s8444_s5 + $0x128] sm:$0xff]  }
 0x3dd   : >> { %6378 = vmatpush3.bf16.msra.mxu0 %v6927_v1  ;;  %v2941_v39 = vpack.c.bf16 %v5318_v36, %v5317_v35  ;;  %v6954_v40 = vld [vmem:[%s8444_s5 + $0x178] sm:$0xff]   ;;  %v6955_v41 = vld [vmem:[%s8444_s5 + $0x130] sm:$0xff]   ;;  %v6958_v44 = vld [vmem:[%s8444_s5 + $0x168] sm:$0xff]  }
 0x3de   : >> { %6398 = vmatpush3.bf16.msra.mxu1 %v6928_v2  ;;  %6379 = vmatprep.subr.bf16.mxu0 %v7118_v58  ;;  %v6956_v42 = vld [vmem:[%s8444_s5 + $0x170] sm:$0xff]   ;;  %v6959_v45 = vld [vmem:[%s8444_s5 + $0x120] sm:$0xff]   ;;  %v6961_v47 = vld [vmem:[%s8444_s5 + $0x118] sm:$0xff]  }
 0x3df   : >> { %6399 = vmatprep.subr.bf16.mxu1 %v7118_v58  ;;  %v6960_v46 = vld [vmem:[%s8444_s5 + $0x160] sm:$0xff]   ;;  %v6962_v48 = vld [vmem:[%s8444_s5 + $0x158] sm:$0xff]   ;;  %v6963_v50 = vld [vmem:[%s8444_s5 + $0x110] sm:$0xff]  }
 0x3e0   : >> { %v6964_v51 = vld [vmem:[%s8444_s5 + $0x150] sm:$0xff]   ;;  %v6965_v52 = vld [vmem:[%s8444_s5 + $0x108] sm:$0xff]   ;;  %v6967_v54 = vld [vmem:[%s8444_s5 + $0x100] sm:$0xff]  }
 0x3e1   : >> { %6380 = vmatpush3.bf16.msra.mxu0 %v6929_v3  ;;  %v6966_v53 = vld [vmem:[%s8444_s5 + $0x148] sm:$0xff]   ;;  %v5344_v57 = vld [vmem:[%s7818_s18 + $0x15] sm:$0x3]  ;;  %v6968_v59 = vld [vmem:[%s8444_s5 + $0x140] sm:$0xff]  }
 0x3e2   : >> { %6400 = vmatpush3.bf16.msra.mxu1 %v6930_v4  ;;  %6381 = vmatprep.subr.bf16.mxu0 %v7118_v58  ;;  %v5343_v55 = vld [vmem:[%s7818_s18 + $0xd] sm:$0xff]  ;;  %v5370_v61 = vld [vmem:[%s7818_s18 + $0x16] sm:$0x3]  ;;  %v6969_v63 = vld [vmem:[%s8444_s5 + $0x1b8] sm:$0xff]  }
 0x3e3   : >> { %6401 = vmatprep.subr.bf16.mxu1 %v7118_v58  ;;  %v5369_v60 = vld [vmem:[%s7818_s18 + $0xe] sm:$0xff]  ;;  %v3054_v62 = vpack.c.bf16 %v5344_v57, %v5343_v55  ;;  %v6970_v2 = vld [vmem:[%s8444_s5 + $0x1f8] sm:$0xff]   ;;  %v5448_v33 = vld [vmem:[%s7818_s18 + $0x22] sm:$0x3] }
 0x3e4   : >> { %v3167_v1 = vpack.c.bf16 %v5370_v61, %v5369_v60  ;;  %v6971_v3 = vld [vmem:[%s8444_s5 + $0x1b0] sm:$0xff]   ;;  %v6978_v10 = vld [vmem:[%s8444_s5 + $0x1d8] sm:$0xff]   ;;  %v6981_v13 = vld [vmem:[%s8444_s5 + $0x188] sm:$0xff]  }
 0x3e5   : >> { %6382 = vmatpush3.bf16.msra.mxu0 %v6931_v5  ;;  %v6972_v4 = vld [vmem:[%s8444_s5 + $0x1f0] sm:$0xff]   ;;  %v6973_v5 = vld [vmem:[%s8444_s5 + $0x1a8] sm:$0xff]  }
 0x3e6   : >> { %6402 = vmatpush3.bf16.msra.mxu1 %v6932_v6  ;;  %6383 = vmatprep.subr.bf16.mxu0 %v7118_v58  ;;  %v6974_v6 = vld [vmem:[%s8444_s5 + $0x1e8] sm:$0xff]   ;;  %v6980_v12 = vld [vmem:[%s8444_s5 + $0x1d0] sm:$0xff]  }
 0x3e7   : >> { %6403 = vmatprep.subr.bf16.mxu1 %v7118_v58  ;;  %v6982_v14 = vld [vmem:[%s8444_s5 + $0x1c8] sm:$0xff]  }
 0x3e9   : >> { %6384 = vmatpush3.bf16.msra.mxu0 %v6933_v7  ;;  %v6975_v7 = vld [vmem:[%s8444_s5 + $0x1a0] sm:$0xff]  }
 0x3ea   : >> { %6404 = vmatpush3.bf16.msra.mxu1 %v6934_v8  ;;  %6385 = vmatprep.subr.bf16.mxu0 %v7118_v58  ;;  %v6976_v8 = vld [vmem:[%s8444_s5 + $0x1e0] sm:$0xff]  }
 0x3eb   : >> { %6405 = vmatprep.subr.bf16.mxu1 %v7118_v58 }
 0x3ed   : >> { %6386 = vmatpush3.bf16.msra.mxu0 %v6935_v9  ;;  %v6977_v9 = vld [vmem:[%s8444_s5 + $0x198] sm:$0xff]  }
 0x3ee   : >> { %6406 = vmatpush3.bf16.msra.mxu1 %v6936_v11  ;;  %6411 = vmatprep.subr.bf16.mxu0 %v7118_v58  ;;  %v6979_v11 = vld [vmem:[%s8444_s5 + $0x190] sm:$0xff]  }
 0x3ef   : >> { %6431 = vmatprep.subr.bf16.mxu1 %v7118_v58 }
 0x3f0   : >> { %6388 = vmatmul.mubr.bf16.vlgmr.msra.gmra.mxu0 %v2627_v15  ;;  %v6983_v15 = vld [vmem:[%s8444_s5 + $0x180] sm:$0xff]  }
 0x3f1   : >> { %6408 = vmatmul.mubr.bf16.vlgmr.msra.gmra.mxu1 %v2606_v16  ;;  %6412 = vmatpush3.bf16.msra.mxu0 %v6937_v17  ;;  %v5395_v16 = vld [vmem:[%s7818_s18 + $0x18] sm:$0xff]  ;;  %v5396_v17 = vld [vmem:[%s7818_s18 + $0x20] sm:$0x3] }
 0x3f2   : >> { %6432 = vmatpush3.bf16.msra.mxu1 %v6938_v18  ;;  %6413 = vmatprep.subr.bf16.mxu0 %v7118_v58  ;;  %v6984_v18 = vld [vmem:[%s8444_s5 + $0x1c0] sm:$0xff]  }
 0x3f3   : >> { %6433 = vmatprep.subr.bf16.mxu1 %v7118_v58  ;;  %6427 = vmatprep.mubr.msk.bf16.mxu0 %vm7119_vm10, %v7118_v58 }
 0x3f4   : >> { %6447 = vmatprep.mubr.msk.bf16.mxu1 %vm7119_vm10, %v7118_v58 }
 0x3f5   : >> { %6414 = vmatpush3.bf16.msra.mxu0 %v6939_v19  ;;  %v5421_v19 = vld [vmem:[%s7818_s18 + $0x19] sm:$0xff] }
 0x3f6   : >> { %6434 = vmatpush3.bf16.msra.mxu1 %v6940_v20  ;;  %6415 = vmatprep.subr.bf16.mxu0 %v7118_v58  ;;  %v5422_v20 = vld [vmem:[%s7818_s18 + $0x21] sm:$0x3] }
 0x3f7   : >> { %6435 = vmatprep.subr.bf16.mxu1 %v7118_v58 }
 0x3f9   : >> { %6416 = vmatpush3.bf16.msra.mxu0 %v6941_v21  ;;  %v3281_v21 = vpack.c.bf16 %v5396_v17, %v5395_v16 }
 0x3fa   : >> { %6436 = vmatpush3.bf16.msra.mxu1 %v6942_v22  ;;  %6417 = vmatprep.subr.bf16.mxu0 %v7118_v58  ;;  %v6985_v22 = vld [vmem:[%s8444_s5 + $0x238] sm:$0xff]  }
 0x3fb   : >> { %6437 = vmatprep.subr.bf16.mxu1 %v7118_v58 }
 0x3fd   : >> { %6418 = vmatpush3.bf16.msra.mxu0 %v6943_v23  ;;  %v3394_v23 = vpack.c.bf16 %v5422_v20, %v5421_v19 }
 0x3fe   : >> { %6438 = vmatpush3.bf16.msra.mxu1 %v6944_v25  ;;  %6419 = vmatprep.subr.bf16.mxu0 %v7118_v58  ;;  %v6986_v25 = vld [vmem:[%s8444_s5 + $0x230] sm:$0xff]  }
 0x3ff   : >> { %6439 = vmatprep.subr.bf16.mxu1 %v7118_v58 }
 0x401   : >> { %6420 = vmatpush3.bf16.msra.mxu0 %v6945_v49  ;;  %v6987_v49 = vld [vmem:[%s8444_s5 + $0x228] sm:$0xff]  }
 0x402   : >> { %6440 = vmatpush3.bf16.msra.mxu1 %v6946_v26  ;;  %6421 = vmatprep.subr.bf16.mxu0 %v7118_v58  ;;  %v6988_v26 = vld [vmem:[%s8444_s5 + $0x220] sm:$0xff]  }
 0x403   : >> { %6441 = vmatprep.subr.bf16.mxu1 %v7118_v58 }
 0x405   : >> { %6422 = vmatpush3.bf16.msra.mxu0 %v6947_v28  ;;  %v6989_v28 = vld [vmem:[%s8444_s5 + $0x218] sm:$0xff]  }
 0x406   : >> { %6442 = vmatpush3.bf16.msra.mxu1 %v6948_v29  ;;  %6423 = vmatprep.subr.bf16.mxu0 %v7118_v58  ;;  %v6990_v29 = vld [vmem:[%s8444_s5 + $0x210] sm:$0xff]  }
 0x407   : >> { %6443 = vmatprep.subr.bf16.mxu1 %v7118_v58 }
 0x409   : >> { %6424 = vmatpush3.bf16.msra.mxu0 %v6949_v24  ;;  %v6991_v24 = vld [vmem:[%s8444_s5 + $0x208] sm:$0xff]  }
 0x40a   : >> { %6444 = vmatpush3.bf16.msra.mxu1 %v6950_v31  ;;  %6425 = vmatprep.subr.bf16.mxu0 %v7118_v58  ;;  %v6992_v31 = vld [vmem:[%s8444_s5 + $0x200] sm:$0xff]  }
 0x40b   : >> { %6445 = vmatprep.subr.bf16.mxu1 %v7118_v58 }
 0x40d   : >> { %6426 = vmatpush3.bf16.msra.mxu0 %v6951_v32  ;;  %v5447_v32 = vld [vmem:[%s7818_s18 + $0x1a] sm:$0xff]  ;;  %s3626_s18 = smul.u32 10, %s7103_s23  ;;  %s2601_s23 = sadd.s32 1, %s7103_s23  }
 0x40e   : >> { %6446 = vmatpush3.bf16.msra.mxu1 %v6952_v34  ;;  %6451 = vmatprep.subr.bf16.mxu0 %v7118_v58  ;;  %v3507_v34 = vpack.c.bf16 %v5448_v33, %v5447_v32  ;;  %p2598_p6 = scmp.ge.s32.totalorder %s2601_s23, 10  }
 0x40f   : >> { %6471 = vmatprep.subr.bf16.mxu1 %v7118_v58  ;;  %s3627_s14 = scalar_lea.vmem [#allocation5], %s3626_s18  ;;  %s8092_s25 = smov (%p2598_p6), 0  }
 0x410   : >> { %6428 = vmatmul.mubr.bf16.vlgmr.msra.gmra.mxu0 %v2827_v37 }
 0x411   : >> { %6452 = vmatpush3.bf16.msra.mxu0 %v6953_v38  ;;  %6448 = vmatmul.mubr.bf16.vlgmr.msra.gmra.mxu1 %v2941_v39 }
 0x412   : >> { %6472 = vmatpush3.bf16.msra.mxu1 %v6954_v40  ;;  %6453 = vmatprep.subr.bf16.mxu0 %v7118_v58 }
 0x413   : >> { %6473 = vmatprep.subr.bf16.mxu1 %v7118_v58  ;;  %6467 = vmatprep.mubr.msk.bf16.mxu0 %vm7119_vm10, %v7118_v58 }
 0x414   : >> { %6487 = vmatprep.mubr.msk.bf16.mxu1 %vm7119_vm10, %v7118_v58 }
 0x415   : >> { %6454 = vmatpush3.bf16.msra.mxu0 %v6955_v41 }
 0x416   : >> { %6474 = vmatpush3.bf16.msra.mxu1 %v6956_v42  ;;  %6455 = vmatprep.subr.bf16.mxu0 %v7118_v58 }
 0x417   : >> { %6475 = vmatprep.subr.bf16.mxu1 %v7118_v58 }
 0x419   : >> { %6456 = vmatpush3.bf16.msra.mxu0 %v6957_v43 }
 0x41a   : >> { %6476 = vmatpush3.bf16.msra.mxu1 %v6958_v44  ;;  %6457 = vmatprep.subr.bf16.mxu0 %v7118_v58 }
 0x41b   : >> { %6477 = vmatprep.subr.bf16.mxu1 %v7118_v58 }
 0x41d   : >> { %6458 = vmatpush3.bf16.msra.mxu0 %v6959_v45 }
 0x41e   : >> { %6478 = vmatpush3.bf16.msra.mxu1 %v6960_v46  ;;  %6459 = vmatprep.subr.bf16.mxu0 %v7118_v58 }
 0x41f   : >> { %6479 = vmatprep.subr.bf16.mxu1 %v7118_v58 }
 0x421   : >> { %6460 = vmatpush3.bf16.msra.mxu0 %v6961_v47 }
 0x422   : >> { %6480 = vmatpush3.bf16.msra.mxu1 %v6962_v48  ;;  %6461 = vmatprep.subr.bf16.mxu0 %v7118_v58 }
 0x423   : >> { %6481 = vmatprep.subr.bf16.mxu1 %v7118_v58 }
 0x425   : >> { %6462 = vmatpush3.bf16.msra.mxu0 %v6963_v50 }
 0x426   : >> { %6482 = vmatpush3.bf16.msra.mxu1 %v6964_v51  ;;  %6463 = vmatprep.subr.bf16.mxu0 %v7118_v58 }
 0x427   : >> { %6483 = vmatprep.subr.bf16.mxu1 %v7118_v58 }
 0x429   : >> { %6464 = vmatpush3.bf16.msra.mxu0 %v6965_v52 }
 0x42a   : >> { %6484 = vmatpush3.bf16.msra.mxu1 %v6966_v53  ;;  %6465 = vmatprep.subr.bf16.mxu0 %v7118_v58 }
 0x42b   : >> { %6485 = vmatprep.subr.bf16.mxu1 %v7118_v58 }
 0x42d   : >> { %6466 = vmatpush3.bf16.msra.mxu0 %v6967_v54 }
 0x42e   : >> { %6486 = vmatpush3.bf16.msra.mxu1 %v6968_v59  ;;  %6491 = vmatprep.subr.bf16.mxu0 %v7118_v58 }
 0x42f   : >> { %6511 = vmatprep.subr.bf16.mxu1 %v7118_v58 }
 0x430   : >> { %6468 = vmatmul.mubr.bf16.vlgmr.msra.gmra.mxu0 %v3054_v62 }
 0x431   : >> { %6492 = vmatpush3.bf16.msra.mxu0 %v6969_v63  ;;  %6488 = vmatmul.mubr.bf16.vlgmr.msra.gmra.mxu1 %v3167_v1 }
 0x432   : >> { %6512 = vmatpush3.bf16.msra.mxu1 %v6970_v2  ;;  %6493 = vmatprep.subr.bf16.mxu0 %v7118_v58 }
 0x433   : >> { %6513 = vmatprep.subr.bf16.mxu1 %v7118_v58  ;;  %6507 = vmatprep.mubr.msk.bf16.mxu0 %vm7119_vm10, %v7118_v58 }
 0x434   : >> { %6527 = vmatprep.mubr.msk.bf16.mxu1 %vm7119_vm10, %v7118_v58 }
 0x435   : >> { %6494 = vmatpush3.bf16.msra.mxu0 %v6971_v3 }
 0x436   : >> { %6514 = vmatpush3.bf16.msra.mxu1 %v6972_v4  ;;  %6495 = vmatprep.subr.bf16.mxu0 %v7118_v58 }
 0x437   : >> { %6515 = vmatprep.subr.bf16.mxu1 %v7118_v58 }
 0x439   : >> { %6496 = vmatpush3.bf16.msra.mxu0 %v6973_v5 }
 0x43a   : >> { %6516 = vmatpush3.bf16.msra.mxu1 %v6974_v6  ;;  %6497 = vmatprep.subr.bf16.mxu0 %v7118_v58 }
 0x43b   : >> { %6517 = vmatprep.subr.bf16.mxu1 %v7118_v58 }
 0x43d   : >> { %6498 = vmatpush3.bf16.msra.mxu0 %v6975_v7 }
 0x43e   : >> { %6518 = vmatpush3.bf16.msra.mxu1 %v6976_v8  ;;  %6499 = vmatprep.subr.bf16.mxu0 %v7118_v58 }
 0x43f   : >> { %6519 = vmatprep.subr.bf16.mxu1 %v7118_v58 }
 0x441   : >> { %6500 = vmatpush3.bf16.msra.mxu0 %v6977_v9 }
 0x442   : >> { %6520 = vmatpush3.bf16.msra.mxu1 %v6978_v10  ;;  %6501 = vmatprep.subr.bf16.mxu0 %v7118_v58 }
 0x443   : >> { %6521 = vmatprep.subr.bf16.mxu1 %v7118_v58 }
 0x445   : >> { %6502 = vmatpush3.bf16.msra.mxu0 %v6979_v11 }
 0x446   : >> { %6522 = vmatpush3.bf16.msra.mxu1 %v6980_v12  ;;  %6503 = vmatprep.subr.bf16.mxu0 %v7118_v58 }
 0x447   : >> { %6523 = vmatprep.subr.bf16.mxu1 %v7118_v58 }
 0x449   : >> { %6504 = vmatpush3.bf16.msra.mxu0 %v6981_v13 }
 0x44a   : >> { %6524 = vmatpush3.bf16.msra.mxu1 %v6982_v14  ;;  %6505 = vmatprep.subr.bf16.mxu0 %v7118_v58 }
 0x44b   : >> { %6525 = vmatprep.subr.bf16.mxu1 %v7118_v58 }
 0x44d   : >> { %6506 = vmatpush3.bf16.msra.mxu0 %v6983_v15 }
 0x44e   : >> { %6526 = vmatpush3.bf16.msra.mxu1 %v6984_v18  ;;  %6531 = vmatprep.subr.bf16.mxu0 %v7118_v58 }
 0x450   : >> { %6508 = vmatmul.mubr.bf16.vlgmr.msra.gmra.mxu0 %v3281_v21 }
 0x451   : >> { %6532 = vmatpush3.bf16.msra.mxu0 %v6985_v22  ;;  %6528 = vmatmul.mubr.bf16.vlgmr.msra.gmra.mxu1 %v3394_v23 }
 0x452   : >> { %6533 = vmatprep.subr.bf16.mxu0 %v7118_v58  ;;  %6547 = vmatprep.mubr.msk.bf16.mxu0 %vm7119_vm10, %v7118_v58 }
 0x455   : >> { %6534 = vmatpush3.bf16.msra.mxu0 %v6986_v25 }
 0x456   : >> { %6535 = vmatprep.subr.bf16.mxu0 %v7118_v58 }
 0x459   : >> { %6536 = vmatpush3.bf16.msra.mxu0 %v6987_v49 }
 0x45a   : >> { %6537 = vmatprep.subr.bf16.mxu0 %v7118_v58 }
 0x45d   : >> { %6538 = vmatpush3.bf16.msra.mxu0 %v6988_v26 }
 0x45e   : >> { %6539 = vmatprep.subr.bf16.mxu0 %v7118_v58 }
 0x461   : >> { %6540 = vmatpush3.bf16.msra.mxu0 %v6989_v28 }
 0x462   : >> { %6541 = vmatprep.subr.bf16.mxu0 %v7118_v58 }
 0x465   : >> { %6542 = vmatpush3.bf16.msra.mxu0 %v6990_v29 }
 0x466   : >> { %6543 = vmatprep.subr.bf16.mxu0 %v7118_v58 }
 0x469   : >> { %6544 = vmatpush3.bf16.msra.mxu0 %v6991_v24  ;;  %v8090_v24 = vld [vmem:[%s8447_s8] ss:$0 sm:$0xff] (%p2598_p6) }
 0x46a   : >> { %6545 = vmatprep.subr.bf16.mxu0 %v7118_v58 }
 0x46d   : >> { %6546 = vmatpush3.bf16.msra.mxu0 %v6992_v31 }
 0x470   : >> { %6548 = vmatmul.mubr.bf16.vlgmr.msra.gmra.mxu0 %v3507_v34 }
 0x4b0   : >> { %v2727_v0 = vpop.f32.mrf.mxu0 }
 0x4b1   : >> { %v2816_v35 = vpop.f32.mrf.mxu1 }
 0x4b2   : >> { %v2817_v36 = vadd.f32 %v2816_v35, %v2727_v0  ;;  %v6389_v37 = vpop.f32.mrf.mxu0 }
 0x4b3   : >> { %v6409_v38 = vpop.f32.mrf.mxu1 }
 0x4b4   : >> { %v2730_v39 = vpop.f32.mrf.mxu0 }
 0x4b5   : >> { %v2819_v40 = vpop.f32.mrf.mxu1 }
 0x4b6   : >> { %v2820_v41 = vadd.f32 %v2819_v40, %v2730_v39  ;;  %v6390_v42 = vpop.f32.mrf.mxu0 }
 0x4b7   : >> { %v6410_v43 = vpop.f32.mrf.mxu1 }
 0x4d0   : >> { %v2927_v44 = vpop.f32.mrf.mxu0 }
 0x4d1   : >> { %v2934_v45 = vadd.f32 %v2927_v44, %v2817_v36  ;;  %v3041_v46 = vpop.f32.mrf.mxu1 }
 0x4d2   : >> { %v6429_v47 = vpop.f32.mrf.mxu0 }
 0x4d3   : >> { %v3048_v48 = vadd.f32 %v3041_v46, %v2934_v45  ;;  %v6449_v50 = vpop.f32.mrf.mxu1 }
 0x4d4   : >> { %v2930_v58 = vpop.f32.mrf.mxu0 }
 0x4d5   : >> { %v2935_v51 = vadd.f32 %v2930_v58, %v2820_v41  ;;  %v3044_v52 = vpop.f32.mrf.mxu1 }
 0x4d6   : >> { %v6430_v53 = vpop.f32.mrf.mxu0 }
 0x4d7   : >> { %v3049_v54 = vadd.f32 %v3044_v52, %v2935_v51  ;;  %v6450_v55 = vpop.f32.mrf.mxu1 }
 0x4f0   : >> { %v3154_v57 = vpop.f32.mrf.mxu0 }
 0x4f1   : >> { %v3267_v59 = vpop.f32.mrf.mxu1  ;;  %v3161_v11 = vadd.f32 %v3154_v57, %v3048_v48 }
 0x4f2   : >> { %v6469_v60 = vpop.f32.mrf.mxu0 }
 0x4f3   : >> { %v6489_v61 = vpop.f32.mrf.mxu1  ;;  %v3274_v12 = vadd.f32 %v3267_v59, %v3161_v11 }
 0x4f4   : >> { %v3157_v62 = vpop.f32.mrf.mxu0 }
 0x4f5   : >> { %v3270_v63 = vpop.f32.mrf.mxu1  ;;  %v3162_v13 = vadd.f32 %v3157_v62, %v3049_v54 }
 0x4f6   : >> { %v6470_v1 = vpop.f32.mrf.mxu0 }
 0x4f7   : >> { %v6490_v2 = vpop.f32.mrf.mxu1  ;;  %v3275_v15 = vadd.f32 %v3270_v63, %v3162_v13 }
 0x510   : >> { %v3381_v3 = vpop.f32.mrf.mxu0 }
 0x511   : >> { %v3494_v4 = vpop.f32.mrf.mxu1  ;;  %v3388_v14 = vadd.f32 %v3381_v3, %v3274_v12 }
 0x512   : >> { %v6509_v5 = vpop.f32.mrf.mxu0 }
 0x513   : >> { %v6529_v6 = vpop.f32.mrf.mxu1  ;;  %v3501_v16 = vadd.f32 %v3494_v4, %v3388_v14 }
 0x514   : >> { %v3384_v7 = vpop.f32.mrf.mxu0 }
 0x515   : >> { %v3497_v8 = vpop.f32.mrf.mxu1  ;;  %v3389_v17 = vadd.f32 %v3384_v7, %v3275_v15 }
 0x516   : >> { %v6510_v9 = vpop.f32.mrf.mxu0 }
 0x517   : >> { %v6530_v10 = vpop.f32.mrf.mxu1  ;;  %v3502_v21 = vadd.f32 %v3497_v8, %v3389_v17 }
 0x530   : >> { %v3607_v18 = vpop.f32.mrf.mxu0 }
 0x531   : >> { %v3614_v19 = vadd.f32 %v3607_v18, %v3501_v16 }
 0x532   : >> { %v6549_v20 = vpop.f32.mrf.mxu0 }
 0x533   : >> { %v3622_v22 = vadd.f32 %v7747_v56, %v3614_v19 }
 0x534   : >> { %v3610_v23 = vpop.f32.mrf.mxu0 }
 0x535   : >> { %v3624_v25 = vmax.f32 %v3622_v22, 0.0  ;;  %v3615_v49 = vadd.f32 %v3610_v23, %v3502_v21 }
 0x536   : >> { %v6550_v26 = vpop.f32.mrf.mxu0 }
 0x537   : >> { %3628 = vst [vmem:[%s3627_s14] sm:$0xff] %v3624_v25  ;;  %v3623_v28 = vadd.f32 %v7747_v56, %v3615_v49  ;;  %2600 = sbr.rel (!%p2598_p6) target bundleno = 975 (0x3cf), region = 203 }
 0x539   : >> { %v3625_v29 = vmax.f32 %v3623_v28, 0.0 }
 0x53b   : >> { %3629 = vst [vmem:[%s3627_s14 + $0x8] sm:$0x3] %v3625_v29 }
 0x53c LB: >> { %v6993_v31 = vld [vmem:[%s8446_s7 + $0x78] sm:$0xff]   ;;  %v7120_v32 = vmov 0.0   ;;  %v6995_v33 = vld [vmem:[%s8446_s7 + $0x70] sm:$0xff]   ;;  %vm7121_vm11 = vmmov 0   ;;  %v6997_v0 = vld [vmem:[%s8446_s7 + $0x68] sm:$0xff]   ;;  %s3637_s24 = smul.u32 10, %s7107_s25  ;;  %s7107_s25 = sphi %s8092_s25, %s3636_s25  }
 0x53d   : >> { %6551 = vmatprep.subr.bf16.mxu0 %v7120_v32  ;;  %6571 = vmatprep.subr.bf16.mxu1 %v7120_v32  ;;  %v6994_v56 = vld [vmem:[%s8446_s7 + $0x38] sm:$0xff]   ;;  %v6996_v34 = vld [vmem:[%s8446_s7 + $0x30] sm:$0xff]   ;;  %v6998_v35 = vld [vmem:[%s8446_s7 + $0x28] sm:$0xff]  }
 0x53e   : >> { %6552 = vmatpush3.bf16.msra.mxu0 %v6993_v31  ;;  %6567 = vmatprep.mubr.msk.bf16.mxu0 %vm7121_vm11, %v7120_v32  ;;  %v6999_v36 = vld [vmem:[%s8446_s7 + $0x60] sm:$0xff]   ;;  %v7001_v38 = vld [vmem:[%s8446_s7 + $0x58] sm:$0xff]   ;;  %v7003_v40 = vld [vmem:[%s8446_s7 + $0x50] sm:$0xff]   ;;  %s8164_s14 = scalar_lea.vmem [#allocation5], %s3637_s24 }
 0x53f   : >> { %6572 = vmatpush3.bf16.msra.mxu1 %v6994_v56  ;;  %6553 = vmatprep.subr.bf16.mxu0 %v7120_v32  ;;  %v7000_v37 = vld [vmem:[%s8446_s7 + $0x20] sm:$0xff]   ;;  %v7002_v39 = vld [vmem:[%s8446_s7 + $0x18] sm:$0xff]   ;;  %v7004_v41 = vld [vmem:[%s8446_s7 + $0x10] sm:$0xff]  }
 0x540   : >> { %6573 = vmatprep.subr.bf16.mxu1 %v7120_v32  ;;  %6587 = vmatprep.mubr.msk.bf16.mxu1 %vm7121_vm11, %v7120_v32  ;;  %v7005_v42 = vld [vmem:[%s8446_s7 + $0x48] sm:$0xff]   ;;  %v7007_v44 = vld [vmem:[%s8446_s7 + $0x40] sm:$0xff]   ;;  %v7009_v58 = vld [vmem:[%s8446_s7 + $0xb8] sm:$0xff]  }
 0x541   : >> { %v7006_v43 = vld [vmem:[%s8446_s7 + $0x8] sm:$0xff]   ;;  %v7008_v45 = vld [vmem:[%s8446_s7] sm:$0xff]   ;;  %v7010_v51 = vld [vmem:[%s8446_s7 + $0xf8] sm:$0xff]  }
 0x542   : >> { %6554 = vmatpush3.bf16.msra.mxu0 %v6995_v33  ;;  %v5474_v46 = vld [vmem:[%s8164_s14 + $0x1] sm:$0xff]  ;;  %v7011_v52 = vld [vmem:[%s8446_s7 + $0xb0] sm:$0xff]   ;;  %v7017_v60 = vld [vmem:[%s8446_s7 + $0x98] sm:$0xff]  }
 0x543   : >> { %6574 = vmatpush3.bf16.msra.mxu1 %v6996_v34  ;;  %6555 = vmatprep.subr.bf16.mxu0 %v7120_v32  ;;  %v3639_v47 = vld [vmem:[%s8164_s14] sm:$0xff]  ;;  %v3660_v48 = vpack.c.bf16 %v5474_v46, %v5474_v46  ;;  %v7012_v53 = vld [vmem:[%s8446_s7 + $0xf0] sm:$0xff]   ;;  %v7013_v54 = vld [vmem:[%s8446_s7 + $0xa8] sm:$0xff]  }
 0x544   : >> { %6575 = vmatprep.subr.bf16.mxu1 %v7120_v32  ;;  %v3640_v50 = vpack.c.bf16 %v3639_v47, %v3639_v47  ;;  %v7014_v55 = vld [vmem:[%s8446_s7 + $0xe8] sm:$0xff]   ;;  %v7015_v57 = vld [vmem:[%s8446_s7 + $0xa0] sm:$0xff]   ;;  %v7018_v61 = vld [vmem:[%s8446_s7 + $0xd8] sm:$0xff]  }
 0x545   : >> { %v7016_v59 = vld [vmem:[%s8446_s7 + $0xe0] sm:$0xff]   ;;  %v7019_v62 = vld [vmem:[%s8446_s7 + $0x90] sm:$0xff]   ;;  %v7021_v1 = vld [vmem:[%s8446_s7 + $0x88] sm:$0xff]  }
 0x546   : >> { %6556 = vmatpush3.bf16.msra.mxu0 %v6997_v0  ;;  %v7020_v63 = vld [vmem:[%s8446_s7 + $0xd0] sm:$0xff]   ;;  %v7022_v2 = vld [vmem:[%s8446_s7 + $0xc8] sm:$0xff]   ;;  %v7023_v3 = vld [vmem:[%s8446_s7 + $0x80] sm:$0xff]  }
 0x547   : >> { %6576 = vmatpush3.bf16.msra.mxu1 %v6998_v35  ;;  %6557 = vmatprep.subr.bf16.mxu0 %v7120_v32  ;;  %v7024_v4 = vld [vmem:[%s8446_s7 + $0xc0] sm:$0xff]   ;;  %v5532_v6 = vld [vmem:[%s8164_s14 + $0xa] sm:$0xff]  ;;  %v7025_v8 = vld [vmem:[%s8446_s7 + $0x138] sm:$0xff]  }
 0x548   : >> { %6577 = vmatprep.subr.bf16.mxu1 %v7120_v32  ;;  %v5507_v5 = vld [vmem:[%s8164_s14 + $0x2] sm:$0xff]  ;;  %v3968_v9 = vpack.c.bf16 %v5532_v6, %v5532_v6  ;;  %v7026_v10 = vld [vmem:[%s8446_s7 + $0x178] sm:$0xff]   ;;  %v7027_v11 = vld [vmem:[%s8446_s7 + $0x130] sm:$0xff]  }
 0x549   : >> { %v3857_v7 = vpack.c.bf16 %v5507_v5, %v5507_v5  ;;  %v7028_v12 = vld [vmem:[%s8446_s7 + $0x170] sm:$0xff]   ;;  %v7029_v13 = vld [vmem:[%s8446_s7 + $0x128] sm:$0xff]   ;;  %v7031_v15 = vld [vmem:[%s8446_s7 + $0x120] sm:$0xff]  }
 0x54a   : >> { %6558 = vmatpush3.bf16.msra.mxu0 %v6999_v36  ;;  %v7030_v14 = vld [vmem:[%s8446_s7 + $0x168] sm:$0xff]   ;;  %v7032_v16 = vld [vmem:[%s8446_s7 + $0x160] sm:$0xff]   ;;  %v7033_v17 = vld [vmem:[%s8446_s7 + $0x118] sm:$0xff]  }
 0x54b   : >> { %6578 = vmatpush3.bf16.msra.mxu1 %v7000_v37  ;;  %6559 = vmatprep.subr.bf16.mxu0 %v7120_v32  ;;  %v7034_v18 = vld [vmem:[%s8446_s7 + $0x158] sm:$0xff]   ;;  %v7035_v19 = vld [vmem:[%s8446_s7 + $0x110] sm:$0xff]   ;;  %v7037_v21 = vld [vmem:[%s8446_s7 + $0x108] sm:$0xff]  }
 0x54c   : >> { %6579 = vmatprep.subr.bf16.mxu1 %v7120_v32  ;;  %v7036_v20 = vld [vmem:[%s8446_s7 + $0x150] sm:$0xff]   ;;  %v7038_v22 = vld [vmem:[%s8446_s7 + $0x148] sm:$0xff]   ;;  %v7039_v23 = vld [vmem:[%s8446_s7 + $0x100] sm:$0xff]  }
 0x54d   : >> { %v5557_v25 = vld [vmem:[%s8164_s14 + $0xb] sm:$0xff]  ;;  %v7040_v49 = vld [vmem:[%s8446_s7 + $0x140] sm:$0xff]   ;;  %v7041_v29 = vld [vmem:[%s8446_s7 + $0x1b8] sm:$0xff]  }
 0x54e   : >> { %6560 = vmatpush3.bf16.msra.mxu0 %v7001_v38  ;;  %v5582_v26 = vld [vmem:[%s8164_s14 + $0xc] sm:$0xff]  ;;  %v4078_v28 = vpack.c.bf16 %v5557_v25, %v5557_v25  ;;  %v7042_v56 = vld [vmem:[%s8446_s7 + $0x1f8] sm:$0xff]   ;;  %v7047_v36 = vld [vmem:[%s8446_s7 + $0x1a0] sm:$0xff]  }
 0x54f   : >> { %6580 = vmatpush3.bf16.msra.mxu1 %v7002_v39  ;;  %6561 = vmatprep.subr.bf16.mxu0 %v7120_v32  ;;  %v4188_v31 = vpack.c.bf16 %v5582_v26, %v5582_v26  ;;  %v7043_v33 = vld [vmem:[%s8446_s7 + $0x1b0] sm:$0xff]   ;;  %v7045_v0 = vld [vmem:[%s8446_s7 + $0x1a8] sm:$0xff]   ;;  %v7048_v37 = vld [vmem:[%s8446_s7 + $0x1e0] sm:$0xff]  }
 0x550   : >> { %6581 = vmatprep.subr.bf16.mxu1 %v7120_v32  ;;  %v7044_v34 = vld [vmem:[%s8446_s7 + $0x1f0] sm:$0xff]   ;;  %v7046_v35 = vld [vmem:[%s8446_s7 + $0x1e8] sm:$0xff]   ;;  %v7049_v38 = vld [vmem:[%s8446_s7 + $0x198] sm:$0xff]  }
 0x551   : >> { %v7050_v39 = vld [vmem:[%s8446_s7 + $0x1d8] sm:$0xff]   ;;  %v7056_v46 = vld [vmem:[%s8446_s7 + $0x1c0] sm:$0xff]  }
 0x552   : >> { %6562 = vmatpush3.bf16.msra.mxu0 %v7003_v40  ;;  %v7051_v40 = vld [vmem:[%s8446_s7 + $0x190] sm:$0xff]  }
 0x553   : >> { %6582 = vmatpush3.bf16.msra.mxu1 %v7004_v41  ;;  %6563 = vmatprep.subr.bf16.mxu0 %v7120_v32  ;;  %v7052_v41 = vld [vmem:[%s8446_s7 + $0x1d0] sm:$0xff]  }
 0x554   : >> { %6583 = vmatprep.subr.bf16.mxu1 %v7120_v32  ;;  %v5632_v47 = vld [vmem:[%s8164_s14 + $0x15] sm:$0xff] }
 0x556   : >> { %6564 = vmatpush3.bf16.msra.mxu0 %v7005_v42  ;;  %v7053_v42 = vld [vmem:[%s8446_s7 + $0x188] sm:$0xff]  }
 0x557   : >> { %6584 = vmatpush3.bf16.msra.mxu1 %v7006_v43  ;;  %6565 = vmatprep.subr.bf16.mxu0 %v7120_v32  ;;  %v7054_v43 = vld [vmem:[%s8446_s7 + $0x1c8] sm:$0xff]  }
 0x558   : >> { %6585 = vmatprep.subr.bf16.mxu1 %v7120_v32 }
 0x55a   : >> { %6566 = vmatpush3.bf16.msra.mxu0 %v7007_v44  ;;  %v7055_v44 = vld [vmem:[%s8446_s7 + $0x180] sm:$0xff]  }
 0x55b   : >> { %6586 = vmatpush3.bf16.msra.mxu1 %v7008_v45  ;;  %6591 = vmatprep.subr.bf16.mxu0 %v7120_v32  ;;  %v5607_v45 = vld [vmem:[%s8164_s14 + $0x14] sm:$0xff] }
 0x55c   : >> { %6611 = vmatprep.subr.bf16.mxu1 %v7120_v32 }
 0x55d   : >> { %6568 = vmatmul.mubr.bf16.vlgmr.msra.gmra.mxu0 %v3660_v48  ;;  %v4299_v48 = vpack.c.bf16 %v5607_v45, %v5607_v45 }
 0x55e   : >> { %6588 = vmatmul.mubr.bf16.vlgmr.msra.gmra.mxu1 %v3640_v50  ;;  %6592 = vmatpush3.bf16.msra.mxu0 %v7009_v58  ;;  %v7057_v50 = vld [vmem:[%s8446_s7 + $0x238] sm:$0xff]   ;;  %v4409_v58 = vpack.c.bf16 %v5632_v47, %v5632_v47 }
 0x55f   : >> { %6612 = vmatpush3.bf16.msra.mxu1 %v7010_v51  ;;  %6593 = vmatprep.subr.bf16.mxu0 %v7120_v32  ;;  %v7058_v51 = vld [vmem:[%s8446_s7 + $0x230] sm:$0xff]  }
 0x560   : >> { %6613 = vmatprep.subr.bf16.mxu1 %v7120_v32  ;;  %6607 = vmatprep.mubr.msk.bf16.mxu0 %vm7121_vm11, %v7120_v32 }
 0x561   : >> { %6627 = vmatprep.mubr.msk.bf16.mxu1 %vm7121_vm11, %v7120_v32 }
 0x562   : >> { %6594 = vmatpush3.bf16.msra.mxu0 %v7011_v52  ;;  %v7059_v52 = vld [vmem:[%s8446_s7 + $0x228] sm:$0xff]  }
 0x563   : >> { %6614 = vmatpush3.bf16.msra.mxu1 %v7012_v53  ;;  %6595 = vmatprep.subr.bf16.mxu0 %v7120_v32  ;;  %v7060_v53 = vld [vmem:[%s8446_s7 + $0x220] sm:$0xff]  }
 0x564   : >> { %6615 = vmatprep.subr.bf16.mxu1 %v7120_v32 }
 0x566   : >> { %6596 = vmatpush3.bf16.msra.mxu0 %v7013_v54  ;;  %v7061_v54 = vld [vmem:[%s8446_s7 + $0x218] sm:$0xff]  }
 0x567   : >> { %6616 = vmatpush3.bf16.msra.mxu1 %v7014_v55  ;;  %6597 = vmatprep.subr.bf16.mxu0 %v7120_v32  ;;  %v7062_v55 = vld [vmem:[%s8446_s7 + $0x210] sm:$0xff]  }
 0x568   : >> { %6617 = vmatprep.subr.bf16.mxu1 %v7120_v32 }
 0x56a   : >> { %6598 = vmatpush3.bf16.msra.mxu0 %v7015_v57  ;;  %v7063_v57 = vld [vmem:[%s8446_s7 + $0x208] sm:$0xff]  }
 0x56b   : >> { %6618 = vmatpush3.bf16.msra.mxu1 %v7016_v59  ;;  %6599 = vmatprep.subr.bf16.mxu0 %v7120_v32  ;;  %v7064_v59 = vld [vmem:[%s8446_s7 + $0x200] sm:$0xff]  }
 0x56c   : >> { %6619 = vmatprep.subr.bf16.mxu1 %v7120_v32 }
 0x56e   : >> { %6600 = vmatpush3.bf16.msra.mxu0 %v7017_v60  ;;  %v5657_v60 = vld [vmem:[%s8164_s14 + $0x16] sm:$0xff]  ;;  %s5683_s14 = sshll.u32 %s7107_s25, 3  ;;  %s3636_s25 = sadd.s32 1, %s7107_s25  }
 0x56f   : >> { %6620 = vmatpush3.bf16.msra.mxu1 %v7018_v61  ;;  %6601 = vmatprep.subr.bf16.mxu0 %v7120_v32  ;;  %v4519_v61 = vpack.c.bf16 %v5657_v60, %v5657_v60  ;;  %s4635_s27 = scalar_lea.vmem [#allocation6], %s5683_s14  ;;  %p3633_p7 = scmp.ge.s32.totalorder %s3636_s25, 8  }
 0x570   : >> { %6621 = vmatprep.subr.bf16.mxu1 %v7120_v32  ;;  %v4637_v45 = vpack.c.bf16 (%p3633_p7), %v7724_v27, %v7724_v27  ;;  %s8424_s28 = smov (%p3633_p7), 0  }
 0x572   : >> { %6602 = vmatpush3.bf16.msra.mxu0 %v7019_v62 }
 0x573   : >> { %6622 = vmatpush3.bf16.msra.mxu1 %v7020_v63  ;;  %6603 = vmatprep.subr.bf16.mxu0 %v7120_v32 }
 0x574   : >> { %6623 = vmatprep.subr.bf16.mxu1 %v7120_v32 }
 0x576   : >> { %6604 = vmatpush3.bf16.msra.mxu0 %v7021_v1 }
 0x577   : >> { %6624 = vmatpush3.bf16.msra.mxu1 %v7022_v2  ;;  %6605 = vmatprep.subr.bf16.mxu0 %v7120_v32 }
 0x578   : >> { %6625 = vmatprep.subr.bf16.mxu1 %v7120_v32 }
 0x57a   : >> { %6606 = vmatpush3.bf16.msra.mxu0 %v7023_v3 }
 0x57b   : >> { %6626 = vmatpush3.bf16.msra.mxu1 %v7024_v4  ;;  %6631 = vmatprep.subr.bf16.mxu0 %v7120_v32 }
 0x57c   : >> { %6651 = vmatprep.subr.bf16.mxu1 %v7120_v32 }
 0x57d   : >> { %6608 = vmatmul.mubr.bf16.vlgmr.msra.gmra.mxu0 %v3857_v7 }
 0x57e   : >> { %6632 = vmatpush3.bf16.msra.mxu0 %v7025_v8  ;;  %6628 = vmatmul.mubr.bf16.vlgmr.msra.gmra.mxu1 %v3968_v9 }
 0x57f   : >> { %6652 = vmatpush3.bf16.msra.mxu1 %v7026_v10  ;;  %6633 = vmatprep.subr.bf16.mxu0 %v7120_v32 }
 0x580   : >> { %6653 = vmatprep.subr.bf16.mxu1 %v7120_v32  ;;  %6647 = vmatprep.mubr.msk.bf16.mxu0 %vm7121_vm11, %v7120_v32 }
 0x581   : >> { %6667 = vmatprep.mubr.msk.bf16.mxu1 %vm7121_vm11, %v7120_v32 }
 0x582   : >> { %6634 = vmatpush3.bf16.msra.mxu0 %v7027_v11 }
 0x583   : >> { %6654 = vmatpush3.bf16.msra.mxu1 %v7028_v12  ;;  %6635 = vmatprep.subr.bf16.mxu0 %v7120_v32 }
 0x584   : >> { %6655 = vmatprep.subr.bf16.mxu1 %v7120_v32 }
 0x586   : >> { %6636 = vmatpush3.bf16.msra.mxu0 %v7029_v13 }
 0x587   : >> { %6656 = vmatpush3.bf16.msra.mxu1 %v7030_v14  ;;  %6637 = vmatprep.subr.bf16.mxu0 %v7120_v32 }
 0x588   : >> { %6657 = vmatprep.subr.bf16.mxu1 %v7120_v32 }
 0x58a   : >> { %6638 = vmatpush3.bf16.msra.mxu0 %v7031_v15 }
 0x58b   : >> { %6658 = vmatpush3.bf16.msra.mxu1 %v7032_v16  ;;  %6639 = vmatprep.subr.bf16.mxu0 %v7120_v32 }
 0x58c   : >> { %6659 = vmatprep.subr.bf16.mxu1 %v7120_v32 }
 0x58e   : >> { %6640 = vmatpush3.bf16.msra.mxu0 %v7033_v17 }
 0x58f   : >> { %6660 = vmatpush3.bf16.msra.mxu1 %v7034_v18  ;;  %6641 = vmatprep.subr.bf16.mxu0 %v7120_v32 }
 0x590   : >> { %6661 = vmatprep.subr.bf16.mxu1 %v7120_v32 }
 0x592   : >> { %6642 = vmatpush3.bf16.msra.mxu0 %v7035_v19 }
 0x593   : >> { %6662 = vmatpush3.bf16.msra.mxu1 %v7036_v20  ;;  %6643 = vmatprep.subr.bf16.mxu0 %v7120_v32 }
 0x594   : >> { %6663 = vmatprep.subr.bf16.mxu1 %v7120_v32 }
 0x596   : >> { %6644 = vmatpush3.bf16.msra.mxu0 %v7037_v21 }
 0x597   : >> { %6664 = vmatpush3.bf16.msra.mxu1 %v7038_v22  ;;  %6645 = vmatprep.subr.bf16.mxu0 %v7120_v32 }
 0x598   : >> { %6665 = vmatprep.subr.bf16.mxu1 %v7120_v32 }
 0x59a   : >> { %6646 = vmatpush3.bf16.msra.mxu0 %v7039_v23 }
 0x59b   : >> { %6666 = vmatpush3.bf16.msra.mxu1 %v7040_v49  ;;  %6671 = vmatprep.subr.bf16.mxu0 %v7120_v32 }
 0x59c   : >> { %6691 = vmatprep.subr.bf16.mxu1 %v7120_v32 }
 0x59d   : >> { %6648 = vmatmul.mubr.bf16.vlgmr.msra.gmra.mxu0 %v4078_v28 }
 0x59e   : >> { %6672 = vmatpush3.bf16.msra.mxu0 %v7041_v29  ;;  %6668 = vmatmul.mubr.bf16.vlgmr.msra.gmra.mxu1 %v4188_v31 }
 0x59f   : >> { %6692 = vmatpush3.bf16.msra.mxu1 %v7042_v56  ;;  %6673 = vmatprep.subr.bf16.mxu0 %v7120_v32 }
 0x5a0   : >> { %6693 = vmatprep.subr.bf16.mxu1 %v7120_v32  ;;  %6687 = vmatprep.mubr.msk.bf16.mxu0 %vm7121_vm11, %v7120_v32 }
 0x5a1   : >> { %6707 = vmatprep.mubr.msk.bf16.mxu1 %vm7121_vm11, %v7120_v32 }
 0x5a2   : >> { %6674 = vmatpush3.bf16.msra.mxu0 %v7043_v33 }
 0x5a3   : >> { %6694 = vmatpush3.bf16.msra.mxu1 %v7044_v34  ;;  %6675 = vmatprep.subr.bf16.mxu0 %v7120_v32 }
 0x5a4   : >> { %6695 = vmatprep.subr.bf16.mxu1 %v7120_v32 }
 0x5a6   : >> { %6676 = vmatpush3.bf16.msra.mxu0 %v7045_v0 }
 0x5a7   : >> { %6696 = vmatpush3.bf16.msra.mxu1 %v7046_v35  ;;  %6677 = vmatprep.subr.bf16.mxu0 %v7120_v32 }
 0x5a8   : >> { %6697 = vmatprep.subr.bf16.mxu1 %v7120_v32 }
 0x5aa   : >> { %6678 = vmatpush3.bf16.msra.mxu0 %v7047_v36 }
 0x5ab   : >> { %6698 = vmatpush3.bf16.msra.mxu1 %v7048_v37  ;;  %6679 = vmatprep.subr.bf16.mxu0 %v7120_v32 }
 0x5ac   : >> { %6699 = vmatprep.subr.bf16.mxu1 %v7120_v32 }
 0x5ae   : >> { %6680 = vmatpush3.bf16.msra.mxu0 %v7049_v38 }
 0x5af   : >> { %6700 = vmatpush3.bf16.msra.mxu1 %v7050_v39  ;;  %6681 = vmatprep.subr.bf16.mxu0 %v7120_v32 }
 0x5b0   : >> { %6701 = vmatprep.subr.bf16.mxu1 %v7120_v32 }
 0x5b2   : >> { %6682 = vmatpush3.bf16.msra.mxu0 %v7051_v40 }
 0x5b3   : >> { %6702 = vmatpush3.bf16.msra.mxu1 %v7052_v41  ;;  %6683 = vmatprep.subr.bf16.mxu0 %v7120_v32 }
 0x5b4   : >> { %6703 = vmatprep.subr.bf16.mxu1 %v7120_v32 }
 0x5b6   : >> { %6684 = vmatpush3.bf16.msra.mxu0 %v7053_v42 }
 0x5b7   : >> { %6704 = vmatpush3.bf16.msra.mxu1 %v7054_v43  ;;  %6685 = vmatprep.subr.bf16.mxu0 %v7120_v32 }
 0x5b8   : >> { %6705 = vmatprep.subr.bf16.mxu1 %v7120_v32 }
 0x5ba   : >> { %6686 = vmatpush3.bf16.msra.mxu0 %v7055_v44 }
 0x5bb   : >> { %6706 = vmatpush3.bf16.msra.mxu1 %v7056_v46  ;;  %6711 = vmatprep.subr.bf16.mxu0 %v7120_v32  ;;  %v4638_v46 = vpack.c.bf16 (%p3633_p7), %v7728_v30, %v7728_v30 }
 0x5bd   : >> { %6688 = vmatmul.mubr.bf16.vlgmr.msra.gmra.mxu0 %v4299_v48 }
 0x5be   : >> { %6712 = vmatpush3.bf16.msra.mxu0 %v7057_v50  ;;  %6708 = vmatmul.mubr.bf16.vlgmr.msra.gmra.mxu1 %v4409_v58 }
 0x5bf   : >> { %6713 = vmatprep.subr.bf16.mxu0 %v7120_v32  ;;  %6727 = vmatprep.mubr.msk.bf16.mxu0 %vm7121_vm11, %v7120_v32 }
 0x5c2   : >> { %6714 = vmatpush3.bf16.msra.mxu0 %v7058_v51 }
 0x5c3   : >> { %6715 = vmatprep.subr.bf16.mxu0 %v7120_v32 }
 0x5c6   : >> { %6716 = vmatpush3.bf16.msra.mxu0 %v7059_v52 }
 0x5c7   : >> { %6717 = vmatprep.subr.bf16.mxu0 %v7120_v32 }
 0x5ca   : >> { %6718 = vmatpush3.bf16.msra.mxu0 %v7060_v53 }
 0x5cb   : >> { %6719 = vmatprep.subr.bf16.mxu0 %v7120_v32 }
 0x5ce   : >> { %6720 = vmatpush3.bf16.msra.mxu0 %v7061_v54 }
 0x5cf   : >> { %6721 = vmatprep.subr.bf16.mxu0 %v7120_v32 }
 0x5d2   : >> { %6722 = vmatpush3.bf16.msra.mxu0 %v7062_v55 }
 0x5d3   : >> { %6723 = vmatprep.subr.bf16.mxu0 %v7120_v32 }
 0x5d6   : >> { %6724 = vmatpush3.bf16.msra.mxu0 %v7063_v57 }
 0x5d7   : >> { %6725 = vmatprep.subr.bf16.mxu0 %v7120_v32 }
 0x5da   : >> { %6726 = vmatpush3.bf16.msra.mxu0 %v7064_v59 }
 0x5dd   : >> { %6728 = vmatmul.mubr.bf16.vlgmr.msra.gmra.mxu0 %v4519_v61 }
 0x61d   : >> { %v3760_v62 = vpop.f32.mrf.mxu0 }
 0x61e   : >> { %v3848_v63 = vpop.f32.mrf.mxu1 }
 0x61f   : >> { %v3849_v1 = vadd.f32 %v3848_v63, %v3760_v62  ;;  %v6569_v2 = vpop.f32.mrf.mxu0 }
 0x620   : >> { %v6589_v3 = vpop.f32.mrf.mxu1 }
 0x621   : >> { %v3763_v4 = vpop.f32.mrf.mxu0 }
 0x622   : >> { %v3851_v5 = vpop.f32.mrf.mxu1 }
 0x623   : >> { %v6570_v6 = vpop.f32.mrf.mxu0 }
 0x624   : >> { %v6590_v7 = vpop.f32.mrf.mxu1 }
 0x63d   : >> { %v3957_v8 = vpop.f32.mrf.mxu0 }
 0x63e   : >> { %v3963_v9 = vadd.f32 %v3957_v8, %v3849_v1  ;;  %v4068_v10 = vpop.f32.mrf.mxu1 }
 0x63f   : >> { %v6609_v11 = vpop.f32.mrf.mxu0 }
 0x640   : >> { %v4074_v12 = vadd.f32 %v4068_v10, %v3963_v9  ;;  %v6629_v13 = vpop.f32.mrf.mxu1 }
 0x641   : >> { %v3960_v14 = vpop.f32.mrf.mxu0 }
 0x642   : >> { %v4071_v32 = vpop.f32.mrf.mxu1 }
 0x643   : >> { %v6610_v15 = vpop.f32.mrf.mxu0 }
 0x644   : >> { %v6630_v16 = vpop.f32.mrf.mxu1 }
 0x65d   : >> { %v4178_v17 = vpop.f32.mrf.mxu0 }
 0x65e   : >> { %v4288_v18 = vpop.f32.mrf.mxu1  ;;  %v4184_v0 = vadd.f32 %v4178_v17, %v4074_v12 }
 0x65f   : >> { %v6649_v19 = vpop.f32.mrf.mxu0 }
 0x660   : >> { %v6669_v20 = vpop.f32.mrf.mxu1  ;;  %v4294_v35 = vadd.f32 %v4288_v18, %v4184_v0 }
 0x661   : >> { %v4181_v21 = vpop.f32.mrf.mxu0 }
 0x662   : >> { %v4291_v22 = vpop.f32.mrf.mxu1 }
 0x663   : >> { %v6650_v23 = vpop.f32.mrf.mxu0 }
 0x664   : >> { %v6670_v25 = vpop.f32.mrf.mxu1 }
 0x67d   : >> { %v4399_v49 = vpop.f32.mrf.mxu0 }
 0x67e   : >> { %v4509_v26 = vpop.f32.mrf.mxu1  ;;  %v4405_v36 = vadd.f32 %v4399_v49, %v4294_v35 }
 0x67f   : >> { %v6689_v28 = vpop.f32.mrf.mxu0 }
 0x680   : >> { %v6709_v29 = vpop.f32.mrf.mxu1  ;;  %v4515_v37 = vadd.f32 %v4509_v26, %v4405_v36 }
 0x681   : >> { %v4402_v31 = vpop.f32.mrf.mxu0 }
 0x682   : >> { %v4512_v56 = vpop.f32.mrf.mxu1 }
 0x683   : >> { %v6690_v33 = vpop.f32.mrf.mxu0 }
 0x684   : >> { %v6710_v34 = vpop.f32.mrf.mxu1 }
 0x69d   : >> { %v4619_v38 = vpop.f32.mrf.mxu0 }
 0x69e   : >> { %v4625_v39 = vadd.f32 %v4619_v38, %v4515_v37 }
 0x69f   : >> { %v6729_v40 = vpop.f32.mrf.mxu0 }
 0x6a0   : >> { %v4632_v41 = vadd.f32 %v8090_v24, %v4625_v39  ;;  %3635 = sbr.rel (!%p3633_p7) target bundleno = 1340 (0x53c), region = 214 }
 0x6a1   : >> { %v4622_v42 = vpop.f32.mrf.mxu0 }
 0x6a2   : >> { %v4633_v43 = vmax.f32 %v4632_v41, 0.0 }
 0x6a3   : >> { %v6730_v44 = vpop.f32.mrf.mxu0 }
 0x6a4   : >> { %4636 = vst [vmem:[%s4635_s27] sm:$0xff] %v4633_v43 }
 0x6a5 LB: >> { %v7122_v47 = vmov 0.0   ;;  %s5684_s25 = sshll.u32 %s7111_s28, 4  ;;  %vm7123_vm12 = vmmov 0   ;;  %vm4655_vm13 = vcmask 64512   ;;  %s5690_s10 = sshll.u32 %s7111_s28, 2  ;;  %s7111_s28 = sphi %s8424_s28, %s4644_s28  }
 0x6a6   : >> { %6731 = vmatprep.subr.bf16.mxu0 %v7122_v47  ;;  %6737 = vmatprep.subr.bf16.mxu1 %v7122_v47  ;;  %s4646_s29 = scalar_lea.vmem [#allocation6], %s5684_s25  ;;  %s4747_s12 = scalar_lea.vmem %s7195_s17, %s5690_s10 }
 0x6a7   : >> { %6733 = vmatprep.mubr.msk.bf16.mxu0 %vm7123_vm12, %v7122_v47  ;;  %6739 = vmatprep.mubr.msk.bf16.mxu1 %vm7123_vm12, %v7122_v47  ;;  %s4644_s28 = sadd.s32 1, %s7111_s28  }
 0x6a8   : >> { %p4641_p8 = scmp.ge.s32.totalorder %s4644_s28, 4  }
 0x6ab   : >> { %v4647_v27 = vld [vmem:[%s4646_s29] sm:$0xff]  ;;  %v5687_v30 = vld [vmem:[%s4646_s29 + $0x8] sm:$0xff] }
 0x6ac   : >> { %v4653_v24 = vmax.f32 %v4647_v27, %v5687_v30 }
 0x6ae   : >> { %v4654_v48 = vpack.c.bf16 %v4653_v24, %v4653_v24 }
 0x6b0   : >> { %v4660_v50 = vsel %vm776_vm0, %v4654_v48, 0 }
 0x6b1   : >> { %6732 = vmatpush3.bf16.msra.mxu0 %v4660_v50  ;;  %6738 = vmatpush3.bf16.msra.mxu1 %v4660_v50 }
 0x6b4   : >> { %6734 = vmatmul.mubr.msk.bf16.vlgmr.msra.gmra.mxu0 %vm4655_vm13, %v4637_v45  ;;  %6740 = vmatmul.mubr.msk.bf16.vlgmr.msra.gmra.mxu1 %vm4655_vm13, %v4638_v46 }
 0x774   : >> { %v4696_v58 = vpop.f32.mrf.mxu0  ;;  %v4739_v51 = vpop.f32.mrf.mxu1 }
 0x775   : >> { %v4745_v52 = vmax.f32 %v4696_v58, %v4739_v51 }
 0x776   : >> { %v6735_v53 = vpop.f32.mrf.mxu0  ;;  %v6741_v54 = vpop.f32.mrf.mxu1  ;;  %4643 = sbr.rel (!%p4641_p8) target bundleno = 1701 (0x6a5), region = 225 }
 0x777   : >> { %4748 = vst [vmem:[%s4747_s12] sm:$0xf] %v4745_v52 }
 0x778   : >> { %v4699_v55 = vpop.f32.mrf.mxu0  ;;  %v4742_v57 = vpop.f32.mrf.mxu1 }
 0x77a   : >> { %v6736_v59 = vpop.f32.mrf.mxu0  ;;  %v6742_v60 = vpop.f32.mrf.mxu1 }
 0x77b PF: > { %s19_s30 = sadd.s32 1, %s7091_s30  }
 0x77c   : > { %p16_p9 = scmp.ge.s32.totalorder %s19_s30, 4  }
 0x77e   :  { %18 = sbr.rel (!%p16_p9) target bundleno = 1 (0x1), region = 236 }

// kernel: custom_model_forward.3
= control target key start
LH: loop header
LB: loop body
LE: loop exit
PB: predicated region body
PF: predicated region fallthrough
CT: control target
= control target key end

     0   :  { %s4173_s1 = inlined_call_operand.vmem [shape: bf16[2048,256], index: 1, kind: input, shape index: {}]   ;;  %s4174_s0 = inlined_call_operand.vmem [shape: f32[8,2048], index: 0, kind: input, shape index: {}]   ;;  %s4175_s2 = inlined_call_operand.vmem [shape: f32[1,256], index: 2, kind: input, shape index: {}]   ;;  %s4176_s3 = inlined_call_operand.vmem [shape: bf16[256,256], index: 3, kind: input, shape index: {}]   ;;  %s4177_s5 = inlined_call_operand.vmem [shape: bf16[256,128], index: 5, kind: input, shape index: {}]   ;;  %s4178_s4 = inlined_call_operand.vmem [shape: f32[1,256], index: 4, kind: input, shape index: {}]   ;;  %s4179_s6 = inlined_call_operand.vmem [shape: f32[1,128], index: 6, kind: input, shape index: {}]   ;;  %s4180_s7 = inlined_call_operand.vmem [shape: f32[8,128], index: 7, kind: output, shape index: {}]  }
   0x1   :  { %v2695_v0 = vld [vmem:[%s4173_s1 + $0x74] ss:$8 sps:$4 sm:$0xff]   ;;  %v2699_v2 = vld [vmem:[%s4173_s1 + $0x70] ss:$8 sps:$4 sm:$0xff]   ;;  %v2701_v4 = vld [vmem:[%s4173_s1 + $0x64] ss:$8 sps:$4 sm:$0xff]  }
   0x2   :  { %v2697_v1 = vld [vmem:[%s4173_s1 + $0x174] ss:$8 sps:$4 sm:$0xff]   ;;  %1607 = vmatprep.subr.bf16.mxu0 %v2695_v0  ;;  %v2700_v3 = vld [vmem:[%s4173_s1 + $0x170] ss:$8 sps:$4 sm:$0xff]   ;;  %v2703_v5 = vld [vmem:[%s4173_s1 + $0x164] ss:$8 sps:$4 sm:$0xff]  }
   0x3   :  { %1648 = vmatprep.subr.bf16.mxu1 %v2697_v1  ;;  %1608 = vmatpush1.bf16.msra.mxu0 %v2699_v2  ;;  %v2705_v6 = vld [vmem:[%s4173_s1 + $0x60] ss:$8 sps:$4 sm:$0xff]   ;;  %v2707_v8 = vld [vmem:[%s4173_s1 + $0x54] ss:$8 sps:$4 sm:$0xff]   ;;  %v2711_v10 = vld [vmem:[%s4173_s1 + $0x50] ss:$8 sps:$4 sm:$0xff]  }
   0x4   :  { %1649 = vmatpush1.bf16.msra.mxu1 %v2700_v3  ;;  %1609 = vmatprep.subr.bf16.mxu0 %v2701_v4  ;;  %v2706_v7 = vld [vmem:[%s4173_s1 + $0x160] ss:$8 sps:$4 sm:$0xff]   ;;  %v2709_v9 = vld [vmem:[%s4173_s1 + $0x154] ss:$8 sps:$4 sm:$0xff]   ;;  %v2712_v11 = vld [vmem:[%s4173_s1 + $0x150] ss:$8 sps:$4 sm:$0xff]  }
   0x5   :  { %1650 = vmatprep.subr.bf16.mxu1 %v2703_v5  ;;  %v2713_v12 = vld [vmem:[%s4173_s1 + $0x44] ss:$8 sps:$4 sm:$0xff]   ;;  %v2717_v14 = vld [vmem:[%s4173_s1 + $0x40] ss:$8 sps:$4 sm:$0xff]   ;;  %v2719_v16 = vld [vmem:[%s4173_s1 + $0x34] ss:$8 sps:$4 sm:$0xff]  }
   0x6   :  { %v2715_v13 = vld [vmem:[%s4173_s1 + $0x144] ss:$8 sps:$4 sm:$0xff]   ;;  %v2718_v15 = vld [vmem:[%s4173_s1 + $0x140] ss:$8 sps:$4 sm:$0xff]   ;;  %v2721_v17 = vld [vmem:[%s4173_s1 + $0x134] ss:$8 sps:$4 sm:$0xff]  }
   0x7   :  { %1610 = vmatpush1.bf16.msra.mxu0 %v2705_v6  ;;  %v2723_v18 = vld [vmem:[%s4173_s1 + $0x30] ss:$8 sps:$4 sm:$0xff]   ;;  %v2725_v20 = vld [vmem:[%s4173_s1 + $0x24] ss:$8 sps:$4 sm:$0xff]   ;;  %v2729_v22 = vld [vmem:[%s4173_s1 + $0x20] ss:$8 sps:$4 sm:$0xff]  }
   0x8   :  { %1651 = vmatpush1.bf16.msra.mxu1 %v2706_v7  ;;  %1611 = vmatprep.subr.bf16.mxu0 %v2707_v8  ;;  %v2724_v19 = vld [vmem:[%s4173_s1 + $0x130] ss:$8 sps:$4 sm:$0xff]   ;;  %v2727_v21 = vld [vmem:[%s4173_s1 + $0x124] ss:$8 sps:$4 sm:$0xff]   ;;  %v2730_v23 = vld [vmem:[%s4173_s1 + $0x120] ss:$8 sps:$4 sm:$0xff]  }
   0x9   :  { %1652 = vmatprep.subr.bf16.mxu1 %v2709_v9  ;;  %v2731_v24 = vld [vmem:[%s4173_s1 + $0x14] ss:$8 sps:$4 sm:$0xff]   ;;  %v2735_v26 = vld [vmem:[%s4173_s1 + $0x10] ss:$8 sps:$4 sm:$0xff]   ;;  %v2737_v28 = vld [vmem:[%s4173_s1 + $0x4] ss:$8 sps:$4 sm:$0xff]  }
   0xa   :  { %v2733_v25 = vld [vmem:[%s4173_s1 + $0x114] ss:$8 sps:$4 sm:$0xff]   ;;  %v2736_v27 = vld [vmem:[%s4173_s1 + $0x110] ss:$8 sps:$4 sm:$0xff]   ;;  %v2739_v29 = vld [vmem:[%s4173_s1 + $0x104] ss:$8 sps:$4 sm:$0xff]  }
   0xb   :  { %1612 = vmatpush1.bf16.msra.mxu0 %v2711_v10  ;;  %v2741_v30 = vld [vmem:[%s4173_s1] ss:$8 sps:$4 sm:$0xff]   ;;  %v2743_v32 = vld [vmem:[%s4173_s1 + $0xf4] ss:$8 sps:$4 sm:$0xff]   ;;  %v2747_v34 = vld [vmem:[%s4173_s1 + $0xf0] ss:$8 sps:$4 sm:$0xff]  }
   0xc   :  { %1653 = vmatpush1.bf16.msra.mxu1 %v2712_v11  ;;  %1613 = vmatprep.subr.bf16.mxu0 %v2713_v12  ;;  %v2742_v31 = vld [vmem:[%s4173_s1 + $0x100] ss:$8 sps:$4 sm:$0xff]   ;;  %v2745_v33 = vld [vmem:[%s4173_s1 + $0x1f4] ss:$8 sps:$4 sm:$0xff]   ;;  %v2748_v35 = vld [vmem:[%s4173_s1 + $0x1f0] ss:$8 sps:$4 sm:$0xff]  }
   0xd   :  { %1654 = vmatprep.subr.bf16.mxu1 %v2715_v13  ;;  %v2749_v36 = vld [vmem:[%s4173_s1 + $0xe4] ss:$8 sps:$4 sm:$0xff]   ;;  %v2753_v38 = vld [vmem:[%s4173_s1 + $0xe0] ss:$8 sps:$4 sm:$0xff]   ;;  %v2755_v40 = vld [vmem:[%s4173_s1 + $0xd4] ss:$8 sps:$4 sm:$0xff]  }
   0xe   :  { %v2751_v37 = vld [vmem:[%s4173_s1 + $0x1e4] ss:$8 sps:$4 sm:$0xff]   ;;  %v2754_v39 = vld [vmem:[%s4173_s1 + $0x1e0] ss:$8 sps:$4 sm:$0xff]   ;;  %v2757_v41 = vld [vmem:[%s4173_s1 + $0x1d4] ss:$8 sps:$4 sm:$0xff]  }
   0xf   :  { %1614 = vmatpush1.bf16.msra.mxu0 %v2717_v14  ;;  %v2759_v42 = vld [vmem:[%s4173_s1 + $0xd0] ss:$8 sps:$4 sm:$0xff]   ;;  %v2761_v44 = vld [vmem:[%s4173_s1 + $0xc4] ss:$8 sps:$4 sm:$0xff]   ;;  %v2765_v47 = vld [vmem:[%s4173_s1 + $0xc0] ss:$8 sps:$4 sm:$0xff]  }
  0x10   :  { %1655 = vmatpush1.bf16.msra.mxu1 %v2718_v15  ;;  %1615 = vmatprep.subr.bf16.mxu0 %v2719_v16  ;;  %v2760_v43 = vld [vmem:[%s4173_s1 + $0x1d0] ss:$8 sps:$4 sm:$0xff]   ;;  %v2763_v45 = vld [vmem:[%s4173_s1 + $0x1c4] ss:$8 sps:$4 sm:$0xff]   ;;  %v2766_v48 = vld [vmem:[%s4173_s1 + $0x1c0] ss:$8 sps:$4 sm:$0xff]  }
  0x11   :  { %1656 = vmatprep.subr.bf16.mxu1 %v2721_v17  ;;  %v28_v46 = vld [vmem:[%s4174_s0 + $0x8] sm:$0xff]  ;;  %v30_v50 = vld [vmem:[%s4174_s0 + $0x18] sm:$0xff]  ;;  %v27_v4 = vld [vmem:[%s4174_s0] sm:$0xff] }
  0x12   :  { %v44_v49 = vpack.c.bf16 %v28_v46, %v28_v46  ;;  %v2767_v51 = vld [vmem:[%s4173_s1 + $0xb4] ss:$8 sps:$4 sm:$0xff]   ;;  %v46_v52 = vpack.c.bf16 %v30_v50, %v30_v50  ;;  %v2771_v54 = vld [vmem:[%s4173_s1 + $0xb0] ss:$8 sps:$4 sm:$0xff]   ;;  %v2773_v56 = vld [vmem:[%s4173_s1 + $0xa4] ss:$8 sps:$4 sm:$0xff]   ;;  %v43_v8 = vpack.c.bf16 %v27_v4, %v27_v4 }
  0x13   :  { %1616 = vmatpush1.bf16.msra.mxu0 %v2723_v18  ;;  %v2769_v53 = vld [vmem:[%s4173_s1 + $0x1b4] ss:$8 sps:$4 sm:$0xff]   ;;  %v2772_v55 = vld [vmem:[%s4173_s1 + $0x1b0] ss:$8 sps:$4 sm:$0xff]   ;;  %v2775_v57 = vld [vmem:[%s4173_s1 + $0x1a4] ss:$8 sps:$4 sm:$0xff]  }
  0x14   :  { %1657 = vmatpush1.bf16.msra.mxu1 %v2724_v19  ;;  %1617 = vmatprep.subr.bf16.mxu0 %v2725_v20  ;;  %v2777_v58 = vld [vmem:[%s4173_s1 + $0xa0] ss:$8 sps:$4 sm:$0xff]   ;;  %v2779_v60 = vld [vmem:[%s4173_s1 + $0x94] ss:$8 sps:$4 sm:$0xff]   ;;  %v2783_v62 = vld [vmem:[%s4173_s1 + $0x90] ss:$8 sps:$4 sm:$0xff]  }
  0x15   :  { %1658 = vmatprep.subr.bf16.mxu1 %v2727_v21  ;;  %1639 = vmatprep.mubr.bf16.mxu0 %v44_v49  ;;  %v2778_v59 = vld [vmem:[%s4173_s1 + $0x1a0] ss:$8 sps:$4 sm:$0xff]   ;;  %v2781_v61 = vld [vmem:[%s4173_s1 + $0x194] ss:$8 sps:$4 sm:$0xff]   ;;  %v2784_v63 = vld [vmem:[%s4173_s1 + $0x190] ss:$8 sps:$4 sm:$0xff]  }
  0x16   :  { %1680 = vmatprep.mubr.bf16.mxu1 %v46_v52  ;;  %v2785_v0 = vld [vmem:[%s4173_s1 + $0x84] ss:$8 sps:$4 sm:$0xff]   ;;  %v2789_v2 = vld [vmem:[%s4173_s1 + $0x80] ss:$8 sps:$4 sm:$0xff]   ;;  %v29_v5 = vld [vmem:[%s4174_s0 + $0x10] sm:$0xff] }
  0x17   :  { %1618 = vmatpush1.bf16.msra.mxu0 %v2729_v22  ;;  %v2787_v1 = vld [vmem:[%s4173_s1 + $0x184] ss:$8 sps:$4 sm:$0xff]   ;;  %v2790_v3 = vld [vmem:[%s4173_s1 + $0x180] ss:$8 sps:$4 sm:$0xff]   ;;  %v2793_v6 = vld [vmem:[%s4173_s1 + $0x274] ss:$8 sps:$4 sm:$0xff]   ;;  %v45_v9 = vpack.c.bf16 %v29_v5, %v29_v5 }
  0x18   :  { %1659 = vmatpush1.bf16.msra.mxu1 %v2730_v23  ;;  %1619 = vmatprep.subr.bf16.mxu0 %v2731_v24  ;;  %v2796_v7 = vld [vmem:[%s4173_s1 + $0x374] ss:$8 sps:$4 sm:$0xff]   ;;  %v2791_v10 = vld [vmem:[%s4173_s1 + $0x270] ss:$8 sps:$4 sm:$0xff]   ;;  %v2799_v12 = vld [vmem:[%s4173_s1 + $0x264] ss:$8 sps:$4 sm:$0xff]  }
  0x19   :  { %1660 = vmatprep.subr.bf16.mxu1 %v2733_v25  ;;  %v2794_v11 = vld [vmem:[%s4173_s1 + $0x370] ss:$8 sps:$4 sm:$0xff]   ;;  %v2802_v13 = vld [vmem:[%s4173_s1 + $0x364] ss:$8 sps:$4 sm:$0xff]   ;;  %v2797_v14 = vld [vmem:[%s4173_s1 + $0x260] ss:$8 sps:$4 sm:$0xff]  }
  0x1a   :  { %v2800_v15 = vld [vmem:[%s4173_s1 + $0x360] ss:$8 sps:$4 sm:$0xff]   ;;  %v2805_v16 = vld [vmem:[%s4173_s1 + $0x254] ss:$8 sps:$4 sm:$0xff]   ;;  %v2803_v18 = vld [vmem:[%s4173_s1 + $0x250] ss:$8 sps:$4 sm:$0xff]  }
  0x1b   :  { %1620 = vmatpush1.bf16.msra.mxu0 %v2735_v26  ;;  %v2808_v17 = vld [vmem:[%s4173_s1 + $0x354] ss:$8 sps:$4 sm:$0xff]   ;;  %v2806_v19 = vld [vmem:[%s4173_s1 + $0x350] ss:$8 sps:$4 sm:$0xff]   ;;  %v2811_v20 = vld [vmem:[%s4173_s1 + $0x244] ss:$8 sps:$4 sm:$0xff]  }
  0x1c   :  { %1661 = vmatpush1.bf16.msra.mxu1 %v2736_v27  ;;  %1621 = vmatprep.subr.bf16.mxu0 %v2737_v28  ;;  %v2814_v21 = vld [vmem:[%s4173_s1 + $0x344] ss:$8 sps:$4 sm:$0xff]   ;;  %v2809_v22 = vld [vmem:[%s4173_s1 + $0x240] ss:$8 sps:$4 sm:$0xff]   ;;  %v2817_v24 = vld [vmem:[%s4173_s1 + $0x234] ss:$8 sps:$4 sm:$0xff]  }
  0x1d   :  { %1662 = vmatprep.subr.bf16.mxu1 %v2739_v29  ;;  %v2812_v23 = vld [vmem:[%s4173_s1 + $0x340] ss:$8 sps:$4 sm:$0xff]   ;;  %v2820_v25 = vld [vmem:[%s4173_s1 + $0x334] ss:$8 sps:$4 sm:$0xff]   ;;  %v2815_v26 = vld [vmem:[%s4173_s1 + $0x230] ss:$8 sps:$4 sm:$0xff]  }
  0x1e   :  { %v2818_v27 = vld [vmem:[%s4173_s1 + $0x330] ss:$8 sps:$4 sm:$0xff]   ;;  %v2823_v28 = vld [vmem:[%s4173_s1 + $0x224] ss:$8 sps:$4 sm:$0xff]   ;;  %v2845_v50 = vld [vmem:[%s4173_s1 + $0x2e0] ss:$8 sps:$4 sm:$0xff]  }
  0x1f   :  { %1622 = vmatpush1.bf16.msra.mxu0 %v2741_v30  ;;  %v2826_v29 = vld [vmem:[%s4173_s1 + $0x324] ss:$8 sps:$4 sm:$0xff]   ;;  %v2821_v30 = vld [vmem:[%s4173_s1 + $0x220] ss:$8 sps:$4 sm:$0xff]   ;;  %v2839_v46 = vld [vmem:[%s4173_s1 + $0x2f0] ss:$8 sps:$4 sm:$0xff]  }
  0x20   :  { %1663 = vmatpush1.bf16.msra.mxu1 %v2742_v31  ;;  %1623 = vmatprep.subr.bf16.mxu0 %v2743_v32  ;;  %v2824_v31 = vld [vmem:[%s4173_s1 + $0x320] ss:$8 sps:$4 sm:$0xff]   ;;  %v2829_v32 = vld [vmem:[%s4173_s1 + $0x214] ss:$8 sps:$4 sm:$0xff]   ;;  %v2850_v49 = vld [vmem:[%s4173_s1 + $0x3e4] ss:$8 sps:$4 sm:$0xff]  }
  0x21   :  { %1664 = vmatprep.subr.bf16.mxu1 %v2745_v33  ;;  %v2832_v33 = vld [vmem:[%s4173_s1 + $0x314] ss:$8 sps:$4 sm:$0xff]  }
  0x22   :  { %v2853_v52 = vld [vmem:[%s4173_s1 + $0x2d4] ss:$8 sps:$4 sm:$0xff]  }
  0x23   :  { %1624 = vmatpush2.bf16.msra.mxu0 %v2747_v34  ;;  %v32_v34 = vld [vmem:[%s4174_s0 + $0x28] sm:$0xff]  ;;  %v2877_v4 = vld [vmem:[%s4173_s1 + $0x294] ss:$8 sps:$4 sm:$0xff]  }
  0x24   :  { %1665 = vmatpush2.bf16.msra.mxu1 %v2748_v35  ;;  %1625 = vmatprep.subr.bf16.mxu0 %v2749_v36  ;;  %v2827_v35 = vld [vmem:[%s4173_s1 + $0x210] ss:$8 sps:$4 sm:$0xff]   ;;  %v2880_v5 = vld [vmem:[%s4173_s1 + $0x394] ss:$8 sps:$4 sm:$0xff]  }
  0x25   :  { %1666 = vmatprep.subr.bf16.mxu1 %v2751_v37  ;;  %v2830_v36 = vld [vmem:[%s4173_s1 + $0x310] ss:$8 sps:$4 sm:$0xff]   ;;  %v48_v37 = vpack.c.bf16 %v32_v34, %v32_v34  ;;  %v2905_v34 = vld [vmem:[%s4173_s1 + $0x440] ss:$8 sps:$4 sm:$0xff]  }
  0x27   :  { %1626 = vmatpush2.bf16.msra.mxu0 %v2753_v38  ;;  %v34_v38 = vld [vmem:[%s4174_s0 + $0x38] sm:$0xff] }
  0x28   :  { %1667 = vmatpush2.bf16.msra.mxu1 %v2754_v39  ;;  %1627 = vmatprep.subr.bf16.mxu0 %v2755_v40  ;;  %v2835_v39 = vld [vmem:[%s4173_s1 + $0x204] ss:$8 sps:$4 sm:$0xff]   ;;  %v50_v40 = vpack.c.bf16 %v34_v38, %v34_v38  ;;  %v2911_v38 = vld [vmem:[%s4173_s1 + $0x430] ss:$8 sps:$4 sm:$0xff]  }
  0x29   :  { %1668 = vmatprep.subr.bf16.mxu1 %v2757_v41  ;;  %v2838_v41 = vld [vmem:[%s4173_s1 + $0x304] ss:$8 sps:$4 sm:$0xff]  }
  0x2b   :  { %1628 = vmatpush2.bf16.msra.mxu0 %v2759_v42  ;;  %v2833_v42 = vld [vmem:[%s4173_s1 + $0x200] ss:$8 sps:$4 sm:$0xff]  }
  0x2c   :  { %1669 = vmatpush2.bf16.msra.mxu1 %v2760_v43  ;;  %1629 = vmatprep.subr.bf16.mxu0 %v2761_v44  ;;  %v2836_v43 = vld [vmem:[%s4173_s1 + $0x300] ss:$8 sps:$4 sm:$0xff]   ;;  %v2841_v44 = vld [vmem:[%s4173_s1 + $0x2f4] ss:$8 sps:$4 sm:$0xff]  }
  0x2d   :  { %1670 = vmatprep.subr.bf16.mxu1 %v2763_v45  ;;  %v2844_v45 = vld [vmem:[%s4173_s1 + $0x3f4] ss:$8 sps:$4 sm:$0xff]  }
  0x2f   :  { %1630 = vmatpush2.bf16.msra.mxu0 %v2765_v47  ;;  %v2842_v47 = vld [vmem:[%s4173_s1 + $0x3f0] ss:$8 sps:$4 sm:$0xff]  }
  0x30   :  { %1671 = vmatpush2.bf16.msra.mxu1 %v2766_v48  ;;  %1631 = vmatprep.subr.bf16.mxu0 %v2767_v51  ;;  %v2847_v48 = vld [vmem:[%s4173_s1 + $0x2e4] ss:$8 sps:$4 sm:$0xff]   ;;  %v2848_v51 = vld [vmem:[%s4173_s1 + $0x3e0] ss:$8 sps:$4 sm:$0xff]  }
  0x31   :  { %1672 = vmatprep.subr.bf16.mxu1 %v2769_v53  ;;  %v2856_v53 = vld [vmem:[%s4173_s1 + $0x3d4] ss:$8 sps:$4 sm:$0xff]  }
  0x33   :  { %1632 = vmatpush2.bf16.msra.mxu0 %v2771_v54  ;;  %v2851_v54 = vld [vmem:[%s4173_s1 + $0x2d0] ss:$8 sps:$4 sm:$0xff]  }
  0x34   :  { %1673 = vmatpush2.bf16.msra.mxu1 %v2772_v55  ;;  %1633 = vmatprep.subr.bf16.mxu0 %v2773_v56  ;;  %v2854_v55 = vld [vmem:[%s4173_s1 + $0x3d0] ss:$8 sps:$4 sm:$0xff]   ;;  %v2859_v56 = vld [vmem:[%s4173_s1 + $0x2c4] ss:$8 sps:$4 sm:$0xff]  }
  0x35   :  { %1674 = vmatprep.subr.bf16.mxu1 %v2775_v57  ;;  %v2862_v57 = vld [vmem:[%s4173_s1 + $0x3c4] ss:$8 sps:$4 sm:$0xff]  }
  0x37   :  { %1634 = vmatpush2.bf16.msra.mxu0 %v2777_v58  ;;  %v2857_v58 = vld [vmem:[%s4173_s1 + $0x2c0] ss:$8 sps:$4 sm:$0xff]  }
  0x38   :  { %1675 = vmatpush2.bf16.msra.mxu1 %v2778_v59  ;;  %1635 = vmatprep.subr.bf16.mxu0 %v2779_v60  ;;  %v2860_v59 = vld [vmem:[%s4173_s1 + $0x3c0] ss:$8 sps:$4 sm:$0xff]   ;;  %v2865_v60 = vld [vmem:[%s4173_s1 + $0x2b4] ss:$8 sps:$4 sm:$0xff]  }
  0x39   :  { %1676 = vmatprep.subr.bf16.mxu1 %v2781_v61  ;;  %v2868_v61 = vld [vmem:[%s4173_s1 + $0x3b4] ss:$8 sps:$4 sm:$0xff]  }
  0x3b   :  { %1636 = vmatpush2.bf16.msra.mxu0 %v2783_v62  ;;  %v2863_v62 = vld [vmem:[%s4173_s1 + $0x2b0] ss:$8 sps:$4 sm:$0xff]  }
  0x3c   :  { %1677 = vmatpush2.bf16.msra.mxu1 %v2784_v63  ;;  %1637 = vmatprep.subr.bf16.mxu0 %v2785_v0  ;;  %v2866_v63 = vld [vmem:[%s4173_s1 + $0x3b0] ss:$8 sps:$4 sm:$0xff]   ;;  %v2871_v0 = vld [vmem:[%s4173_s1 + $0x2a4] ss:$8 sps:$4 sm:$0xff]  }
  0x3d   :  { %1678 = vmatprep.subr.bf16.mxu1 %v2787_v1  ;;  %v2874_v1 = vld [vmem:[%s4173_s1 + $0x3a4] ss:$8 sps:$4 sm:$0xff]  }
  0x3f   :  { %1638 = vmatpush2.bf16.msra.mxu0 %v2789_v2  ;;  %v2869_v2 = vld [vmem:[%s4173_s1 + $0x2a0] ss:$8 sps:$4 sm:$0xff]  }
  0x40   :  { %1679 = vmatpush2.bf16.msra.mxu1 %v2790_v3  ;;  %1689 = vmatprep.subr.bf16.mxu0 %v2793_v6  ;;  %v2872_v3 = vld [vmem:[%s4173_s1 + $0x3a0] ss:$8 sps:$4 sm:$0xff]   ;;  %v2875_v6 = vld [vmem:[%s4173_s1 + $0x290] ss:$8 sps:$4 sm:$0xff]  }
  0x41   :  { %1730 = vmatprep.subr.bf16.mxu1 %v2796_v7  ;;  %v2878_v7 = vld [vmem:[%s4173_s1 + $0x390] ss:$8 sps:$4 sm:$0xff]  }
  0x42   :  { %1640 = vmatmul.mubr.bf16.vlgmr.msra.gmra.mxu0 %v43_v8  ;;  %v2883_v8 = vld [vmem:[%s4173_s1 + $0x284] ss:$8 sps:$4 sm:$0xff]  }
  0x43   :  { %1681 = vmatmul.mubr.bf16.vlgmr.msra.gmra.mxu1 %v45_v9  ;;  %1690 = vmatpush1.bf16.msra.mxu0 %v2791_v10  ;;  %v2886_v9 = vld [vmem:[%s4173_s1 + $0x384] ss:$8 sps:$4 sm:$0xff]   ;;  %v2881_v10 = vld [vmem:[%s4173_s1 + $0x280] ss:$8 sps:$4 sm:$0xff]  }
  0x44   :  { %1731 = vmatpush1.bf16.msra.mxu1 %v2794_v11  ;;  %1691 = vmatprep.subr.bf16.mxu0 %v2799_v12  ;;  %v2884_v11 = vld [vmem:[%s4173_s1 + $0x380] ss:$8 sps:$4 sm:$0xff]  }
  0x45   :  { %1732 = vmatprep.subr.bf16.mxu1 %v2802_v13  ;;  %1721 = vmatprep.mubr.bf16.mxu0 %v48_v37  ;;  %v31_v12 = vld [vmem:[%s4174_s0 + $0x20] sm:$0xff]  ;;  %v33_v13 = vld [vmem:[%s4174_s0 + $0x30] sm:$0xff] }
  0x46   :  { %1762 = vmatprep.mubr.bf16.mxu1 %v50_v40  ;;  %v2916_v37 = vld [vmem:[%s4173_s1 + $0x534] ss:$8 sps:$4 sm:$0xff]   ;;  %v2919_v40 = vld [vmem:[%s4173_s1 + $0x424] ss:$8 sps:$4 sm:$0xff]  }
  0x47   :  { %1692 = vmatpush1.bf16.msra.mxu0 %v2797_v14  ;;  %v2889_v14 = vld [vmem:[%s4173_s1 + $0x474] ss:$8 sps:$4 sm:$0xff]  }
  0x48   :  { %1733 = vmatpush1.bf16.msra.mxu1 %v2800_v15  ;;  %1693 = vmatprep.subr.bf16.mxu0 %v2805_v16  ;;  %v2892_v15 = vld [vmem:[%s4173_s1 + $0x574] ss:$8 sps:$4 sm:$0xff]   ;;  %v47_v16 = vpack.c.bf16 %v31_v12, %v31_v12 }
  0x49   :  { %1734 = vmatprep.subr.bf16.mxu1 %v2808_v17  ;;  %v49_v17 = vpack.c.bf16 %v33_v13, %v33_v13  ;;  %v2973_v12 = vld [vmem:[%s4173_s1 + $0x494] ss:$8 sps:$4 sm:$0xff]  }
  0x4a   :  { %v2976_v13 = vld [vmem:[%s4173_s1 + $0x594] ss:$8 sps:$4 sm:$0xff]  }
  0x4b   :  { %1694 = vmatpush1.bf16.msra.mxu0 %v2803_v18  ;;  %v2887_v18 = vld [vmem:[%s4173_s1 + $0x470] ss:$8 sps:$4 sm:$0xff]  }
  0x4c   :  { %1735 = vmatpush1.bf16.msra.mxu1 %v2806_v19  ;;  %1695 = vmatprep.subr.bf16.mxu0 %v2811_v20  ;;  %v2890_v19 = vld [vmem:[%s4173_s1 + $0x570] ss:$8 sps:$4 sm:$0xff]   ;;  %v2895_v20 = vld [vmem:[%s4173_s1 + $0x464] ss:$8 sps:$4 sm:$0xff]  }
  0x4d   :  { %1736 = vmatprep.subr.bf16.mxu1 %v2814_v21  ;;  %v2898_v21 = vld [vmem:[%s4173_s1 + $0x564] ss:$8 sps:$4 sm:$0xff]  }
  0x4f   :  { %1696 = vmatpush1.bf16.msra.mxu0 %v2809_v22  ;;  %v36_v22 = vld [vmem:[%s4174_s0 + $0x48] sm:$0xff] }
  0x50   :  { %1737 = vmatpush1.bf16.msra.mxu1 %v2812_v23  ;;  %1697 = vmatprep.subr.bf16.mxu0 %v2817_v24  ;;  %v2893_v23 = vld [vmem:[%s4173_s1 + $0x460] ss:$8 sps:$4 sm:$0xff]  }
  0x51   :  { %1738 = vmatprep.subr.bf16.mxu1 %v2820_v25  ;;  %v2896_v24 = vld [vmem:[%s4173_s1 + $0x560] ss:$8 sps:$4 sm:$0xff]   ;;  %v52_v25 = vpack.c.bf16 %v36_v22, %v36_v22  ;;  %v2985_v22 = vld [vmem:[%s4173_s1 + $0x674] ss:$8 sps:$4 sm:$0xff]  }
  0x53   :  { %1698 = vmatpush1.bf16.msra.mxu0 %v2815_v26  ;;  %v38_v26 = vld [vmem:[%s4174_s0 + $0x58] sm:$0xff] }
  0x54   :  { %1739 = vmatpush1.bf16.msra.mxu1 %v2818_v27  ;;  %1699 = vmatprep.subr.bf16.mxu0 %v2823_v28  ;;  %v2901_v27 = vld [vmem:[%s4173_s1 + $0x454] ss:$8 sps:$4 sm:$0xff]   ;;  %v54_v28 = vpack.c.bf16 %v38_v26, %v38_v26  ;;  %v40_v26 = vld [vmem:[%s4174_s0 + $0x68] sm:$0xff] }
  0x55   :  { %1740 = vmatprep.subr.bf16.mxu1 %v2826_v29  ;;  %v2904_v29 = vld [vmem:[%s4173_s1 + $0x554] ss:$8 sps:$4 sm:$0xff]  }
  0x57   :  { %1700 = vmatpush1.bf16.msra.mxu0 %v2821_v30  ;;  %v2899_v30 = vld [vmem:[%s4173_s1 + $0x450] ss:$8 sps:$4 sm:$0xff]  }
  0x58   :  { %1741 = vmatpush1.bf16.msra.mxu1 %v2824_v31  ;;  %1701 = vmatprep.subr.bf16.mxu0 %v2829_v32  ;;  %v2902_v31 = vld [vmem:[%s4173_s1 + $0x550] ss:$8 sps:$4 sm:$0xff]   ;;  %v2907_v32 = vld [vmem:[%s4173_s1 + $0x444] ss:$8 sps:$4 sm:$0xff]  }
  0x59   :  { %1742 = vmatprep.subr.bf16.mxu1 %v2832_v33  ;;  %v2910_v33 = vld [vmem:[%s4173_s1 + $0x544] ss:$8 sps:$4 sm:$0xff]  }
  0x5b   :  { %1702 = vmatpush1.bf16.msra.mxu0 %v2827_v35  ;;  %v2908_v35 = vld [vmem:[%s4173_s1 + $0x540] ss:$8 sps:$4 sm:$0xff]  }
  0x5c   :  { %1743 = vmatpush1.bf16.msra.mxu1 %v2830_v36  ;;  %1703 = vmatprep.subr.bf16.mxu0 %v2835_v39  ;;  %v2913_v36 = vld [vmem:[%s4173_s1 + $0x434] ss:$8 sps:$4 sm:$0xff]   ;;  %v2914_v39 = vld [vmem:[%s4173_s1 + $0x530] ss:$8 sps:$4 sm:$0xff]  }
  0x5d   :  { %1744 = vmatprep.subr.bf16.mxu1 %v2838_v41  ;;  %v2922_v41 = vld [vmem:[%s4173_s1 + $0x524] ss:$8 sps:$4 sm:$0xff]  }
  0x5f   :  { %1704 = vmatpush1.bf16.msra.mxu0 %v2833_v42  ;;  %v2917_v42 = vld [vmem:[%s4173_s1 + $0x420] ss:$8 sps:$4 sm:$0xff]  }
  0x60   :  { %1745 = vmatpush1.bf16.msra.mxu1 %v2836_v43  ;;  %1705 = vmatprep.subr.bf16.mxu0 %v2841_v44  ;;  %v2920_v43 = vld [vmem:[%s4173_s1 + $0x520] ss:$8 sps:$4 sm:$0xff]   ;;  %v2925_v44 = vld [vmem:[%s4173_s1 + $0x414] ss:$8 sps:$4 sm:$0xff]  }
  0x61   :  { %1746 = vmatprep.subr.bf16.mxu1 %v2844_v45  ;;  %v2928_v45 = vld [vmem:[%s4173_s1 + $0x514] ss:$8 sps:$4 sm:$0xff]  }
  0x63   :  { %1706 = vmatpush2.bf16.msra.mxu0 %v2839_v46  ;;  %v2923_v46 = vld [vmem:[%s4173_s1 + $0x410] ss:$8 sps:$4 sm:$0xff]  }
  0x64   :  { %1747 = vmatpush2.bf16.msra.mxu1 %v2842_v47  ;;  %1707 = vmatprep.subr.bf16.mxu0 %v2847_v48  ;;  %v2926_v47 = vld [vmem:[%s4173_s1 + $0x510] ss:$8 sps:$4 sm:$0xff]   ;;  %v2931_v48 = vld [vmem:[%s4173_s1 + $0x404] ss:$8 sps:$4 sm:$0xff]  }
  0x65   :  { %1748 = vmatprep.subr.bf16.mxu1 %v2850_v49  ;;  %v2934_v49 = vld [vmem:[%s4173_s1 + $0x504] ss:$8 sps:$4 sm:$0xff]  }
  0x67   :  { %1708 = vmatpush2.bf16.msra.mxu0 %v2845_v50  ;;  %v2929_v50 = vld [vmem:[%s4173_s1 + $0x400] ss:$8 sps:$4 sm:$0xff]  }
  0x68   :  { %1749 = vmatpush2.bf16.msra.mxu1 %v2848_v51  ;;  %1709 = vmatprep.subr.bf16.mxu0 %v2853_v52  ;;  %v2932_v51 = vld [vmem:[%s4173_s1 + $0x500] ss:$8 sps:$4 sm:$0xff]   ;;  %v2937_v52 = vld [vmem:[%s4173_s1 + $0x4f4] ss:$8 sps:$4 sm:$0xff]  }
  0x69   :  { %1750 = vmatprep.subr.bf16.mxu1 %v2856_v53  ;;  %v2940_v53 = vld [vmem:[%s4173_s1 + $0x5f4] ss:$8 sps:$4 sm:$0xff]  }
  0x6b   :  { %1710 = vmatpush2.bf16.msra.mxu0 %v2851_v54  ;;  %v2935_v54 = vld [vmem:[%s4173_s1 + $0x4f0] ss:$8 sps:$4 sm:$0xff]  }
  0x6c   :  { %1751 = vmatpush2.bf16.msra.mxu1 %v2854_v55  ;;  %1711 = vmatprep.subr.bf16.mxu0 %v2859_v56  ;;  %v2938_v55 = vld [vmem:[%s4173_s1 + $0x5f0] ss:$8 sps:$4 sm:$0xff]   ;;  %v2943_v56 = vld [vmem:[%s4173_s1 + $0x4e4] ss:$8 sps:$4 sm:$0xff]  }
  0x6d   :  { %1752 = vmatprep.subr.bf16.mxu1 %v2862_v57  ;;  %v2946_v57 = vld [vmem:[%s4173_s1 + $0x5e4] ss:$8 sps:$4 sm:$0xff]  }
  0x6f   :  { %1712 = vmatpush2.bf16.msra.mxu0 %v2857_v58  ;;  %v2941_v58 = vld [vmem:[%s4173_s1 + $0x4e0] ss:$8 sps:$4 sm:$0xff]  }
  0x70   :  { %1753 = vmatpush2.bf16.msra.mxu1 %v2860_v59  ;;  %1713 = vmatprep.subr.bf16.mxu0 %v2865_v60  ;;  %v2944_v59 = vld [vmem:[%s4173_s1 + $0x5e0] ss:$8 sps:$4 sm:$0xff]   ;;  %v2949_v60 = vld [vmem:[%s4173_s1 + $0x4d4] ss:$8 sps:$4 sm:$0xff]  }
  0x71   :  { %1754 = vmatprep.subr.bf16.mxu1 %v2868_v61  ;;  %v2952_v61 = vld [vmem:[%s4173_s1 + $0x5d4] ss:$8 sps:$4 sm:$0xff]  }
  0x73   :  { %1714 = vmatpush2.bf16.msra.mxu0 %v2863_v62  ;;  %v2947_v62 = vld [vmem:[%s4173_s1 + $0x4d0] ss:$8 sps:$4 sm:$0xff]  }
  0x74   :  { %1755 = vmatpush2.bf16.msra.mxu1 %v2866_v63  ;;  %1715 = vmatprep.subr.bf16.mxu0 %v2871_v0  ;;  %v2950_v63 = vld [vmem:[%s4173_s1 + $0x5d0] ss:$8 sps:$4 sm:$0xff]   ;;  %v2955_v0 = vld [vmem:[%s4173_s1 + $0x4c4] ss:$8 sps:$4 sm:$0xff]  }
  0x75   :  { %1756 = vmatprep.subr.bf16.mxu1 %v2874_v1  ;;  %v2958_v1 = vld [vmem:[%s4173_s1 + $0x5c4] ss:$8 sps:$4 sm:$0xff]  }
  0x77   :  { %1716 = vmatpush2.bf16.msra.mxu0 %v2869_v2  ;;  %v2953_v2 = vld [vmem:[%s4173_s1 + $0x4c0] ss:$8 sps:$4 sm:$0xff]  }
  0x78   :  { %1757 = vmatpush2.bf16.msra.mxu1 %v2872_v3  ;;  %1717 = vmatprep.subr.bf16.mxu0 %v2877_v4  ;;  %v2956_v3 = vld [vmem:[%s4173_s1 + $0x5c0] ss:$8 sps:$4 sm:$0xff]   ;;  %v2961_v4 = vld [vmem:[%s4173_s1 + $0x4b4] ss:$8 sps:$4 sm:$0xff]  }
  0x79   :  { %1758 = vmatprep.subr.bf16.mxu1 %v2880_v5  ;;  %v2964_v5 = vld [vmem:[%s4173_s1 + $0x5b4] ss:$8 sps:$4 sm:$0xff]  }
  0x7b   :  { %1718 = vmatpush2.bf16.msra.mxu0 %v2875_v6  ;;  %v2959_v6 = vld [vmem:[%s4173_s1 + $0x4b0] ss:$8 sps:$4 sm:$0xff]  }
  0x7c   :  { %1759 = vmatpush2.bf16.msra.mxu1 %v2878_v7  ;;  %1719 = vmatprep.subr.bf16.mxu0 %v2883_v8  ;;  %v2962_v7 = vld [vmem:[%s4173_s1 + $0x5b0] ss:$8 sps:$4 sm:$0xff]   ;;  %v2967_v8 = vld [vmem:[%s4173_s1 + $0x4a4] ss:$8 sps:$4 sm:$0xff]  }
  0x7d   :  { %1760 = vmatprep.subr.bf16.mxu1 %v2886_v9  ;;  %v2970_v9 = vld [vmem:[%s4173_s1 + $0x5a4] ss:$8 sps:$4 sm:$0xff]  }
  0x7f   :  { %1720 = vmatpush2.bf16.msra.mxu0 %v2881_v10  ;;  %v2965_v10 = vld [vmem:[%s4173_s1 + $0x4a0] ss:$8 sps:$4 sm:$0xff]  }
  0x80   :  { %1761 = vmatpush2.bf16.msra.mxu1 %v2884_v11  ;;  %1771 = vmatprep.subr.bf16.mxu0 %v2889_v14  ;;  %v2968_v11 = vld [vmem:[%s4173_s1 + $0x5a0] ss:$8 sps:$4 sm:$0xff]   ;;  %v2971_v14 = vld [vmem:[%s4173_s1 + $0x490] ss:$8 sps:$4 sm:$0xff]  }
  0x81   :  { %1812 = vmatprep.subr.bf16.mxu1 %v2892_v15  ;;  %v2974_v15 = vld [vmem:[%s4173_s1 + $0x590] ss:$8 sps:$4 sm:$0xff]  }
  0x82   :  { %1722 = vmatmul.mubr.bf16.vlgmr.msra.gmra.mxu0 %v47_v16  ;;  %v2979_v16 = vld [vmem:[%s4173_s1 + $0x484] ss:$8 sps:$4 sm:$0xff]  }
  0x83   :  { %1763 = vmatmul.mubr.bf16.vlgmr.msra.gmra.mxu1 %v49_v17  ;;  %1772 = vmatpush1.bf16.msra.mxu0 %v2887_v18  ;;  %v2982_v17 = vld [vmem:[%s4173_s1 + $0x584] ss:$8 sps:$4 sm:$0xff]   ;;  %v2977_v18 = vld [vmem:[%s4173_s1 + $0x480] ss:$8 sps:$4 sm:$0xff]  }
  0x84   :  { %1813 = vmatpush1.bf16.msra.mxu1 %v2890_v19  ;;  %1773 = vmatprep.subr.bf16.mxu0 %v2895_v20  ;;  %v2980_v19 = vld [vmem:[%s4173_s1 + $0x580] ss:$8 sps:$4 sm:$0xff]  }
  0x85   :  { %1814 = vmatprep.subr.bf16.mxu1 %v2898_v21  ;;  %1803 = vmatprep.mubr.bf16.mxu0 %v52_v25  ;;  %v35_v20 = vld [vmem:[%s4174_s0 + $0x40] sm:$0xff]  ;;  %v37_v21 = vld [vmem:[%s4174_s0 + $0x50] sm:$0xff] }
  0x86   :  { %1844 = vmatprep.mubr.bf16.mxu1 %v54_v28  ;;  %v53_v25 = vpack.c.bf16 %v37_v21, %v37_v21  ;;  %v2983_v28 = vld [vmem:[%s4173_s1 + $0x670] ss:$8 sps:$4 sm:$0xff]   ;;  %v3069_v21 = vld [vmem:[%s4173_s1 + $0x694] ss:$8 sps:$4 sm:$0xff]  }
  0x87   :  { %1774 = vmatpush1.bf16.msra.mxu0 %v2893_v23  ;;  %v2988_v23 = vld [vmem:[%s4173_s1 + $0x774] ss:$8 sps:$4 sm:$0xff]  }
  0x88   :  { %1815 = vmatpush1.bf16.msra.mxu1 %v2896_v24  ;;  %1775 = vmatprep.subr.bf16.mxu0 %v2901_v27  ;;  %v51_v24 = vpack.c.bf16 %v35_v20, %v35_v20  ;;  %v42_v27 = vld [vmem:[%s4174_s0 + $0x78] sm:$0xff]  ;;  %v317_v20 = vlaneseq }
  0x89   :  { %1816 = vmatprep.subr.bf16.mxu1 %v2904_v29  ;;  %v2986_v29 = vld [vmem:[%s4173_s1 + $0x770] ss:$8 sps:$4 sm:$0xff]  }
  0x8b   :  { %1776 = vmatpush1.bf16.msra.mxu0 %v2899_v30  ;;  %v2991_v30 = vld [vmem:[%s4173_s1 + $0x664] ss:$8 sps:$4 sm:$0xff]  }
  0x8c   :  { %1817 = vmatpush1.bf16.msra.mxu1 %v2902_v31  ;;  %1777 = vmatprep.subr.bf16.mxu0 %v2907_v32  ;;  %v2994_v31 = vld [vmem:[%s4173_s1 + $0x764] ss:$8 sps:$4 sm:$0xff]   ;;  %v56_v32 = vpack.c.bf16 %v40_v26, %v40_v26 }
  0x8d   :  { %1818 = vmatprep.subr.bf16.mxu1 %v2910_v33  ;;  %v58_v33 = vpack.c.bf16 %v42_v27, %v42_v27  ;;  %v3075_v26 = vld [vmem:[%s4173_s1 + $0x684] ss:$8 sps:$4 sm:$0xff]  }
  0x8e   :  { %v3078_v27 = vld [vmem:[%s4173_s1 + $0x784] ss:$8 sps:$4 sm:$0xff]  }
  0x8f   :  { %1778 = vmatpush1.bf16.msra.mxu0 %v2905_v34  ;;  %v2989_v34 = vld [vmem:[%s4173_s1 + $0x660] ss:$8 sps:$4 sm:$0xff]  }
  0x90   :  { %1819 = vmatpush1.bf16.msra.mxu1 %v2908_v35  ;;  %1779 = vmatprep.subr.bf16.mxu0 %v2913_v36  ;;  %v2992_v35 = vld [vmem:[%s4173_s1 + $0x760] ss:$8 sps:$4 sm:$0xff]   ;;  %v2997_v36 = vld [vmem:[%s4173_s1 + $0x654] ss:$8 sps:$4 sm:$0xff]  }
  0x91   :  { %1820 = vmatprep.subr.bf16.mxu1 %v2916_v37  ;;  %v3000_v37 = vld [vmem:[%s4173_s1 + $0x754] ss:$8 sps:$4 sm:$0xff]  }
  0x93   :  { %1780 = vmatpush1.bf16.msra.mxu0 %v2911_v38  ;;  %v2995_v38 = vld [vmem:[%s4173_s1 + $0x650] ss:$8 sps:$4 sm:$0xff]  }
  0x94   :  { %1821 = vmatpush1.bf16.msra.mxu1 %v2914_v39  ;;  %1781 = vmatprep.subr.bf16.mxu0 %v2919_v40  ;;  %v2998_v39 = vld [vmem:[%s4173_s1 + $0x750] ss:$8 sps:$4 sm:$0xff]   ;;  %v3003_v40 = vld [vmem:[%s4173_s1 + $0x644] ss:$8 sps:$4 sm:$0xff]  }
  0x95   :  { %1822 = vmatprep.subr.bf16.mxu1 %v2922_v41  ;;  %v3006_v41 = vld [vmem:[%s4173_s1 + $0x744] ss:$8 sps:$4 sm:$0xff]  }
  0x97   :  { %1782 = vmatpush1.bf16.msra.mxu0 %v2917_v42  ;;  %v3001_v42 = vld [vmem:[%s4173_s1 + $0x640] ss:$8 sps:$4 sm:$0xff]  }
  0x98   :  { %1823 = vmatpush1.bf16.msra.mxu1 %v2920_v43  ;;  %1783 = vmatprep.subr.bf16.mxu0 %v2925_v44  ;;  %v3004_v43 = vld [vmem:[%s4173_s1 + $0x740] ss:$8 sps:$4 sm:$0xff]   ;;  %v3009_v44 = vld [vmem:[%s4173_s1 + $0x634] ss:$8 sps:$4 sm:$0xff]  }
  0x99   :  { %1824 = vmatprep.subr.bf16.mxu1 %v2928_v45  ;;  %v3012_v45 = vld [vmem:[%s4173_s1 + $0x734] ss:$8 sps:$4 sm:$0xff]  }
  0x9b   :  { %1784 = vmatpush1.bf16.msra.mxu0 %v2923_v46  ;;  %v3007_v46 = vld [vmem:[%s4173_s1 + $0x630] ss:$8 sps:$4 sm:$0xff]  }
  0x9c   :  { %1825 = vmatpush1.bf16.msra.mxu1 %v2926_v47  ;;  %1785 = vmatprep.subr.bf16.mxu0 %v2931_v48  ;;  %v3010_v47 = vld [vmem:[%s4173_s1 + $0x730] ss:$8 sps:$4 sm:$0xff]   ;;  %v3015_v48 = vld [vmem:[%s4173_s1 + $0x624] ss:$8 sps:$4 sm:$0xff]  }
  0x9d   :  { %1826 = vmatprep.subr.bf16.mxu1 %v2934_v49  ;;  %v3018_v49 = vld [vmem:[%s4173_s1 + $0x724] ss:$8 sps:$4 sm:$0xff]  }
  0x9f   :  { %1786 = vmatpush1.bf16.msra.mxu0 %v2929_v50  ;;  %v3013_v50 = vld [vmem:[%s4173_s1 + $0x620] ss:$8 sps:$4 sm:$0xff]  }
  0xa0   :  { %1827 = vmatpush1.bf16.msra.mxu1 %v2932_v51  ;;  %1787 = vmatprep.subr.bf16.mxu0 %v2937_v52  ;;  %v3016_v51 = vld [vmem:[%s4173_s1 + $0x720] ss:$8 sps:$4 sm:$0xff]   ;;  %v3021_v52 = vld [vmem:[%s4173_s1 + $0x614] ss:$8 sps:$4 sm:$0xff]  }
  0xa1   :  { %1828 = vmatprep.subr.bf16.mxu1 %v2940_v53  ;;  %v3024_v53 = vld [vmem:[%s4173_s1 + $0x714] ss:$8 sps:$4 sm:$0xff]  }
  0xa3   :  { %1788 = vmatpush2.bf16.msra.mxu0 %v2935_v54  ;;  %v3019_v54 = vld [vmem:[%s4173_s1 + $0x610] ss:$8 sps:$4 sm:$0xff]  }
  0xa4   :  { %1829 = vmatpush2.bf16.msra.mxu1 %v2938_v55  ;;  %1789 = vmatprep.subr.bf16.mxu0 %v2943_v56  ;;  %v3022_v55 = vld [vmem:[%s4173_s1 + $0x710] ss:$8 sps:$4 sm:$0xff]   ;;  %v3027_v56 = vld [vmem:[%s4173_s1 + $0x604] ss:$8 sps:$4 sm:$0xff]  }
  0xa5   :  { %1830 = vmatprep.subr.bf16.mxu1 %v2946_v57  ;;  %v3030_v57 = vld [vmem:[%s4173_s1 + $0x704] ss:$8 sps:$4 sm:$0xff]  }
  0xa7   :  { %1790 = vmatpush2.bf16.msra.mxu0 %v2941_v58  ;;  %v3025_v58 = vld [vmem:[%s4173_s1 + $0x600] ss:$8 sps:$4 sm:$0xff]  }
  0xa8   :  { %1831 = vmatpush2.bf16.msra.mxu1 %v2944_v59  ;;  %1791 = vmatprep.subr.bf16.mxu0 %v2949_v60  ;;  %v3028_v59 = vld [vmem:[%s4173_s1 + $0x700] ss:$8 sps:$4 sm:$0xff]   ;;  %v3033_v60 = vld [vmem:[%s4173_s1 + $0x6f4] ss:$8 sps:$4 sm:$0xff]  }
  0xa9   :  { %1832 = vmatprep.subr.bf16.mxu1 %v2952_v61  ;;  %v3036_v61 = vld [vmem:[%s4173_s1 + $0x7f4] ss:$8 sps:$4 sm:$0xff]  }
  0xab   :  { %1792 = vmatpush2.bf16.msra.mxu0 %v2947_v62  ;;  %v3031_v62 = vld [vmem:[%s4173_s1 + $0x6f0] ss:$8 sps:$4 sm:$0xff]  }
  0xac   :  { %1833 = vmatpush2.bf16.msra.mxu1 %v2950_v63  ;;  %1793 = vmatprep.subr.bf16.mxu0 %v2955_v0  ;;  %v3034_v63 = vld [vmem:[%s4173_s1 + $0x7f0] ss:$8 sps:$4 sm:$0xff]   ;;  %v3039_v0 = vld [vmem:[%s4173_s1 + $0x6e4] ss:$8 sps:$4 sm:$0xff]  }
  0xad   :  { %1834 = vmatprep.subr.bf16.mxu1 %v2958_v1  ;;  %v3042_v1 = vld [vmem:[%s4173_s1 + $0x7e4] ss:$8 sps:$4 sm:$0xff]  }
  0xaf   :  { %1794 = vmatpush2.bf16.msra.mxu0 %v2953_v2  ;;  %v3037_v2 = vld [vmem:[%s4173_s1 + $0x6e0] ss:$8 sps:$4 sm:$0xff]  }
  0xb0   :  { %1835 = vmatpush2.bf16.msra.mxu1 %v2956_v3  ;;  %1795 = vmatprep.subr.bf16.mxu0 %v2961_v4  ;;  %v3040_v3 = vld [vmem:[%s4173_s1 + $0x7e0] ss:$8 sps:$4 sm:$0xff]   ;;  %v3045_v4 = vld [vmem:[%s4173_s1 + $0x6d4] ss:$8 sps:$4 sm:$0xff]  }
  0xb1   :  { %1836 = vmatprep.subr.bf16.mxu1 %v2964_v5  ;;  %v3048_v5 = vld [vmem:[%s4173_s1 + $0x7d4] ss:$8 sps:$4 sm:$0xff]  }
  0xb3   :  { %1796 = vmatpush2.bf16.msra.mxu0 %v2959_v6  ;;  %v3043_v6 = vld [vmem:[%s4173_s1 + $0x6d0] ss:$8 sps:$4 sm:$0xff]  }
  0xb4   :  { %1837 = vmatpush2.bf16.msra.mxu1 %v2962_v7  ;;  %1797 = vmatprep.subr.bf16.mxu0 %v2967_v8  ;;  %v3046_v7 = vld [vmem:[%s4173_s1 + $0x7d0] ss:$8 sps:$4 sm:$0xff]   ;;  %v3051_v8 = vld [vmem:[%s4173_s1 + $0x6c4] ss:$8 sps:$4 sm:$0xff]  }
  0xb5   :  { %1838 = vmatprep.subr.bf16.mxu1 %v2970_v9  ;;  %v3054_v9 = vld [vmem:[%s4173_s1 + $0x7c4] ss:$8 sps:$4 sm:$0xff]  }
  0xb7   :  { %1798 = vmatpush2.bf16.msra.mxu0 %v2965_v10  ;;  %v3049_v10 = vld [vmem:[%s4173_s1 + $0x6c0] ss:$8 sps:$4 sm:$0xff]  }
  0xb8   :  { %1839 = vmatpush2.bf16.msra.mxu1 %v2968_v11  ;;  %1799 = vmatprep.subr.bf16.mxu0 %v2973_v12  ;;  %v3052_v11 = vld [vmem:[%s4173_s1 + $0x7c0] ss:$8 sps:$4 sm:$0xff]   ;;  %v3057_v12 = vld [vmem:[%s4173_s1 + $0x6b4] ss:$8 sps:$4 sm:$0xff]  }
  0xb9   :  { %1840 = vmatprep.subr.bf16.mxu1 %v2976_v13  ;;  %v3060_v13 = vld [vmem:[%s4173_s1 + $0x7b4] ss:$8 sps:$4 sm:$0xff]  }
  0xbb   :  { %1800 = vmatpush2.bf16.msra.mxu0 %v2971_v14  ;;  %v3055_v14 = vld [vmem:[%s4173_s1 + $0x6b0] ss:$8 sps:$4 sm:$0xff]  }
  0xbc   :  { %1841 = vmatpush2.bf16.msra.mxu1 %v2974_v15  ;;  %1801 = vmatprep.subr.bf16.mxu0 %v2979_v16  ;;  %v3058_v15 = vld [vmem:[%s4173_s1 + $0x7b0] ss:$8 sps:$4 sm:$0xff]   ;;  %v3063_v16 = vld [vmem:[%s4173_s1 + $0x6a4] ss:$8 sps:$4 sm:$0xff]  }
  0xbd   :  { %1842 = vmatprep.subr.bf16.mxu1 %v2982_v17  ;;  %v3066_v17 = vld [vmem:[%s4173_s1 + $0x7a4] ss:$8 sps:$4 sm:$0xff]  }
  0xbf   :  { %1802 = vmatpush2.bf16.msra.mxu0 %v2977_v18  ;;  %v3061_v18 = vld [vmem:[%s4173_s1 + $0x6a0] ss:$8 sps:$4 sm:$0xff]  }
  0xc0   :  { %1843 = vmatpush2.bf16.msra.mxu1 %v2980_v19  ;;  %1853 = vmatprep.subr.bf16.mxu0 %v2985_v22  ;;  %v3064_v19 = vld [vmem:[%s4173_s1 + $0x7a0] ss:$8 sps:$4 sm:$0xff]   ;;  %v3072_v22 = vld [vmem:[%s4173_s1 + $0x794] ss:$8 sps:$4 sm:$0xff]  }
  0xc1   :  { %1894 = vmatprep.subr.bf16.mxu1 %v2988_v23  ;;  %v3067_v23 = vld [vmem:[%s4173_s1 + $0x690] ss:$8 sps:$4 sm:$0xff]  }
  0xc2   :  { %1804 = vmatmul.mubr.bf16.vlgmr.msra.gmra.mxu0 %v51_v24  ;;  %v3070_v24 = vld [vmem:[%s4173_s1 + $0x790] ss:$8 sps:$4 sm:$0xff]  }
  0xc3   :  { %1845 = vmatmul.mubr.bf16.vlgmr.msra.gmra.mxu1 %v53_v25  ;;  %1854 = vmatpush1.bf16.msra.mxu0 %v2983_v28  ;;  %v3981_v25 = vshrl.u32 %v317_v20, 7  ;;  %v3073_v28 = vld [vmem:[%s4173_s1 + $0x680] ss:$8 sps:$4 sm:$0xff]   ;;  %v3123_v20 = vld [vmem:[%s4176_s3 + $0x94] ss:$8 sps:$4 sm:$0xff]  }
  0xc4   :  { %1895 = vmatpush1.bf16.msra.mxu1 %v2986_v29  ;;  %1855 = vmatprep.subr.bf16.mxu0 %v2991_v30  ;;  %v3076_v29 = vld [vmem:[%s4173_s1 + $0x780] ss:$8 sps:$4 sm:$0xff]  }
  0xc5   :  { %1896 = vmatprep.subr.bf16.mxu1 %v2994_v31  ;;  %1885 = vmatprep.mubr.bf16.mxu0 %v56_v32  ;;  %v319_v30 = vsub.s32 0, %v3981_v25  ;;  %v39_v31 = vld [vmem:[%s4174_s0 + $0x60] sm:$0xff]  ;;  %v41_v32 = vld [vmem:[%s4174_s0 + $0x70] sm:$0xff] }
  0xc6   :  { %1926 = vmatprep.mubr.bf16.mxu1 %v58_v33  ;;  %v315_v33 = vld [vmem:[%s4175_s2] sm:$0x3] }
  0xc7   :  { %1856 = vmatpush1.bf16.msra.mxu0 %v2989_v34  ;;  %v323_v34 = vsub.s32 1, %v3981_v25 }
  0xc8   :  { %1897 = vmatpush1.bf16.msra.mxu1 %v2992_v35  ;;  %1857 = vmatprep.subr.bf16.mxu0 %v2997_v36  ;;  %v55_v35 = vpack.c.bf16 %v39_v31, %v39_v31  ;;  %v57_v36 = vpack.c.bf16 %v41_v32, %v41_v32  ;;  %v3126_v31 = vld [vmem:[%s4176_s3 + $0x84] ss:$8 sps:$4 sm:$0xff]   ;;  %v3124_v32 = vld [vmem:[%s4176_s3 + $0x80] ss:$8 sps:$4 sm:$0xff]  }
  0xc9   :  { %1898 = vmatprep.subr.bf16.mxu1 %v3000_v37  ;;  %v320_v37 = vrot.slane %v315_v33, %v319_v30 }
  0xcb   :  { %1858 = vmatpush1.bf16.msra.mxu0 %v2995_v38  ;;  %v324_v38 = vrot.slane %v315_v33, %v323_v34  ;;  %v3127_v33 = vld [vmem:[%s4177_s5 + $0x78] sm:$0xff]  }
  0xcc   :  { %1899 = vmatpush1.bf16.msra.mxu1 %v2998_v39  ;;  %1859 = vmatprep.subr.bf16.mxu0 %v3003_v40 }
  0xcd   :  { %1900 = vmatprep.subr.bf16.mxu1 %v3006_v41 }
  0xcf   :  { %1860 = vmatpush1.bf16.msra.mxu0 %v3001_v42 }
  0xd0   :  { %1901 = vmatpush1.bf16.msra.mxu1 %v3004_v43  ;;  %1861 = vmatprep.subr.bf16.mxu0 %v3009_v44 }
  0xd1   :  { %1902 = vmatprep.subr.bf16.mxu1 %v3012_v45 }
  0xd3   :  { %1862 = vmatpush1.bf16.msra.mxu0 %v3007_v46 }
  0xd4   :  { %1903 = vmatpush1.bf16.msra.mxu1 %v3010_v47  ;;  %1863 = vmatprep.subr.bf16.mxu0 %v3015_v48 }
  0xd5   :  { %1904 = vmatprep.subr.bf16.mxu1 %v3018_v49 }
  0xd7   :  { %1864 = vmatpush1.bf16.msra.mxu0 %v3013_v50 }
  0xd8   :  { %1905 = vmatpush1.bf16.msra.mxu1 %v3016_v51  ;;  %1865 = vmatprep.subr.bf16.mxu0 %v3021_v52  ;;  %v3079_v51 = vld [vmem:[%s4176_s3 + $0x70] ss:$8 sps:$4 sm:$0xff]   ;;  %v3081_v52 = vld [vmem:[%s4176_s3 + $0x74] ss:$8 sps:$4 sm:$0xff]  }
  0xd9   :  { %1906 = vmatprep.subr.bf16.mxu1 %v3024_v53  ;;  %v3084_v53 = vld [vmem:[%s4176_s3 + $0x64] ss:$8 sps:$4 sm:$0xff]  }
  0xdb   :  { %1866 = vmatpush1.bf16.msra.mxu0 %v3019_v54  ;;  %v3082_v54 = vld [vmem:[%s4176_s3 + $0x60] ss:$8 sps:$4 sm:$0xff]  }
  0xdc   :  { %1907 = vmatpush1.bf16.msra.mxu1 %v3022_v55  ;;  %1867 = vmatprep.subr.bf16.mxu0 %v3027_v56  ;;  %v3087_v55 = vld [vmem:[%s4176_s3 + $0x54] ss:$8 sps:$4 sm:$0xff]   ;;  %v3085_v56 = vld [vmem:[%s4176_s3 + $0x50] ss:$8 sps:$4 sm:$0xff]  }
  0xdd   :  { %1908 = vmatprep.subr.bf16.mxu1 %v3030_v57  ;;  %v3090_v57 = vld [vmem:[%s4176_s3 + $0x44] ss:$8 sps:$4 sm:$0xff]  }
  0xdf   :  { %1868 = vmatpush1.bf16.msra.mxu0 %v3025_v58  ;;  %v3088_v58 = vld [vmem:[%s4176_s3 + $0x40] ss:$8 sps:$4 sm:$0xff]  }
  0xe0   :  { %1909 = vmatpush1.bf16.msra.mxu1 %v3028_v59  ;;  %1869 = vmatprep.subr.bf16.mxu0 %v3033_v60  ;;  %v3093_v59 = vld [vmem:[%s4176_s3 + $0x34] ss:$8 sps:$4 sm:$0xff]   ;;  %v3091_v60 = vld [vmem:[%s4176_s3 + $0x30] ss:$8 sps:$4 sm:$0xff]  }
  0xe1   :  { %1910 = vmatprep.subr.bf16.mxu1 %v3036_v61  ;;  %v3096_v61 = vld [vmem:[%s4176_s3 + $0x24] ss:$8 sps:$4 sm:$0xff]  }
  0xe3   :  { %1870 = vmatpush2.bf16.msra.mxu0 %v3031_v62  ;;  %v3094_v62 = vld [vmem:[%s4176_s3 + $0x20] ss:$8 sps:$4 sm:$0xff]  }
  0xe4   :  { %1911 = vmatpush2.bf16.msra.mxu1 %v3034_v63  ;;  %1871 = vmatprep.subr.bf16.mxu0 %v3039_v0  ;;  %v3099_v63 = vld [vmem:[%s4176_s3 + $0x14] ss:$8 sps:$4 sm:$0xff]   ;;  %v3097_v0 = vld [vmem:[%s4176_s3 + $0x10] ss:$8 sps:$4 sm:$0xff]  }
  0xe5   :  { %1912 = vmatprep.subr.bf16.mxu1 %v3042_v1  ;;  %v3102_v1 = vld [vmem:[%s4176_s3 + $0x4] ss:$8 sps:$4 sm:$0xff]  }
  0xe7   :  { %1872 = vmatpush2.bf16.msra.mxu0 %v3037_v2  ;;  %v3100_v2 = vld [vmem:[%s4176_s3] ss:$8 sps:$4 sm:$0xff]  }
  0xe8   :  { %1913 = vmatpush2.bf16.msra.mxu1 %v3040_v3  ;;  %1873 = vmatprep.subr.bf16.mxu0 %v3045_v4  ;;  %v3105_v3 = vld [vmem:[%s4176_s3 + $0xf4] ss:$8 sps:$4 sm:$0xff]   ;;  %v3103_v4 = vld [vmem:[%s4176_s3 + $0xf0] ss:$8 sps:$4 sm:$0xff]  }
  0xe9   :  { %1914 = vmatprep.subr.bf16.mxu1 %v3048_v5  ;;  %v3108_v5 = vld [vmem:[%s4176_s3 + $0xe4] ss:$8 sps:$4 sm:$0xff]  }
  0xeb   :  { %1874 = vmatpush2.bf16.msra.mxu0 %v3043_v6  ;;  %v3106_v6 = vld [vmem:[%s4176_s3 + $0xe0] ss:$8 sps:$4 sm:$0xff]  }
  0xec   :  { %1915 = vmatpush2.bf16.msra.mxu1 %v3046_v7  ;;  %1875 = vmatprep.subr.bf16.mxu0 %v3051_v8  ;;  %v3111_v7 = vld [vmem:[%s4176_s3 + $0xd4] ss:$8 sps:$4 sm:$0xff]   ;;  %v3109_v8 = vld [vmem:[%s4176_s3 + $0xd0] ss:$8 sps:$4 sm:$0xff]  }
  0xed   :  { %1916 = vmatprep.subr.bf16.mxu1 %v3054_v9  ;;  %v3114_v9 = vld [vmem:[%s4176_s3 + $0xc4] ss:$8 sps:$4 sm:$0xff]  }
  0xef   :  { %1876 = vmatpush2.bf16.msra.mxu0 %v3049_v10  ;;  %v3112_v10 = vld [vmem:[%s4176_s3 + $0xc0] ss:$8 sps:$4 sm:$0xff]  }
  0xf0   :  { %1917 = vmatpush2.bf16.msra.mxu1 %v3052_v11  ;;  %1877 = vmatprep.subr.bf16.mxu0 %v3057_v12  ;;  %v3117_v11 = vld [vmem:[%s4176_s3 + $0xb4] ss:$8 sps:$4 sm:$0xff]   ;;  %v3115_v12 = vld [vmem:[%s4176_s3 + $0xb0] ss:$8 sps:$4 sm:$0xff]  }
  0xf1   :  { %1918 = vmatprep.subr.bf16.mxu1 %v3060_v13  ;;  %v3120_v13 = vld [vmem:[%s4176_s3 + $0xa4] ss:$8 sps:$4 sm:$0xff]  }
  0xf3   :  { %1878 = vmatpush2.bf16.msra.mxu0 %v3055_v14  ;;  %v3118_v14 = vld [vmem:[%s4176_s3 + $0xa0] ss:$8 sps:$4 sm:$0xff]  }
  0xf4   :  { %1919 = vmatpush2.bf16.msra.mxu1 %v3058_v15  ;;  %1879 = vmatprep.subr.bf16.mxu0 %v3063_v16 }
  0xf5   :  { %1920 = vmatprep.subr.bf16.mxu1 %v3066_v17 }
  0xf7   :  { %1880 = vmatpush2.bf16.msra.mxu0 %v3061_v18 }
  0xf8   :  { %1921 = vmatpush2.bf16.msra.mxu1 %v3064_v19  ;;  %1881 = vmatprep.subr.bf16.mxu0 %v3069_v21 }
  0xf9   :  { %1922 = vmatprep.subr.bf16.mxu1 %v3072_v22 }
  0xfb   :  { %1882 = vmatpush2.bf16.msra.mxu0 %v3067_v23  ;;  %v3121_v23 = vld [vmem:[%s4176_s3 + $0x90] ss:$8 sps:$4 sm:$0xff]  }
  0xfc   :  { %1923 = vmatpush2.bf16.msra.mxu1 %v3070_v24  ;;  %1883 = vmatprep.subr.bf16.mxu0 %v3075_v26 }
  0xfd   :  { %1924 = vmatprep.subr.bf16.mxu1 %v3078_v27 }
  0xff   :  { %1884 = vmatpush2.bf16.msra.mxu0 %v3073_v28 }
 0x100   :  { %1925 = vmatpush2.bf16.msra.mxu1 %v3076_v29  ;;  %2143 = vmatprep.subr.bf16.mxu0 %v3081_v52 }
 0x101   :  { %2673 = vmatprep.subr.bf16.mxu1 %v3127_v33 }
 0x102   :  { %v1641_v39 = vpop.f32.mrf.mxu0  ;;  %1886 = vmatmul.mubr.bf16.vlgmr.msra.gmra.mxu0 %v55_v35  ;;  %v3128_v35 = vld [vmem:[%s4177_s5 + $0x38] sm:$0xff]  }
 0x103   :  { %v1682_v40 = vpop.f32.mrf.mxu1  ;;  %1927 = vmatmul.mubr.bf16.vlgmr.msra.gmra.mxu1 %v57_v36  ;;  %v1642_v41 = vadd.f32 %v1641_v39, %v320_v37  ;;  %2144 = vmatpush1.bf16.msra.mxu0 %v3079_v51  ;;  %v3129_v36 = vld [vmem:[%s4177_s5 + $0x70] sm:$0xff]   ;;  %v3132_v39 = vld [vmem:[%s4177_s5 + $0x28] sm:$0xff]  }
 0x104   :  { %v1643_v42 = vpop.f32.mrf.mxu0  ;;  %2145 = vmatprep.subr.bf16.mxu0 %v3084_v53  ;;  %2674 = vmatpush3.bf16.msra.mxu1 %v3128_v35  ;;  %v3130_v37 = vld [vmem:[%s4177_s5 + $0x30] sm:$0xff]  }
 0x105   :  { %v1684_v43 = vpop.f32.mrf.mxu1  ;;  %v4010_v44 = vadd.f32 %v1682_v40, %v1642_v41  ;;  %v1644_v45 = vadd.f32 %v1643_v42, %v324_v38  ;;  %2675 = vmatprep.subr.bf16.mxu1 %v3129_v36  ;;  %v3131_v38 = vld [vmem:[%s4177_s5 + $0x68] sm:$0xff]   ;;  %v3133_v40 = vld [vmem:[%s4177_s5 + $0x60] sm:$0xff]   ;;  %v3135_v42 = vld [vmem:[%s4177_s5 + $0x58] sm:$0xff]  }
 0x106   :  { %v1645_v46 = vpop.f32.mrf.mxu0  ;;  %v3134_v41 = vld [vmem:[%s4177_s5 + $0x20] sm:$0xff]  }
 0x107   :  { %v1686_v47 = vpop.f32.mrf.mxu1  ;;  %v4012_v48 = vadd.f32 %v1684_v43, %v1644_v45  ;;  %2146 = vmatpush1.bf16.msra.mxu0 %v3082_v54  ;;  %v3136_v43 = vld [vmem:[%s4177_s5 + $0x18] sm:$0xff]   ;;  %v3138_v45 = vld [vmem:[%s4177_s5 + $0x10] sm:$0xff]  }
 0x108   :  { %v1646_v49 = vpop.f32.mrf.mxu0  ;;  %2147 = vmatprep.subr.bf16.mxu0 %v3087_v55  ;;  %2676 = vmatpush3.bf16.msra.mxu1 %v3130_v37 }
 0x109   :  { %v1687_v50 = vpop.f32.mrf.mxu1  ;;  %2677 = vmatprep.subr.bf16.mxu1 %v3131_v38 }
 0x10b   :  { %2148 = vmatpush1.bf16.msra.mxu0 %v3085_v56 }
 0x10c   :  { %2149 = vmatprep.subr.bf16.mxu0 %v3090_v57  ;;  %2678 = vmatpush3.bf16.msra.mxu1 %v3132_v39 }
 0x10d   :  { %2679 = vmatprep.subr.bf16.mxu1 %v3133_v40 }
 0x10f   :  { %2150 = vmatpush1.bf16.msra.mxu0 %v3088_v58 }
 0x110   :  { %2151 = vmatprep.subr.bf16.mxu0 %v3093_v59  ;;  %2680 = vmatpush3.bf16.msra.mxu1 %v3134_v41 }
 0x111   :  { %2681 = vmatprep.subr.bf16.mxu1 %v3135_v42 }
 0x113   :  { %2152 = vmatpush1.bf16.msra.mxu0 %v3091_v60 }
 0x114   :  { %2153 = vmatprep.subr.bf16.mxu0 %v3096_v61  ;;  %2682 = vmatpush3.bf16.msra.mxu1 %v3136_v43 }
 0x117   :  { %2154 = vmatpush1.bf16.msra.mxu0 %v3094_v62 }
 0x118   :  { %2155 = vmatprep.subr.bf16.mxu0 %v3099_v63 }
 0x11b   :  { %2156 = vmatpush1.bf16.msra.mxu0 %v3097_v0 }
 0x11c   :  { %2157 = vmatprep.subr.bf16.mxu0 %v3102_v1 }
 0x11f   :  { %2158 = vmatpush1.bf16.msra.mxu0 %v3100_v2 }
 0x120   :  { %2159 = vmatprep.subr.bf16.mxu0 %v3105_v3 }
 0x123   :  { %2160 = vmatpush2.bf16.msra.mxu0 %v3103_v4 }
 0x124   :  { %2161 = vmatprep.subr.bf16.mxu0 %v3108_v5 }
 0x127   :  { %2162 = vmatpush2.bf16.msra.mxu0 %v3106_v6 }
 0x128   :  { %2163 = vmatprep.subr.bf16.mxu0 %v3111_v7 }
 0x12b   :  { %2164 = vmatpush2.bf16.msra.mxu0 %v3109_v8 }
 0x12c   :  { %2165 = vmatprep.subr.bf16.mxu0 %v3114_v9 }
 0x12f   :  { %2166 = vmatpush2.bf16.msra.mxu0 %v3112_v10  ;;  %v3139_v10 = vld [vmem:[%s4177_s5 + $0x48] sm:$0xff]  }
 0x130   :  { %2167 = vmatprep.subr.bf16.mxu0 %v3117_v11  ;;  %v3140_v11 = vld [vmem:[%s4177_s5 + $0x8] sm:$0xff]  }
 0x133   :  { %2168 = vmatpush2.bf16.msra.mxu0 %v3115_v12  ;;  %v3141_v12 = vld [vmem:[%s4177_s5 + $0x40] sm:$0xff]  }
 0x134   :  { %2169 = vmatprep.subr.bf16.mxu0 %v3120_v13  ;;  %v3142_v13 = vld [vmem:[%s4177_s5] sm:$0xff]  }
 0x137   :  { %2170 = vmatpush2.bf16.msra.mxu0 %v3118_v14  ;;  %v1971_v14 = vld [vmem:[%s4178_s4] sm:$0x3] }
 0x138   :  { %2171 = vmatprep.subr.bf16.mxu0 %v3123_v20 }
 0x13b   :  { %2172 = vmatpush2.bf16.msra.mxu0 %v3121_v23 }
 0x13c   :  { %2173 = vmatprep.subr.bf16.mxu0 %v3126_v31 }
 0x13f   :  { %2174 = vmatpush2.bf16.msra.mxu0 %v3124_v32 }
 0x142   :  { %v1723_v15 = vpop.f32.mrf.mxu0 }
 0x143   :  { %v1764_v16 = vpop.f32.mrf.mxu1  ;;  %v1724_v17 = vadd.f32 %v1723_v15, %v4010_v44  ;;  %v3137_v44 = vld [vmem:[%s4177_s5 + $0x50] sm:$0xff]   ;;  %v1976_v15 = vrot.slane %v1971_v14, %v319_v30  ;;  %v2656_v30 = vld [vmem:[%s4179_s6] ss:$0 sm:$0xff] }
 0x144   :  { %v1725_v18 = vpop.f32.mrf.mxu0  ;;  %2683 = vmatprep.subr.bf16.mxu1 %v3137_v44 }
 0x145   :  { %v1766_v19 = vpop.f32.mrf.mxu1  ;;  %v1765_v21 = vadd.f32 %v1764_v16, %v1724_v17  ;;  %v1726_v22 = vadd.f32 %v1725_v18, %v4012_v48  ;;  %2684 = vmatpush3.bf16.msra.mxu1 %v3138_v45  ;;  %v1980_v16 = vrot.slane %v1971_v14, %v323_v34 }
 0x146   :  { %v1727_v24 = vpop.f32.mrf.mxu0  ;;  %2685 = vmatprep.subr.bf16.mxu1 %v3139_v10 }
 0x147   :  { %v1768_v26 = vpop.f32.mrf.mxu1  ;;  %v1767_v27 = vadd.f32 %v1766_v19, %v1726_v22 }
 0x148   :  { %v1728_v28 = vpop.f32.mrf.mxu0 }
 0x149   :  { %v1769_v29 = vpop.f32.mrf.mxu1  ;;  %2686 = vmatpush3.bf16.msra.mxu1 %v3140_v11 }
 0x14a   :  { %2687 = vmatprep.subr.bf16.mxu1 %v3141_v12 }
 0x14d   :  { %2688 = vmatpush3.bf16.msra.mxu1 %v3142_v13 }
 0x182   :  { %v1805_v46 = vpop.f32.mrf.mxu0 }
 0x183   :  { %v1846_v47 = vpop.f32.mrf.mxu1  ;;  %v1806_v48 = vadd.f32 %v1805_v46, %v1765_v21 }
 0x184   :  { %v1807_v49 = vpop.f32.mrf.mxu0 }
 0x185   :  { %v1848_v50 = vpop.f32.mrf.mxu1  ;;  %v1847_v51 = vadd.f32 %v1846_v47, %v1806_v48  ;;  %v1808_v56 = vadd.f32 %v1807_v49, %v1767_v27 }
 0x186   :  { %v1809_v52 = vpop.f32.mrf.mxu0 }
 0x187   :  { %v1850_v53 = vpop.f32.mrf.mxu1  ;;  %v1849_v59 = vadd.f32 %v1848_v50, %v1808_v56 }
 0x188   :  { %v1810_v54 = vpop.f32.mrf.mxu0 }
 0x189   :  { %v1851_v55 = vpop.f32.mrf.mxu1 }
 0x1c2   :  { %v1887_v57 = vpop.f32.mrf.mxu0 }
 0x1c3   :  { %v1928_v58 = vpop.f32.mrf.mxu1  ;;  %v1888_v60 = vadd.f32 %v1887_v57, %v1847_v51 }
 0x1c4   :  { %v1889_v61 = vpop.f32.mrf.mxu0 }
 0x1c5   :  { %v1930_v62 = vpop.f32.mrf.mxu1  ;;  %v1929_v63 = vadd.f32 %v1928_v58, %v1888_v60  ;;  %v1890_v0 = vadd.f32 %v1889_v61, %v1849_v59 }
 0x1c6   :  { %v1891_v1 = vpop.f32.mrf.mxu0 }
 0x1c7   :  { %v1932_v2 = vpop.f32.mrf.mxu1  ;;  %v1931_v3 = vadd.f32 %v1930_v62, %v1890_v0  ;;  %v1935_v4 = vmax.f32 %v1929_v63, 0.0 }
 0x1c8   :  { %v1892_v5 = vpop.f32.mrf.mxu0 }
 0x1c9   :  { %v1933_v6 = vpop.f32.mrf.mxu1  ;;  %v1936_v7 = vmax.f32 %v1931_v3, 0.0  ;;  %v1937_v9 = vpack.c.bf16 %v1935_v4, %v1935_v4 }
 0x1cb   :  { %v1938_v8 = vpack.c.bf16 %v1936_v7, %v1936_v7 }
 0x1cd   :  { %2175 = vmatprep.mubr.bf16.mxu0 %v1938_v8 }
 0x1ce   :  { %2176 = vmatmul.mubr.bf16.vlgmr.msra.gmra.mxu0 %v1937_v9 }
 0x28e   :  { %v2177_v17 = vpop.f32.mrf.mxu0 }
 0x28f   :  { %v2178_v18 = vadd.f32 %v2177_v17, %v1976_v15 }
 0x290   :  { %v2179_v19 = vpop.f32.mrf.mxu0 }
 0x291   :  { %v2180_v20 = vadd.f32 %v2179_v19, %v1980_v16  ;;  %v2184_v21 = vmax.f32 %v2178_v18, 0.0 }
 0x292   :  { %v2181_v22 = vpop.f32.mrf.mxu0 }
 0x293   :  { %v2185_v23 = vmax.f32 %v2180_v20, 0.0  ;;  %v2186_v27 = vpack.c.bf16 %v2184_v21, %v2184_v21 }
 0x294   :  { %v2182_v24 = vpop.f32.mrf.mxu0 }
 0x295   :  { %v2187_v26 = vpack.c.bf16 %v2185_v23, %v2185_v23 }
 0x297   :  { %2355 = vmatprep.mubr.bf16.mxu1 %v2187_v26 }
 0x298   :  { %2356 = vmatmul.mubr.bf16.vlgmr.msra.gmra.mxu1 %v2186_v27 }
 0x358   :  { %v2689_v28 = vpop.f32.mrf.mxu1 }
 0x35a   :  { %v2690_v29 = vpop.f32.mrf.mxu1 }
 0x35b   :  { %v2691_v25 = vadd.f32 %v2690_v29, %v2689_v28 }
 0x35c   :  { %v2692_v34 = vpop.f32.mrf.mxu1 }
 0x35d   :  { %v2358_v31 = vadd.f32 %v2691_v25, %v2656_v30 }
 0x35e   :  { %v2693_v32 = vpop.f32.mrf.mxu1 }
 0x35f   :  { %2363 = vst [vmem:[%s4180_s7] sm:$0xff] %v2358_v31 }

</bundles_post_ra>
